<compile_context>
chip_gen: v6e
topology: v6e:2x2x1
jax: 0.10.0
libtpu: 0.0.40
codegen_flags: <defaults>
</compile_context>

<pallas_src>
import numpy as np

import jax
import jax.numpy as jnp
from jax.experimental import pallas as pl
from jax.experimental.pallas import tpu as pltpu  # noqa: F401  (no TPU-specific params needed)

_EPS = 1e-5
_LAYER_CFG = [(4, 1, 0), (4, 2, 1), (4, 2, 1), (4, 2, 1), (4, 2, 1)]  # (k, s, p)
_SPATIAL = [1, 4, 8, 16, 32, 64]                                      # per-layer H=W
_OWC = 128                                                            # fused (ow*cout) lane width


# --------------------------------------------------------------------------
# One-time precomputed structure matrices (layout plumbing, cached with params)
# --------------------------------------------------------------------------
def _g_layer1(n_batch):
    """Row placement for conv1t (1x1 spatial input, stride 1, pad 0, k=4)."""
    gs = []
    for kh in range(4):
        g = np.zeros((n_batch * 4, n_batch), np.float32)
        for n in range(n_batch):
            g[n * 4 + kh, n] = 1.0
        gs.append(g)
    return np.stack(gs)                                    # (4, 4N, N)


def _b_layer1_cat(w_t):
    """Concatenated B blocks: block kh has B[ci, kw*Cout + co] = W[ci, co, kh, kw]."""
    cin, cout = w_t.shape[0], w_t.shape[1]
    blocks = [jnp.transpose(w_t[:, :, kh, :], (0, 2, 1)).reshape(cin, 4 * cout)
              for kh in range(4)]
    return jnp.concatenate(blocks, axis=-1)                # (Cin, 4*4*Cout) = (8, 512)


def _g_stride2(n_batch, h_in):
    """Row placement/selection for a k=4, s=2, p=1 ConvTranspose2d.

    Term t=(r, a): G[n*OH + 2i + r, n*H + (i + a + r - 1)] = 1 (out-of-range source rows
    give all-zero rows == zero padding).  (r, a) loop order MUST match _b_stride2_cat.
    """
    oh = 2 * h_in
    gs = []
    for r in range(2):
        for a in range(2):
            g = np.zeros((n_batch * oh, n_batch * h_in), np.float32)
            for n in range(n_batch):
                for i in range(h_in):
                    h = i + a + r - 1
                    if 0 <= h < h_in:
                        g[n * oh + 2 * i + r, n * h_in + h] = 1.0
            gs.append(g)
    return np.stack(gs)                                    # (4, N*OH, N*H)


def _b_stride2_cat(w_t, w_in, owc_pad):
    """Banded lane-mixing matrices for a k=4, s=2, p=1 ConvTranspose2d, concatenated
    along the output-lane axis (and zero-padded to owc_pad lanes per block).

    Block t=(r,a): B[(w, ci), (2j + c)*Cout + co] =
        sum_b 1[w == j+b+c-1] * W[ci, co, 3-r-2a, 3-c-2b].
    (r, a) loop order MUST match _g_stride2.
    """
    cin, cout = w_t.shape[0], w_t.shape[1]
    # pcol[w, j, c, b] = 1 iff w == j + b + c - 1 (column tap / padding structure)
    pcol = np.zeros((w_in, w_in, 2, 2), np.float32)
    for j in range(w_in):
        for c in range(2):
            for b in range(2):
                w = j + b + c - 1
                if 0 <= w < w_in:
                    pcol[w, j, c, b] = 1.0
    pcol = jnp.asarray(pcol)
    kw_idx = np.array([[3, 1], [2, 0]])                    # [c, b] -> kw = 3 - c - 2b
    blocks = []
    for r in range(2):
        for a in range(2):
            kh = 3 - r - 2 * a
            w_tap = w_t[:, :, kh, :][:, :, kw_idx]         # (Cin, Cout, 2c, 2b)
            b6 = jnp.einsum("wjcb,iocb->wijco", pcol, w_tap,
                            precision=jax.lax.Precision.HIGHEST)
            blk = b6.reshape(w_in * cin, w_in * 2 * cout)
            if owc_pad > blk.shape[1]:
                blk = jnp.pad(blk, ((0, 0), (0, owc_pad - blk.shape[1])))
            blocks.append(blk)
    return jnp.concatenate(blocks, axis=-1)                # (W*Cin, 4*owc_pad)


def _m_avg(ow, c):
    """(OW*C, OW*C): right-multiplying a (k, OW*C) stat matrix averages the fused
    w positions per channel and broadcasts back (folds BN stats in one matmul)."""
    return np.tile(np.eye(c, dtype=np.float32), (ow, ow)) / float(ow)


def prepare_generator_operands(params, n_batch):
    """One-time operand preparation (hoisted out of the per-call path; cache with params)."""
    ops = []
    for li in range(1, 6):
        w = params[f"w{li}"]
        h_in = _SPATIAL[li - 1]
        if li == 1:
            g = jnp.asarray(_g_layer1(n_batch)).astype(jnp.bfloat16)
            b = _b_layer1_cat(w).astype(jnp.bfloat16)
        else:
            g = jnp.asarray(_g_stride2(n_batch, h_in)).astype(jnp.bfloat16)
            b = _b_stride2_cat(w, h_in, _OWC).astype(jnp.bfloat16)
        ops += [g, b]
        if li < 5:
            cout = w.shape[1]
            ow = _SPATIAL[li]
            ops += [jnp.asarray(_m_avg(ow, cout)),
                    jnp.tile(params[f"gamma{li}"], ow).reshape(1, ow * cout).astype(jnp.float32),
                    jnp.tile(params[f"beta{li}"], ow).reshape(1, ow * cout).astype(jnp.float32)]
    return tuple(jax.device_put(o) for o in ops)


# --------------------------------------------------------------------------
# The single fused Pallas kernel (no grid: one invocation, all VMEM-resident)
# --------------------------------------------------------------------------
def _dcgan_kernel(x_ref,
                  g1_ref, b1_ref, m1_ref, ga1_ref, be1_ref,
                  g2_ref, b2_ref, m2_ref, ga2_ref, be2_ref,
                  g3_ref, b3_ref, m3_ref, ga3_ref, be3_ref,
                  g4_ref, b4_ref, m4_ref, ga4_ref, be4_ref,
                  g5_ref, b5_ref,
                  out_ref):
    def conv_t(x, g_ref, bcat_ref):
        # Reassociated ConvTranspose2d: one wide lane-mixing matmul on the SMALL (N*H-row)
        # operand, then four cheap 0/1 row-placement matmuls, accumulated in f32.
        t_all = jnp.dot(x.astype(jnp.bfloat16), bcat_ref[...],
                        preferred_element_type=jnp.float32).astype(jnp.bfloat16)
        acc = None
        for t in range(4):
            sl = t_all[:, t * _OWC:(t + 1) * _OWC]          # 128-lane aligned slice
            term = jnp.dot(g_ref[t], sl, preferred_element_type=jnp.float32)
            acc = term if acc is None else acc + term
        return acc

    def bn_relu(y, m_ref, ga_ref, be_ref):
        # Training-mode BatchNorm (biased batch stats) + ReLU.
        # Single fused fold matmul: rows = [E_rows[y], E_rows[y^2]]; var = E[y^2] - mean^2.
        inv_rows = 1.0 / y.shape[0]
        s1 = jnp.sum(y, axis=0, keepdims=True) * inv_rows
        s2 = jnp.sum(y * y, axis=0, keepdims=True) * inv_rows
        folded = jnp.dot(jnp.concatenate([s1, s2], axis=0), m_ref[...],
                         preferred_element_type=jnp.float32)
        mean = folded[0:1, :]
        var = jnp.maximum(folded[1:2, :] - mean * mean, 0.0)
        scale = ga_ref[...] * jax.lax.rsqrt(var + _EPS)
        return jnp.maximum((y - mean) * scale + be_ref[...], 0.0)

    h = bn_relu(conv_t(x_ref[...], g1_ref, b1_ref), m1_ref, ga1_ref, be1_ref)
    h = bn_relu(conv_t(h, g2_ref, b2_ref), m2_ref, ga2_ref, be2_ref)
    h = bn_relu(conv_t(h, g3_ref, b3_ref), m3_ref, ga3_ref, be3_ref)
    h = bn_relu(conv_t(h, g4_ref, b4_ref), m4_ref, ga4_ref, be4_ref)
    out_ref[...] = jnp.tanh(conv_t(h, g5_ref, b5_ref))      # fused tanh epilogue (f32, EUP)


# --------------------------------------------------------------------------
# Wrapper (jit this; `prepared_ops` comes from prepare_generator_operands)
# --------------------------------------------------------------------------
def generator_forward(x_nchw, prepared_ops):
    n, latent = x_nchw.shape[0], x_nchw.shape[1]
    x2d = x_nchw.reshape(n, latent)                          # rows=(n, h=0), lanes=(w=0, ci)
    y = pl.pallas_call(
        _dcgan_kernel,
        out_shape=jax.ShapeDtypeStruct((n * 64, _OWC), jnp.float32),
    )(x2d, *prepared_ops)
    # kernel output rows = (n, oh), lanes = ow (zero-padded 64 -> 128, Cout = 1) -> NCHW
    return y[:, :64].reshape(n, 1, 64, 64)


# --------------------------------------------------------------------------
# Pure-JAX reference (sanity check of the Pallas path)
# --------------------------------------------------------------------------
def _ref_conv_transpose(x_nchw, w_t, s, p):
    k = w_t.shape[-1]
    w = jnp.transpose(w_t[:, :, ::-1, ::-1], (1, 0, 2, 3))  # (Cout, Cin, kh, kw)
    return jax.lax.conv_general_dilated(
        x_nchw, w, window_strides=(1, 1),
        padding=[(k - 1 - p, k - 1 - p)] * 2,
        lhs_dilation=(s, s),
        dimension_numbers=("NCHW", "OIHW", "NCHW"),
        precision=jax.lax.Precision.HIGHEST)


def _ref_bn_relu(y, gamma, beta, eps=_EPS):
    mean = jnp.mean(y, axis=(0, 2, 3), keepdims=True)
    var = jnp.mean(jnp.square(y - mean), axis=(0, 2, 3), keepdims=True)
    yn = (y - mean) / jnp.sqrt(var + eps)
    yn = yn * gamma[None, :, None, None] + beta[None, :, None, None]
    return jnp.maximum(yn, 0.0)


def reference_forward(x_nchw, params):
    x = x_nchw
    for li in range(4):
        _, s, p = _LAYER_CFG[li]
        x = _ref_conv_transpose(x, params[f"w{li + 1}"], s, p)
        x = _ref_bn_relu(x, params[f"gamma{li + 1}"], params[f"beta{li + 1}"])
    _, s, p = _LAYER_CFG[4]
    x = _ref_conv_transpose(x, params["w5"], s, p)
    return jnp.tanh(x)


# --------------------------------------------------------------------------
# Main
# --------------------------------------------------------------------------
if __name__ == "__main__":
    latent_dim = 8
    gic = 32            # gen_init_channels
    growth = 2
    c_out = 1           # num_output_channels
    batch = 2

    chans = [latent_dim, gic, gic // growth, gic // growth**2, gic // growth**3, c_out]

    key = jax.random.PRNGKey(0)
    params = {}
    for li in range(5):
        key, kw = jax.random.split(key)
        cin, cout = chans[li], chans[li + 1]
        # PyTorch ConvTranspose2d weight layout: (in_channels, out_channels, kH, kW)
        params[f"w{li + 1}"] = (0.02 * jax.random.normal(kw, (cin, cout, 4, 4))).astype(jnp.float32)
        if li < 4:
            key, kg, kb = jax.random.split(key, 3)
            params[f"gamma{li + 1}"] = (1.0 + 0.02 * jax.random.normal(kg, (cout,))).astype(jnp.float32)
            params[f"beta{li + 1}"] = (0.02 * jax.random.normal(kb, (cout,))).astype(jnp.float32)

    key, kx = jax.random.split(key)
    x = jax.random.normal(kx, (batch, latent_dim, 1, 1), dtype=jnp.float32)

    # One-time operand prep (hoisted out of the per-call path), then the jitted forward.
    prepared = prepare_generator_operands(params, batch)
    fwd = jax.jit(generator_forward)
    out = jax.block_until_ready(fwd(x, prepared))
    assert out.shape == (batch, c_out, 64, 64), out.shape

    ref = jax.block_until_ready(reference_forward(x, params))
    err = float(jnp.max(jnp.abs(out - ref)))
    assert err < 2e-2, f"Pallas/reference mismatch: max abs err = {err}"

    print("KERNEL_OK")
</pallas_src>

<mosaic_0001>
module attributes {stable_mosaic.version = 11 : i64} {
  func.func @_dcgan_kernel(%arg0: memref<2x8xf32, #tpu.memory_space<vmem>>, %arg1: memref<4x8x2xbf16, #tpu.memory_space<vmem>>, %arg2: memref<8x512xbf16, #tpu.memory_space<vmem>>, %arg3: memref<128x128xf32, #tpu.memory_space<vmem>>, %arg4: memref<1x128xf32, #tpu.memory_space<vmem>>, %arg5: memref<1x128xf32, #tpu.memory_space<vmem>>, %arg6: memref<4x16x8xbf16, #tpu.memory_space<vmem>>, %arg7: memref<128x512xbf16, #tpu.memory_space<vmem>>, %arg8: memref<128x128xf32, #tpu.memory_space<vmem>>, %arg9: memref<1x128xf32, #tpu.memory_space<vmem>>, %arg10: memref<1x128xf32, #tpu.memory_space<vmem>>, %arg11: memref<4x32x16xbf16, #tpu.memory_space<vmem>>, %arg12: memref<128x512xbf16, #tpu.memory_space<vmem>>, %arg13: memref<128x128xf32, #tpu.memory_space<vmem>>, %arg14: memref<1x128xf32, #tpu.memory_space<vmem>>, %arg15: memref<1x128xf32, #tpu.memory_space<vmem>>, %arg16: memref<4x64x32xbf16, #tpu.memory_space<vmem>>, %arg17: memref<128x512xbf16, #tpu.memory_space<vmem>>, %arg18: memref<128x128xf32, #tpu.memory_space<vmem>>, %arg19: memref<1x128xf32, #tpu.memory_space<vmem>>, %arg20: memref<1x128xf32, #tpu.memory_space<vmem>>, %arg21: memref<4x128x64xbf16, #tpu.memory_space<vmem>>, %arg22: memref<128x512xbf16, #tpu.memory_space<vmem>>, %arg23: memref<128x128xf32, #tpu.memory_space<vmem>>) attributes {dimension_semantics = [], scalar_prefetch = 0 : i64, scratch_operands = 0 : i64, tpu.core_type = #tpu.core_type<tc>} {
    %c0 = arith.constant 0 : index
    %c0_0 = arith.constant 0 : index
    %0 = vector.load %arg0[%c0, %c0_0] : memref<2x8xf32, #tpu.memory_space<vmem>>, vector<2x8xf32>
    %1 = arith.truncf %0 : vector<2x8xf32> to vector<2x8xbf16>
    %c0_1 = arith.constant 0 : index
    %c0_2 = arith.constant 0 : index
    %2 = vector.load %arg2[%c0_1, %c0_2] : memref<8x512xbf16, #tpu.memory_space<vmem>>, vector<8x512xbf16>
    %cst = arith.constant dense<0.000000e+00> : vector<2x512xf32>
    %3 = tpu.matmul %1, %2, %cst {dimension_numbers = #tpu.dot_dimension_numbers<[1], [0], [0], [1], [0, 0, 1, 1], [], []>} : vector<2x8xbf16>, vector<8x512xbf16>, vector<2x512xf32> -> vector<2x512xf32>
    %4 = arith.truncf %3 : vector<2x512xf32> to vector<2x512xbf16>
    %5 = vector.extract_strided_slice %4 {offsets = [0, 0], sizes = [2, 128], strides = [1, 1]} : vector<2x512xbf16> to vector<2x128xbf16>
    %c0_3 = arith.constant 0 : index
    %c0_4 = arith.constant 0 : index
    %c0_5 = arith.constant 0 : index
    %6 = vector.load %arg1[%c0_3, %c0_4, %c0_5] : memref<4x8x2xbf16, #tpu.memory_space<vmem>>, vector<1x8x2xbf16>
    %7 = vector.shape_cast %6 : vector<1x8x2xbf16> to vector<8x2xbf16>
    %cst_6 = arith.constant dense<0.000000e+00> : vector<8x128xf32>
    %8 = tpu.matmul %7, %5, %cst_6 {dimension_numbers = #tpu.dot_dimension_numbers<[1], [0], [0], [1], [0, 0, 1, 1], [], []>} : vector<8x2xbf16>, vector<2x128xbf16>, vector<8x128xf32> -> vector<8x128xf32>
    %9 = vector.extract_strided_slice %4 {offsets = [0, 128], sizes = [2, 128], strides = [1, 1]} : vector<2x512xbf16> to vector<2x128xbf16>
    %c1 = arith.constant 1 : index
    %c0_7 = arith.constant 0 : index
    %c0_8 = arith.constant 0 : index
    %10 = vector.load %arg1[%c1, %c0_7, %c0_8] : memref<4x8x2xbf16, #tpu.memory_space<vmem>>, vector<1x8x2xbf16>
    %11 = vector.shape_cast %10 : vector<1x8x2xbf16> to vector<8x2xbf16>
    %cst_9 = arith.constant dense<0.000000e+00> : vector<8x128xf32>
    %12 = tpu.matmul %11, %9, %cst_9 {dimension_numbers = #tpu.dot_dimension_numbers<[1], [0], [0], [1], [0, 0, 1, 1], [], []>} : vector<8x2xbf16>, vector<2x128xbf16>, vector<8x128xf32> -> vector<8x128xf32>
    %13 = arith.addf %8, %12 : vector<8x128xf32>
    %14 = vector.extract_strided_slice %4 {offsets = [0, 256], sizes = [2, 128], strides = [1, 1]} : vector<2x512xbf16> to vector<2x128xbf16>
    %c2 = arith.constant 2 : index
    %c0_10 = arith.constant 0 : index
    %c0_11 = arith.constant 0 : index
    %15 = vector.load %arg1[%c2, %c0_10, %c0_11] : memref<4x8x2xbf16, #tpu.memory_space<vmem>>, vector<1x8x2xbf16>
    %16 = vector.shape_cast %15 : vector<1x8x2xbf16> to vector<8x2xbf16>
    %cst_12 = arith.constant dense<0.000000e+00> : vector<8x128xf32>
    %17 = tpu.matmul %16, %14, %cst_12 {dimension_numbers = #tpu.dot_dimension_numbers<[1], [0], [0], [1], [0, 0, 1, 1], [], []>} : vector<8x2xbf16>, vector<2x128xbf16>, vector<8x128xf32> -> vector<8x128xf32>
    %18 = arith.addf %13, %17 : vector<8x128xf32>
    %19 = vector.extract_strided_slice %4 {offsets = [0, 384], sizes = [2, 128], strides = [1, 1]} : vector<2x512xbf16> to vector<2x128xbf16>
    %c3 = arith.constant 3 : index
    %c0_13 = arith.constant 0 : index
    %c0_14 = arith.constant 0 : index
    %20 = vector.load %arg1[%c3, %c0_13, %c0_14] : memref<4x8x2xbf16, #tpu.memory_space<vmem>>, vector<1x8x2xbf16>
    %21 = vector.shape_cast %20 : vector<1x8x2xbf16> to vector<8x2xbf16>
    %cst_15 = arith.constant dense<0.000000e+00> : vector<8x128xf32>
    %22 = tpu.matmul %21, %19, %cst_15 {dimension_numbers = #tpu.dot_dimension_numbers<[1], [0], [0], [1], [0, 0, 1, 1], [], []>} : vector<8x2xbf16>, vector<2x128xbf16>, vector<8x128xf32> -> vector<8x128xf32>
    %23 = arith.addf %18, %22 : vector<8x128xf32>
    %cst_16 = arith.constant dense<0.000000e+00> : vector<128xf32>
    %24 = vector.multi_reduction <add>, %23, %cst_16 [0] : vector<8x128xf32> to vector<128xf32>
    %25 = vector.shape_cast %24 : vector<128xf32> to vector<1x128xf32>
    %cst_17 = arith.constant 1.250000e-01 : f32
    %26 = vector.broadcast %cst_17 : f32 to vector<1x128xf32>
    %27 = arith.mulf %25, %26 : vector<1x128xf32>
    %28 = arith.mulf %23, %23 : vector<8x128xf32>
    %cst_18 = arith.constant dense<0.000000e+00> : vector<128xf32>
    %29 = vector.multi_reduction <add>, %28, %cst_18 [0] : vector<8x128xf32> to vector<128xf32>
    %30 = vector.shape_cast %29 : vector<128xf32> to vector<1x128xf32>
    %cst_19 = arith.constant 1.250000e-01 : f32
    %31 = vector.broadcast %cst_19 : f32 to vector<1x128xf32>
    %32 = arith.mulf %30, %31 : vector<1x128xf32>
    %33 = tpu.concatenate %27, %32 in 0 : vector<1x128xf32>, vector<1x128xf32> -> vector<2x128xf32>
    %c0_20 = arith.constant 0 : index
    %c0_21 = arith.constant 0 : index
    %34 = vector.load %arg3[%c0_20, %c0_21] : memref<128x128xf32, #tpu.memory_space<vmem>>, vector<128x128xf32>
    %cst_22 = arith.constant dense<0.000000e+00> : vector<2x128xf32>
    %35 = tpu.matmul %33, %34, %cst_22 {dimension_numbers = #tpu.dot_dimension_numbers<[1], [0], [0], [1], [0, 0, 1, 1], [], []>} : vector<2x128xf32>, vector<128x128xf32>, vector<2x128xf32> -> vector<2x128xf32>
    %36 = vector.extract_strided_slice %35 {offsets = [0, 0], sizes = [1, 128], strides = [1, 1]} : vector<2x128xf32> to vector<1x128xf32>
    %37 = vector.extract_strided_slice %35 {offsets = [1, 0], sizes = [1, 128], strides = [1, 1]} : vector<2x128xf32> to vector<1x128xf32>
    %38 = arith.mulf %36, %36 : vector<1x128xf32>
    %39 = arith.subf %37, %38 : vector<1x128xf32>
    %cst_23 = arith.constant 0.000000e+00 : f32
    %40 = vector.broadcast %cst_23 : f32 to vector<1x128xf32>
    %41 = arith.maximumf %39, %40 : vector<1x128xf32>
    %c0_24 = arith.constant 0 : index
    %c0_25 = arith.constant 0 : index
    %42 = vector.load %arg4[%c0_24, %c0_25] : memref<1x128xf32, #tpu.memory_space<vmem>>, vector<1x128xf32>
    %cst_26 = arith.constant 9.99999974E-6 : f32
    %43 = vector.broadcast %cst_26 : f32 to vector<1x128xf32>
    %44 = arith.addf %41, %43 : vector<1x128xf32>
    %45 = math.rsqrt %44 : vector<1x128xf32>
    %46 = arith.mulf %42, %45 : vector<1x128xf32>
    %47 = vector.broadcast %36 : vector<1x128xf32> to vector<8x128xf32>
    %48 = arith.subf %23, %47 : vector<8x128xf32>
    %49 = vector.broadcast %46 : vector<1x128xf32> to vector<8x128xf32>
    %50 = arith.mulf %48, %49 : vector<8x128xf32>
    %c0_27 = arith.constant 0 : index
    %c0_28 = arith.constant 0 : index
    %51 = vector.load %arg5[%c0_27, %c0_28] : memref<1x128xf32, #tpu.memory_space<vmem>>, vector<1x128xf32>
    %52 = vector.broadcast %51 : vector<1x128xf32> to vector<8x128xf32>
    %53 = arith.addf %50, %52 : vector<8x128xf32>
    %cst_29 = arith.constant 0.000000e+00 : f32
    %54 = vector.broadcast %cst_29 : f32 to vector<8x128xf32>
    %55 = arith.maximumf %53, %54 : vector<8x128xf32>
    %56 = arith.truncf %55 : vector<8x128xf32> to vector<8x128xbf16>
    %c0_30 = arith.constant 0 : index
    %c0_31 = arith.constant 0 : index
    %57 = vector.load %arg7[%c0_30, %c0_31] : memref<128x512xbf16, #tpu.memory_space<vmem>>, vector<128x512xbf16>
    %cst_32 = arith.constant dense<0.000000e+00> : vector<8x512xf32>
    %58 = tpu.matmul %56, %57, %cst_32 {dimension_numbers = #tpu.dot_dimension_numbers<[1], [0], [0], [1], [0, 0, 1, 1], [], []>} : vector<8x128xbf16>, vector<128x512xbf16>, vector<8x512xf32> -> vector<8x512xf32>
    %59 = arith.truncf %58 : vector<8x512xf32> to vector<8x512xbf16>
    %60 = vector.extract_strided_slice %59 {offsets = [0, 0], sizes = [8, 128], strides = [1, 1]} : vector<8x512xbf16> to vector<8x128xbf16>
    %c0_33 = arith.constant 0 : index
    %c0_34 = arith.constant 0 : index
    %c0_35 = arith.constant 0 : index
    %61 = vector.load %arg6[%c0_33, %c0_34, %c0_35] : memref<4x16x8xbf16, #tpu.memory_space<vmem>>, vector<1x16x8xbf16>
    %62 = vector.shape_cast %61 : vector<1x16x8xbf16> to vector<16x8xbf16>
    %cst_36 = arith.constant dense<0.000000e+00> : vector<16x128xf32>
    %63 = tpu.matmul %62, %60, %cst_36 {dimension_numbers = #tpu.dot_dimension_numbers<[1], [0], [0], [1], [0, 0, 1, 1], [], []>} : vector<16x8xbf16>, vector<8x128xbf16>, vector<16x128xf32> -> vector<16x128xf32>
    %64 = vector.extract_strided_slice %59 {offsets = [0, 128], sizes = [8, 128], strides = [1, 1]} : vector<8x512xbf16> to vector<8x128xbf16>
    %c1_37 = arith.constant 1 : index
    %c0_38 = arith.constant 0 : index
    %c0_39 = arith.constant 0 : index
    %65 = vector.load %arg6[%c1_37, %c0_38, %c0_39] : memref<4x16x8xbf16, #tpu.memory_space<vmem>>, vector<1x16x8xbf16>
    %66 = vector.shape_cast %65 : vector<1x16x8xbf16> to vector<16x8xbf16>
    %cst_40 = arith.constant dense<0.000000e+00> : vector<16x128xf32>
    %67 = tpu.matmul %66, %64, %cst_40 {dimension_numbers = #tpu.dot_dimension_numbers<[1], [0], [0], [1], [0, 0, 1, 1], [], []>} : vector<16x8xbf16>, vector<8x128xbf16>, vector<16x128xf32> -> vector<16x128xf32>
    %68 = arith.addf %63, %67 : vector<16x128xf32>
    %69 = vector.extract_strided_slice %59 {offsets = [0, 256], sizes = [8, 128], strides = [1, 1]} : vector<8x512xbf16> to vector<8x128xbf16>
    %c2_41 = arith.constant 2 : index
    %c0_42 = arith.constant 0 : index
    %c0_43 = arith.constant 0 : index
    %70 = vector.load %arg6[%c2_41, %c0_42, %c0_43] : memref<4x16x8xbf16, #tpu.memory_space<vmem>>, vector<1x16x8xbf16>
    %71 = vector.shape_cast %70 : vector<1x16x8xbf16> to vector<16x8xbf16>
    %cst_44 = arith.constant dense<0.000000e+00> : vector<16x128xf32>
    %72 = tpu.matmul %71, %69, %cst_44 {dimension_numbers = #tpu.dot_dimension_numbers<[1], [0], [0], [1], [0, 0, 1, 1], [], []>} : vector<16x8xbf16>, vector<8x128xbf16>, vector<16x128xf32> -> vector<16x128xf32>
    %73 = arith.addf %68, %72 : vector<16x128xf32>
    %74 = vector.extract_strided_slice %59 {offsets = [0, 384], sizes = [8, 128], strides = [1, 1]} : vector<8x512xbf16> to vector<8x128xbf16>
    %c3_45 = arith.constant 3 : index
    %c0_46 = arith.constant 0 : index
    %c0_47 = arith.constant 0 : index
    %75 = vector.load %arg6[%c3_45, %c0_46, %c0_47] : memref<4x16x8xbf16, #tpu.memory_space<vmem>>, vector<1x16x8xbf16>
    %76 = vector.shape_cast %75 : vector<1x16x8xbf16> to vector<16x8xbf16>
    %cst_48 = arith.constant dense<0.000000e+00> : vector<16x128xf32>
    %77 = tpu.matmul %76, %74, %cst_48 {dimension_numbers = #tpu.dot_dimension_numbers<[1], [0], [0], [1], [0, 0, 1, 1], [], []>} : vector<16x8xbf16>, vector<8x128xbf16>, vector<16x128xf32> -> vector<16x128xf32>
    %78 = arith.addf %73, %77 : vector<16x128xf32>
    %cst_49 = arith.constant dense<0.000000e+00> : vector<128xf32>
    %79 = vector.multi_reduction <add>, %78, %cst_49 [0] : vector<16x128xf32> to vector<128xf32>
    %80 = vector.shape_cast %79 : vector<128xf32> to vector<1x128xf32>
    %cst_50 = arith.constant 6.250000e-02 : f32
    %81 = vector.broadcast %cst_50 : f32 to vector<1x128xf32>
    %82 = arith.mulf %80, %81 : vector<1x128xf32>
    %83 = arith.mulf %78, %78 : vector<16x128xf32>
    %cst_51 = arith.constant dense<0.000000e+00> : vector<128xf32>
    %84 = vector.multi_reduction <add>, %83, %cst_51 [0] : vector<16x128xf32> to vector<128xf32>
    %85 = vector.shape_cast %84 : vector<128xf32> to vector<1x128xf32>
    %cst_52 = arith.constant 6.250000e-02 : f32
    %86 = vector.broadcast %cst_52 : f32 to vector<1x128xf32>
    %87 = arith.mulf %85, %86 : vector<1x128xf32>
    %88 = tpu.concatenate %82, %87 in 0 : vector<1x128xf32>, vector<1x128xf32> -> vector<2x128xf32>
    %c0_53 = arith.constant 0 : index
    %c0_54 = arith.constant 0 : index
    %89 = vector.load %arg8[%c0_53, %c0_54] : memref<128x128xf32, #tpu.memory_space<vmem>>, vector<128x128xf32>
    %cst_55 = arith.constant dense<0.000000e+00> : vector<2x128xf32>
    %90 = tpu.matmul %88, %89, %cst_55 {dimension_numbers = #tpu.dot_dimension_numbers<[1], [0], [0], [1], [0, 0, 1, 1], [], []>} : vector<2x128xf32>, vector<128x128xf32>, vector<2x128xf32> -> vector<2x128xf32>
    %91 = vector.extract_strided_slice %90 {offsets = [0, 0], sizes = [1, 128], strides = [1, 1]} : vector<2x128xf32> to vector<1x128xf32>
    %92 = vector.extract_strided_slice %90 {offsets = [1, 0], sizes = [1, 128], strides = [1, 1]} : vector<2x128xf32> to vector<1x128xf32>
    %93 = arith.mulf %91, %91 : vector<1x128xf32>
    %94 = arith.subf %92, %93 : vector<1x128xf32>
    %cst_56 = arith.constant 0.000000e+00 : f32
    %95 = vector.broadcast %cst_56 : f32 to vector<1x128xf32>
    %96 = arith.maximumf %94, %95 : vector<1x128xf32>
    %c0_57 = arith.constant 0 : index
    %c0_58 = arith.constant 0 : index
    %97 = vector.load %arg9[%c0_57, %c0_58] : memref<1x128xf32, #tpu.memory_space<vmem>>, vector<1x128xf32>
    %cst_59 = arith.constant 9.99999974E-6 : f32
    %98 = vector.broadcast %cst_59 : f32 to vector<1x128xf32>
    %99 = arith.addf %96, %98 : vector<1x128xf32>
    %100 = math.rsqrt %99 : vector<1x128xf32>
    %101 = arith.mulf %97, %100 : vector<1x128xf32>
    %102 = vector.broadcast %91 : vector<1x128xf32> to vector<16x128xf32>
    %103 = arith.subf %78, %102 : vector<16x128xf32>
    %104 = vector.broadcast %101 : vector<1x128xf32> to vector<16x128xf32>
    %105 = arith.mulf %103, %104 : vector<16x128xf32>
    %c0_60 = arith.constant 0 : index
    %c0_61 = arith.constant 0 : index
    %106 = vector.load %arg10[%c0_60, %c0_61] : memref<1x128xf32, #tpu.memory_space<vmem>>, vector<1x128xf32>
    %107 = vector.broadcast %106 : vector<1x128xf32> to vector<16x128xf32>
    %108 = arith.addf %105, %107 : vector<16x128xf32>
    %cst_62 = arith.constant 0.000000e+00 : f32
    %109 = vector.broadcast %cst_62 : f32 to vector<16x128xf32>
    %110 = arith.maximumf %108, %109 : vector<16x128xf32>
    %111 = arith.truncf %110 : vector<16x128xf32> to vector<16x128xbf16>
    %c0_63 = arith.constant 0 : index
    %c0_64 = arith.constant 0 : index
    %112 = vector.load %arg12[%c0_63, %c0_64] : memref<128x512xbf16, #tpu.memory_space<vmem>>, vector<128x512xbf16>
    %cst_65 = arith.constant dense<0.000000e+00> : vector<16x512xf32>
    %113 = tpu.matmul %111, %112, %cst_65 {dimension_numbers = #tpu.dot_dimension_numbers<[1], [0], [0], [1], [0, 0, 1, 1], [], []>} : vector<16x128xbf16>, vector<128x512xbf16>, vector<16x512xf32> -> vector<16x512xf32>
    %114 = arith.truncf %113 : vector<16x512xf32> to vector<16x512xbf16>
    %115 = vector.extract_strided_slice %114 {offsets = [0, 0], sizes = [16, 128], strides = [1, 1]} : vector<16x512xbf16> to vector<16x128xbf16>
    %c0_66 = arith.constant 0 : index
    %c0_67 = arith.constant 0 : index
    %c0_68 = arith.constant 0 : index
    %116 = vector.load %arg11[%c0_66, %c0_67, %c0_68] : memref<4x32x16xbf16, #tpu.memory_space<vmem>>, vector<1x32x16xbf16>
    %117 = vector.shape_cast %116 : vector<1x32x16xbf16> to vector<32x16xbf16>
    %cst_69 = arith.constant dense<0.000000e+00> : vector<32x128xf32>
    %118 = tpu.matmul %117, %115, %cst_69 {dimension_numbers = #tpu.dot_dimension_numbers<[1], [0], [0], [1], [0, 0, 1, 1], [], []>} : vector<32x16xbf16>, vector<16x128xbf16>, vector<32x128xf32> -> vector<32x128xf32>
    %119 = vector.extract_strided_slice %114 {offsets = [0, 128], sizes = [16, 128], strides = [1, 1]} : vector<16x512xbf16> to vector<16x128xbf16>
    %c1_70 = arith.constant 1 : index
    %c0_71 = arith.constant 0 : index
    %c0_72 = arith.constant 0 : index
    %120 = vector.load %arg11[%c1_70, %c0_71, %c0_72] : memref<4x32x16xbf16, #tpu.memory_space<vmem>>, vector<1x32x16xbf16>
    %121 = vector.shape_cast %120 : vector<1x32x16xbf16> to vector<32x16xbf16>
    %cst_73 = arith.constant dense<0.000000e+00> : vector<32x128xf32>
    %122 = tpu.matmul %121, %119, %cst_73 {dimension_numbers = #tpu.dot_dimension_numbers<[1], [0], [0], [1], [0, 0, 1, 1], [], []>} : vector<32x16xbf16>, vector<16x128xbf16>, vector<32x128xf32> -> vector<32x128xf32>
    %123 = arith.addf %118, %122 : vector<32x128xf32>
    %124 = vector.extract_strided_slice %114 {offsets = [0, 256], sizes = [16, 128], strides = [1, 1]} : vector<16x512xbf16> to vector<16x128xbf16>
    %c2_74 = arith.constant 2 : index
    %c0_75 = arith.constant 0 : index
    %c0_76 = arith.constant 0 : index
    %125 = vector.load %arg11[%c2_74, %c0_75, %c0_76] : memref<4x32x16xbf16, #tpu.memory_space<vmem>>, vector<1x32x16xbf16>
    %126 = vector.shape_cast %125 : vector<1x32x16xbf16> to vector<32x16xbf16>
    %cst_77 = arith.constant dense<0.000000e+00> : vector<32x128xf32>
    %127 = tpu.matmul %126, %124, %cst_77 {dimension_numbers = #tpu.dot_dimension_numbers<[1], [0], [0], [1], [0, 0, 1, 1], [], []>} : vector<32x16xbf16>, vector<16x128xbf16>, vector<32x128xf32> -> vector<32x128xf32>
    %128 = arith.addf %123, %127 : vector<32x128xf32>
    %129 = vector.extract_strided_slice %114 {offsets = [0, 384], sizes = [16, 128], strides = [1, 1]} : vector<16x512xbf16> to vector<16x128xbf16>
    %c3_78 = arith.constant 3 : index
    %c0_79 = arith.constant 0 : index
    %c0_80 = arith.constant 0 : index
    %130 = vector.load %arg11[%c3_78, %c0_79, %c0_80] : memref<4x32x16xbf16, #tpu.memory_space<vmem>>, vector<1x32x16xbf16>
    %131 = vector.shape_cast %130 : vector<1x32x16xbf16> to vector<32x16xbf16>
    %cst_81 = arith.constant dense<0.000000e+00> : vector<32x128xf32>
    %132 = tpu.matmul %131, %129, %cst_81 {dimension_numbers = #tpu.dot_dimension_numbers<[1], [0], [0], [1], [0, 0, 1, 1], [], []>} : vector<32x16xbf16>, vector<16x128xbf16>, vector<32x128xf32> -> vector<32x128xf32>
    %133 = arith.addf %128, %132 : vector<32x128xf32>
    %cst_82 = arith.constant dense<0.000000e+00> : vector<128xf32>
    %134 = vector.multi_reduction <add>, %133, %cst_82 [0] : vector<32x128xf32> to vector<128xf32>
    %135 = vector.shape_cast %134 : vector<128xf32> to vector<1x128xf32>
    %cst_83 = arith.constant 3.125000e-02 : f32
    %136 = vector.broadcast %cst_83 : f32 to vector<1x128xf32>
    %137 = arith.mulf %135, %136 : vector<1x128xf32>
    %138 = arith.mulf %133, %133 : vector<32x128xf32>
    %cst_84 = arith.constant dense<0.000000e+00> : vector<128xf32>
    %139 = vector.multi_reduction <add>, %138, %cst_84 [0] : vector<32x128xf32> to vector<128xf32>
    %140 = vector.shape_cast %139 : vector<128xf32> to vector<1x128xf32>
    %cst_85 = arith.constant 3.125000e-02 : f32
    %141 = vector.broadcast %cst_85 : f32 to vector<1x128xf32>
    %142 = arith.mulf %140, %141 : vector<1x128xf32>
    %143 = tpu.concatenate %137, %142 in 0 : vector<1x128xf32>, vector<1x128xf32> -> vector<2x128xf32>
    %c0_86 = arith.constant 0 : index
    %c0_87 = arith.constant 0 : index
    %144 = vector.load %arg13[%c0_86, %c0_87] : memref<128x128xf32, #tpu.memory_space<vmem>>, vector<128x128xf32>
    %cst_88 = arith.constant dense<0.000000e+00> : vector<2x128xf32>
    %145 = tpu.matmul %143, %144, %cst_88 {dimension_numbers = #tpu.dot_dimension_numbers<[1], [0], [0], [1], [0, 0, 1, 1], [], []>} : vector<2x128xf32>, vector<128x128xf32>, vector<2x128xf32> -> vector<2x128xf32>
    %146 = vector.extract_strided_slice %145 {offsets = [0, 0], sizes = [1, 128], strides = [1, 1]} : vector<2x128xf32> to vector<1x128xf32>
    %147 = vector.extract_strided_slice %145 {offsets = [1, 0], sizes = [1, 128], strides = [1, 1]} : vector<2x128xf32> to vector<1x128xf32>
    %148 = arith.mulf %146, %146 : vector<1x128xf32>
    %149 = arith.subf %147, %148 : vector<1x128xf32>
    %cst_89 = arith.constant 0.000000e+00 : f32
    %150 = vector.broadcast %cst_89 : f32 to vector<1x128xf32>
    %151 = arith.maximumf %149, %150 : vector<1x128xf32>
    %c0_90 = arith.constant 0 : index
    %c0_91 = arith.constant 0 : index
    %152 = vector.load %arg14[%c0_90, %c0_91] : memref<1x128xf32, #tpu.memory_space<vmem>>, vector<1x128xf32>
    %cst_92 = arith.constant 9.99999974E-6 : f32
    %153 = vector.broadcast %cst_92 : f32 to vector<1x128xf32>
    %154 = arith.addf %151, %153 : vector<1x128xf32>
    %155 = math.rsqrt %154 : vector<1x128xf32>
    %156 = arith.mulf %152, %155 : vector<1x128xf32>
    %157 = vector.broadcast %146 : vector<1x128xf32> to vector<32x128xf32>
    %158 = arith.subf %133, %157 : vector<32x128xf32>
    %159 = vector.broadcast %156 : vector<1x128xf32> to vector<32x128xf32>
    %160 = arith.mulf %158, %159 : vector<32x128xf32>
    %c0_93 = arith.constant 0 : index
    %c0_94 = arith.constant 0 : index
    %161 = vector.load %arg15[%c0_93, %c0_94] : memref<1x128xf32, #tpu.memory_space<vmem>>, vector<1x128xf32>
    %162 = vector.broadcast %161 : vector<1x128xf32> to vector<32x128xf32>
    %163 = arith.addf %160, %162 : vector<32x128xf32>
    %cst_95 = arith.constant 0.000000e+00 : f32
    %164 = vector.broadcast %cst_95 : f32 to vector<32x128xf32>
    %165 = arith.maximumf %163, %164 : vector<32x128xf32>
    %166 = arith.truncf %165 : vector<32x128xf32> to vector<32x128xbf16>
    %c0_96 = arith.constant 0 : index
    %c0_97 = arith.constant 0 : index
    %167 = vector.load %arg17[%c0_96, %c0_97] : memref<128x512xbf16, #tpu.memory_space<vmem>>, vector<128x512xbf16>
    %cst_98 = arith.constant dense<0.000000e+00> : vector<32x512xf32>
    %168 = tpu.matmul %166, %167, %cst_98 {dimension_numbers = #tpu.dot_dimension_numbers<[1], [0], [0], [1], [0, 0, 1, 1], [], []>} : vector<32x128xbf16>, vector<128x512xbf16>, vector<32x512xf32> -> vector<32x512xf32>
    %169 = arith.truncf %168 : vector<32x512xf32> to vector<32x512xbf16>
    %170 = vector.extract_strided_slice %169 {offsets = [0, 0], sizes = [32, 128], strides = [1, 1]} : vector<32x512xbf16> to vector<32x128xbf16>
    %c0_99 = arith.constant 0 : index
    %c0_100 = arith.constant 0 : index
    %c0_101 = arith.constant 0 : index
    %171 = vector.load %arg16[%c0_99, %c0_100, %c0_101] : memref<4x64x32xbf16, #tpu.memory_space<vmem>>, vector<1x64x32xbf16>
    %172 = vector.shape_cast %171 : vector<1x64x32xbf16> to vector<64x32xbf16>
    %cst_102 = arith.constant dense<0.000000e+00> : vector<64x128xf32>
    %173 = tpu.matmul %172, %170, %cst_102 {dimension_numbers = #tpu.dot_dimension_numbers<[1], [0], [0], [1], [0, 0, 1, 1], [], []>} : vector<64x32xbf16>, vector<32x128xbf16>, vector<64x128xf32> -> vector<64x128xf32>
    %174 = vector.extract_strided_slice %169 {offsets = [0, 128], sizes = [32, 128], strides = [1, 1]} : vector<32x512xbf16> to vector<32x128xbf16>
    %c1_103 = arith.constant 1 : index
    %c0_104 = arith.constant 0 : index
    %c0_105 = arith.constant 0 : index
    %175 = vector.load %arg16[%c1_103, %c0_104, %c0_105] : memref<4x64x32xbf16, #tpu.memory_space<vmem>>, vector<1x64x32xbf16>
    %176 = vector.shape_cast %175 : vector<1x64x32xbf16> to vector<64x32xbf16>
    %cst_106 = arith.constant dense<0.000000e+00> : vector<64x128xf32>
    %177 = tpu.matmul %176, %174, %cst_106 {dimension_numbers = #tpu.dot_dimension_numbers<[1], [0], [0], [1], [0, 0, 1, 1], [], []>} : vector<64x32xbf16>, vector<32x128xbf16>, vector<64x128xf32> -> vector<64x128xf32>
    %178 = arith.addf %173, %177 : vector<64x128xf32>
    %179 = vector.extract_strided_slice %169 {offsets = [0, 256], sizes = [32, 128], strides = [1, 1]} : vector<32x512xbf16> to vector<32x128xbf16>
    %c2_107 = arith.constant 2 : index
    %c0_108 = arith.constant 0 : index
    %c0_109 = arith.constant 0 : index
    %180 = vector.load %arg16[%c2_107, %c0_108, %c0_109] : memref<4x64x32xbf16, #tpu.memory_space<vmem>>, vector<1x64x32xbf16>
    %181 = vector.shape_cast %180 : vector<1x64x32xbf16> to vector<64x32xbf16>
    %cst_110 = arith.constant dense<0.000000e+00> : vector<64x128xf32>
    %182 = tpu.matmul %181, %179, %cst_110 {dimension_numbers = #tpu.dot_dimension_numbers<[1], [0], [0], [1], [0, 0, 1, 1], [], []>} : vector<64x32xbf16>, vector<32x128xbf16>, vector<64x128xf32> -> vector<64x128xf32>
    %183 = arith.addf %178, %182 : vector<64x128xf32>
    %184 = vector.extract_strided_slice %169 {offsets = [0, 384], sizes = [32, 128], strides = [1, 1]} : vector<32x512xbf16> to vector<32x128xbf16>
    %c3_111 = arith.constant 3 : index
    %c0_112 = arith.constant 0 : index
    %c0_113 = arith.constant 0 : index
    %185 = vector.load %arg16[%c3_111, %c0_112, %c0_113] : memref<4x64x32xbf16, #tpu.memory_space<vmem>>, vector<1x64x32xbf16>
    %186 = vector.shape_cast %185 : vector<1x64x32xbf16> to vector<64x32xbf16>
    %cst_114 = arith.constant dense<0.000000e+00> : vector<64x128xf32>
    %187 = tpu.matmul %186, %184, %cst_114 {dimension_numbers = #tpu.dot_dimension_numbers<[1], [0], [0], [1], [0, 0, 1, 1], [], []>} : vector<64x32xbf16>, vector<32x128xbf16>, vector<64x128xf32> -> vector<64x128xf32>
    %188 = arith.addf %183, %187 : vector<64x128xf32>
    %cst_115 = arith.constant dense<0.000000e+00> : vector<128xf32>
    %189 = vector.multi_reduction <add>, %188, %cst_115 [0] : vector<64x128xf32> to vector<128xf32>
    %190 = vector.shape_cast %189 : vector<128xf32> to vector<1x128xf32>
    %cst_116 = arith.constant 1.562500e-02 : f32
    %191 = vector.broadcast %cst_116 : f32 to vector<1x128xf32>
    %192 = arith.mulf %190, %191 : vector<1x128xf32>
    %193 = arith.mulf %188, %188 : vector<64x128xf32>
    %cst_117 = arith.constant dense<0.000000e+00> : vector<128xf32>
    %194 = vector.multi_reduction <add>, %193, %cst_117 [0] : vector<64x128xf32> to vector<128xf32>
    %195 = vector.shape_cast %194 : vector<128xf32> to vector<1x128xf32>
    %cst_118 = arith.constant 1.562500e-02 : f32
    %196 = vector.broadcast %cst_118 : f32 to vector<1x128xf32>
    %197 = arith.mulf %195, %196 : vector<1x128xf32>
    %198 = tpu.concatenate %192, %197 in 0 : vector<1x128xf32>, vector<1x128xf32> -> vector<2x128xf32>
    %c0_119 = arith.constant 0 : index
    %c0_120 = arith.constant 0 : index
    %199 = vector.load %arg18[%c0_119, %c0_120] : memref<128x128xf32, #tpu.memory_space<vmem>>, vector<128x128xf32>
    %cst_121 = arith.constant dense<0.000000e+00> : vector<2x128xf32>
    %200 = tpu.matmul %198, %199, %cst_121 {dimension_numbers = #tpu.dot_dimension_numbers<[1], [0], [0], [1], [0, 0, 1, 1], [], []>} : vector<2x128xf32>, vector<128x128xf32>, vector<2x128xf32> -> vector<2x128xf32>
    %201 = vector.extract_strided_slice %200 {offsets = [0, 0], sizes = [1, 128], strides = [1, 1]} : vector<2x128xf32> to vector<1x128xf32>
    %202 = vector.extract_strided_slice %200 {offsets = [1, 0], sizes = [1, 128], strides = [1, 1]} : vector<2x128xf32> to vector<1x128xf32>
    %203 = arith.mulf %201, %201 : vector<1x128xf32>
    %204 = arith.subf %202, %203 : vector<1x128xf32>
    %cst_122 = arith.constant 0.000000e+00 : f32
    %205 = vector.broadcast %cst_122 : f32 to vector<1x128xf32>
    %206 = arith.maximumf %204, %205 : vector<1x128xf32>
    %c0_123 = arith.constant 0 : index
    %c0_124 = arith.constant 0 : index
    %207 = vector.load %arg19[%c0_123, %c0_124] : memref<1x128xf32, #tpu.memory_space<vmem>>, vector<1x128xf32>
    %cst_125 = arith.constant 9.99999974E-6 : f32
    %208 = vector.broadcast %cst_125 : f32 to vector<1x128xf32>
    %209 = arith.addf %206, %208 : vector<1x128xf32>
    %210 = math.rsqrt %209 : vector<1x128xf32>
    %211 = arith.mulf %207, %210 : vector<1x128xf32>
    %212 = vector.broadcast %201 : vector<1x128xf32> to vector<64x128xf32>
    %213 = arith.subf %188, %212 : vector<64x128xf32>
    %214 = vector.broadcast %211 : vector<1x128xf32> to vector<64x128xf32>
    %215 = arith.mulf %213, %214 : vector<64x128xf32>
    %c0_126 = arith.constant 0 : index
    %c0_127 = arith.constant 0 : index
    %216 = vector.load %arg20[%c0_126, %c0_127] : memref<1x128xf32, #tpu.memory_space<vmem>>, vector<1x128xf32>
    %217 = vector.broadcast %216 : vector<1x128xf32> to vector<64x128xf32>
    %218 = arith.addf %215, %217 : vector<64x128xf32>
    %cst_128 = arith.constant 0.000000e+00 : f32
    %219 = vector.broadcast %cst_128 : f32 to vector<64x128xf32>
    %220 = arith.maximumf %218, %219 : vector<64x128xf32>
    %221 = arith.truncf %220 : vector<64x128xf32> to vector<64x128xbf16>
    %c0_129 = arith.constant 0 : index
    %c0_130 = arith.constant 0 : index
    %222 = vector.load %arg22[%c0_129, %c0_130] : memref<128x512xbf16, #tpu.memory_space<vmem>>, vector<128x512xbf16>
    %cst_131 = arith.constant dense<0.000000e+00> : vector<64x512xf32>
    %223 = tpu.matmul %221, %222, %cst_131 {dimension_numbers = #tpu.dot_dimension_numbers<[1], [0], [0], [1], [0, 0, 1, 1], [], []>} : vector<64x128xbf16>, vector<128x512xbf16>, vector<64x512xf32> -> vector<64x512xf32>
    %224 = arith.truncf %223 : vector<64x512xf32> to vector<64x512xbf16>
    %225 = vector.extract_strided_slice %224 {offsets = [0, 0], sizes = [64, 128], strides = [1, 1]} : vector<64x512xbf16> to vector<64x128xbf16>
    %c0_132 = arith.constant 0 : index
    %c0_133 = arith.constant 0 : index
    %c0_134 = arith.constant 0 : index
    %226 = vector.load %arg21[%c0_132, %c0_133, %c0_134] : memref<4x128x64xbf16, #tpu.memory_space<vmem>>, vector<1x128x64xbf16>
    %227 = vector.shape_cast %226 : vector<1x128x64xbf16> to vector<128x64xbf16>
    %cst_135 = arith.constant dense<0.000000e+00> : vector<128x128xf32>
    %228 = tpu.matmul %227, %225, %cst_135 {dimension_numbers = #tpu.dot_dimension_numbers<[1], [0], [0], [1], [0, 0, 1, 1], [], []>} : vector<128x64xbf16>, vector<64x128xbf16>, vector<128x128xf32> -> vector<128x128xf32>
    %229 = vector.extract_strided_slice %224 {offsets = [0, 128], sizes = [64, 128], strides = [1, 1]} : vector<64x512xbf16> to vector<64x128xbf16>
    %c1_136 = arith.constant 1 : index
    %c0_137 = arith.constant 0 : index
    %c0_138 = arith.constant 0 : index
    %230 = vector.load %arg21[%c1_136, %c0_137, %c0_138] : memref<4x128x64xbf16, #tpu.memory_space<vmem>>, vector<1x128x64xbf16>
    %231 = vector.shape_cast %230 : vector<1x128x64xbf16> to vector<128x64xbf16>
    %cst_139 = arith.constant dense<0.000000e+00> : vector<128x128xf32>
    %232 = tpu.matmul %231, %229, %cst_139 {dimension_numbers = #tpu.dot_dimension_numbers<[1], [0], [0], [1], [0, 0, 1, 1], [], []>} : vector<128x64xbf16>, vector<64x128xbf16>, vector<128x128xf32> -> vector<128x128xf32>
    %233 = arith.addf %228, %232 : vector<128x128xf32>
    %234 = vector.extract_strided_slice %224 {offsets = [0, 256], sizes = [64, 128], strides = [1, 1]} : vector<64x512xbf16> to vector<64x128xbf16>
    %c2_140 = arith.constant 2 : index
    %c0_141 = arith.constant 0 : index
    %c0_142 = arith.constant 0 : index
    %235 = vector.load %arg21[%c2_140, %c0_141, %c0_142] : memref<4x128x64xbf16, #tpu.memory_space<vmem>>, vector<1x128x64xbf16>
    %236 = vector.shape_cast %235 : vector<1x128x64xbf16> to vector<128x64xbf16>
    %cst_143 = arith.constant dense<0.000000e+00> : vector<128x128xf32>
    %237 = tpu.matmul %236, %234, %cst_143 {dimension_numbers = #tpu.dot_dimension_numbers<[1], [0], [0], [1], [0, 0, 1, 1], [], []>} : vector<128x64xbf16>, vector<64x128xbf16>, vector<128x128xf32> -> vector<128x128xf32>
    %238 = arith.addf %233, %237 : vector<128x128xf32>
    %239 = vector.extract_strided_slice %224 {offsets = [0, 384], sizes = [64, 128], strides = [1, 1]} : vector<64x512xbf16> to vector<64x128xbf16>
    %c3_144 = arith.constant 3 : index
    %c0_145 = arith.constant 0 : index
    %c0_146 = arith.constant 0 : index
    %240 = vector.load %arg21[%c3_144, %c0_145, %c0_146] : memref<4x128x64xbf16, #tpu.memory_space<vmem>>, vector<1x128x64xbf16>
    %241 = vector.shape_cast %240 : vector<1x128x64xbf16> to vector<128x64xbf16>
    %cst_147 = arith.constant dense<0.000000e+00> : vector<128x128xf32>
    %242 = tpu.matmul %241, %239, %cst_147 {dimension_numbers = #tpu.dot_dimension_numbers<[1], [0], [0], [1], [0, 0, 1, 1], [], []>} : vector<128x64xbf16>, vector<64x128xbf16>, vector<128x128xf32> -> vector<128x128xf32>
    %243 = arith.addf %238, %242 : vector<128x128xf32>
    %244 = math.tanh %243 : vector<128x128xf32>
    %c0_148 = arith.constant 0 : index
    %c0_149 = arith.constant 0 : index
    %245 = vector.load %arg23[%c0_148, %c0_149] : memref<128x128xf32, #tpu.memory_space<vmem>>, vector<128x128xf32>
    tpu.vector_store %arg23[%c0_148, %c0_149], %244 {strides = array<i32>} : memref<128x128xf32, #tpu.memory_space<vmem>>, vector<128x128xf32>,
    return
  }
}

</mosaic_0001>

<bundles_post_ra>
// kernel: generator_forward.1
= control target key start
LH: loop header
LB: loop body
LE: loop exit
PB: predicated region body
PF: predicated region fallthrough
CT: control target
= control target key end

     0   :  { %s6574_s0 = inlined_call_operand.vmem [shape: f32[2,8], index: 0, kind: input, shape index: {}]   ;;  %s6575_s1 = inlined_call_operand.vmem [shape: bf16[4,8,2], index: 1, kind: input, shape index: {}]   ;;  %s6576_s2 = inlined_call_operand.hbm [shape: bf16[8,512], index: 2, kind: input, shape index: {}]   ;;  %s6577_s3 = inlined_call_operand.hbm [shape: f32[128,128], index: 3, kind: input, shape index: {}]   ;;  %s6578_s4 = inlined_call_operand.vmem [shape: f32[1,128], index: 4, kind: input, shape index: {}]   ;;  %s6579_s5 = inlined_call_operand.vmem [shape: f32[1,128], index: 5, kind: input, shape index: {}]   ;;  %s6580_s6 = inlined_call_operand.vmem [shape: bf16[4,16,8], index: 6, kind: input, shape index: {}]   ;;  %s6581_s7 = inlined_call_operand.vmem [shape: bf16[128,512], index: 7, kind: input, shape index: {}]   ;;  %s6582_s8 = inlined_call_operand.hbm [shape: f32[128,128], index: 8, kind: input, shape index: {}]   ;;  %s6583_s9 = inlined_call_operand.vmem [shape: f32[1,128], index: 9, kind: input, shape index: {}]   ;;  %s6584_s10 = inlined_call_operand.vmem [shape: f32[1,128], index: 10, kind: input, shape index: {}]   ;;  %s6585_s11 = inlined_call_operand.vmem [shape: bf16[4,32,16], index: 11, kind: input, shape index: {}]   ;;  %s6586_s12 = inlined_call_operand.vmem [shape: bf16[128,512], index: 12, kind: input, shape index: {}]   ;;  %s6587_s13 = inlined_call_operand.hbm [shape: f32[128,128], index: 13, kind: input, shape index: {}]   ;;  %s6588_s14 = inlined_call_operand.vmem [shape: f32[1,128], index: 14, kind: input, shape index: {}]   ;;  %s6589_s15 = inlined_call_operand.vmem [shape: f32[1,128], index: 15, kind: input, shape index: {}]   ;;  %s6590_s16 = inlined_call_operand.vmem [shape: bf16[4,64,32], index: 16, kind: input, shape index: {}]   ;;  %s6591_s17 = inlined_call_operand.hbm [shape: bf16[128,512], index: 17, kind: input, shape index: {}]   ;;  %s6592_s18 = inlined_call_operand.hbm [shape: f32[128,128], index: 18, kind: input, shape index: {}]   ;;  %s6593_s19 = inlined_call_operand.hbm [shape: f32[1,128], index: 19, kind: input, shape index: {}]   ;;  %s6594_s20 = inlined_call_operand.hbm [shape: f32[1,128], index: 20, kind: input, shape index: {}]   ;;  %s6595_s21 = inlined_call_operand.vmem [shape: bf16[4,128,64], index: 21, kind: input, shape index: {}]   ;;  %s6596_s22 = inlined_call_operand.vmem [shape: bf16[128,512], index: 22, kind: input, shape index: {}]   ;;  %s6597_s23 = inlined_call_operand.hbm [shape: f32[128,128], index: 23, kind: output, shape index: {}]  }
   0x1   :  { %6601 = sst [smem:[#allocation23_spill]] %s6574_s0 }
   0x2   :  { %6602 = sst [smem:[#allocation24_spill]] %s6575_s1 }
   0x3   :  { %6603 = sst [smem:[#allocation25_spill]] %s6576_s2 }
   0x4   :  { %6604 = sst [smem:[#allocation26_spill]] %s6577_s3 }
   0x5   :  { %6605 = sst [smem:[#allocation27_spill]] %s6578_s4 }
   0x6   :  { %6606 = sst [smem:[#allocation28_spill]] %s6579_s5 }
   0x7   :  { %6607 = sst [smem:[#allocation29_spill]] %s6580_s6 }
   0x8   :  { %6608 = sst [smem:[#allocation30_spill]] %s6581_s7 }
   0x9   :  { %28 = vsyncpa [#allocation3], 0 }
   0xa   :  { %29 = vsyncpa [#allocation6], 0 }
   0xb   :  { %30 = vsyncpa [#allocation9], 0 }
   0xc   :  { %31 = vsyncpa [#allocation12], 0 }
   0xd   :  { %32 = vsyncpa [#allocation15], 0 }
   0xe   :  { %33 = vsyncpa [#allocation4], 0  ;;  %s5530_s4 = smov [#allocation5]  }
   0xf   :  { %s53_s30 = sshll.u32 %s5530_s4, 4  ;;  %s54_s30 = int_to_ptr.vmem [resolvable:$true] %s53_s30 }
  0x10   :  { %s5346_s24 = scalar_lea.vmem %s54_s30, 2048  ;;  %p5351_p1 = scmp.lt.s32.totalorder %s54_s30, %s54_s30 }
  0x11   :  { %p5347_p0 = scmp.ne.s32.totalorder %s54_s30, %s5346_s24  ;;  %p5352_p2 = scmp.lt.s32.totalorder %s5346_s24, %s5346_s24 }
  0x13   :  { %p5353_p3 = por %p5352_p2, %p5351_p1 }
  0x15   :  { %p5354_p4 = pnand %p5353_p3, %p5347_p0 }
  0x17   :  { %5357 = shalt.err (!%p5354_p4)
}
  0x18   :  { %s5531_s25 = smov 128   ;;  %s5532_s5 = smov 8  }
  0x19   :  { %s6609_s2 = sld [smem:[#allocation26_spill]]  ;;  %s5533_s6 = smov [#allocation8]  }
  0x1a   :  { %s93_s27 = sshll.u32 %s5533_s6, 4  ;;  %s5534_s7 = smov [#allocation11]   ;;  %s94_s27 = int_to_ptr.vmem [resolvable:$true] %s93_s27 }
  0x1b   :  { %s123_s28 = sshll.u32 %s5534_s7, 4  ;;  %s5366_s29 = scalar_lea.vmem %s94_s27, 2048  ;;  %s124_s28 = int_to_ptr.vmem [resolvable:$true] %s123_s28 }
  0x1c   :  { %p5367_p5 = scmp.ne.s32.totalorder %s94_s27, %s5366_s29  ;;  %p5371_p6 = scmp.lt.s32.totalorder %s94_s27, %s94_s27 }
  0x1d   :  { %p5372_p7 = scmp.lt.s32.totalorder %s5366_s29, %s5366_s29 }
  0x1f   :  { %59 = dma.hbm_to_vmem [thread:$0]  %s6609_s2, 2048, %s54_s30, [#allocation6], %s5531_s25, %s5531_s25, %s5532_s5  }
  0x20   :  { %p5373_p8 = por %p5372_p7, %p5371_p6 }
  0x22   :  { %p5374_p9 = pnand %p5373_p8, %p5367_p5 }
  0x24   :  { %5377 = shalt.err (!%p5374_p9)
}
  0x25   :  { %99 = dma.hbm_to_vmem [thread:$0]  %s6587_s13, 2048, %s94_s27, [#allocation9], %s5531_s25, %s5531_s25, %s5532_s5  }
  0x26   :  { %s5386_s4 = scalar_lea.vmem %s124_s28, 2048  ;;  %p5391_p11 = scmp.lt.s32.totalorder %s124_s28, %s124_s28 }
  0x27   :  { %p5387_p10 = scmp.ne.s32.totalorder %s124_s28, %s5386_s4  ;;  %p5392_p12 = scmp.lt.s32.totalorder %s5386_s4, %s5386_s4 }
  0x29   :  { %p5393_p13 = por %p5392_p12, %p5391_p11 }
  0x2b   :  { %p5394_p0 = pnand %p5393_p13, %p5387_p10 }
  0x2d   :  { %5397 = shalt.err (!%p5394_p0)
}
  0x2e   :  { %129 = dma.hbm_to_vmem [thread:$0]  %s6592_s18, 2048, %s124_s28, [#allocation12], %s5531_s25, %s5531_s25, %s5532_s5  }
  0x2f   :  { %s5535_s1 = smov [#allocation2]   ;;  %s5536_s2 = smov [#allocation7]  }
  0x30   :  { %s44_s26 = sshll.u32 %s5535_s1, 4  ;;  %s73_s13 = sshll.u32 %s5536_s2, 4  ;;  %s45_s26 = int_to_ptr.vmem [resolvable:$true] %s44_s26  ;;  %s74_s13 = int_to_ptr.vmem [resolvable:$true] %s73_s13 }
  0x31   :  { %s5406_s6 = scalar_lea.vmem %s45_s26, 256  ;;  %p5411_p2 = scmp.lt.s32.totalorder %s45_s26, %s45_s26 }
  0x32   :  { %p5407_p1 = scmp.ne.s32.totalorder %s45_s26, %s5406_s6  ;;  %p5412_p3 = scmp.lt.s32.totalorder %s5406_s6, %s5406_s6 }
  0x34   :  { %p5413_p4 = por %p5412_p3, %p5411_p2 }
  0x36   :  { %p5414_p5 = pnand %p5413_p4, %p5407_p1 }
  0x38   :  { %5417 = shalt.err (!%p5414_p5)
}
  0x39   :  { %s6610_s29 = sld [smem:[#allocation25_spill]]  ;;  %s5426_s3 = scalar_lea.vmem %s74_s13, 2048 }
  0x3a   :  { %p5427_p6 = scmp.ne.s32.totalorder %s74_s13, %s5426_s3  ;;  %p5431_p7 = scmp.lt.s32.totalorder %s74_s13, %s74_s13 }
  0x3b   :  { %p5432_p8 = scmp.lt.s32.totalorder %s5426_s3, %s5426_s3 }
  0x3d   :  { %p5433_p9 = por %p5432_p8, %p5431_p7 }
  0x3f   :  { %47 = dma.hbm_to_vmem [thread:$0]  %s6610_s29, 256, %s45_s26, [#allocation3]  }
  0x40   :  { %p5434_p10 = pnand %p5433_p9, %p5427_p6 }
  0x42   :  { %5437 = shalt.err (!%p5434_p10)
}
  0x43   :  { %79 = dma.hbm_to_vmem [thread:$0]  %s6582_s8, 2048, %s74_s13, [#allocation6], %s5531_s25, %s5531_s25, %s5532_s5  }
  0x44   :  { %s5537_s0 = smov [#allocation10]  }
  0x45   :  { %s111_s4 = sshll.u32 %s5537_s0, 4  ;;  %s112_s4 = int_to_ptr.vmem [resolvable:$true] %s111_s4 }
  0x46   :  { %s5446_s30 = scalar_lea.vmem %s112_s4, 4096  ;;  %p5451_p12 = scmp.lt.s32.totalorder %s112_s4, %s112_s4 }
  0x47   :  { %p5447_p11 = scmp.ne.s32.totalorder %s112_s4, %s5446_s30  ;;  %p5452_p13 = scmp.lt.s32.totalorder %s5446_s30, %s5446_s30 }
  0x49   :  { %p5453_p0 = por %p5452_p13, %p5451_p12 }
  0x4b   :  { %p5454_p1 = pnand %p5453_p0, %p5447_p11 }
  0x4d   :  { %5457 = shalt.err (!%p5454_p1)
}
  0x4e   :  { %s5538_s24 = smov 256   ;;  %s5539_s1 = smov 16  }
  0x4f   :  { %117 = dma.hbm_to_vmem [thread:$0]  %s6591_s17, 4096, %s112_s4, [#allocation9], %s5538_s24, %s5538_s24, %s5539_s1  }
  0x50   :  { %s5540_s6 = smov [#allocation13]   ;;  %s5541_s7 = smov [#allocation14]  }
  0x51   :  { %s136_s27 = sshll.u32 %s5540_s6, 4  ;;  %s146_s8 = sshll.u32 %s5541_s7, 4  ;;  %s137_s27 = int_to_ptr.vmem [resolvable:$true] %s136_s27  ;;  %s147_s8 = int_to_ptr.vmem [resolvable:$true] %s146_s8 }
  0x52   :  { %s5466_s13 = scalar_lea.vmem %s137_s27, 16  ;;  %s5470_s29 = scalar_lea.vmem %s137_s27, 32 }
  0x53   :  { %p5467_p2 = scmp.ne.s32.totalorder %s137_s27, %s5466_s13  ;;  %p5471_p3 = scmp.lt.s32.totalorder %s137_s27, %s137_s27 }
  0x54   :  { %p5472_p4 = scmp.lt.s32.totalorder %s5470_s29, %s5466_s13 }
  0x56   :  { %p5473_p5 = por %p5472_p4, %p5471_p3 }
  0x58   :  { %p5474_p6 = pnand %p5473_p5, %p5467_p2 }
  0x5a   :  { %5477 = shalt.err (!%p5474_p6)
}
  0x5b   :  { %139 = dma.hbm_to_vmem [thread:$0]  %s6593_s19, 16, %s137_s27, [#allocation12]  }
  0x5c   :  { %s5486_s28 = scalar_lea.vmem %s147_s8, 16  ;;  %s5490_s17 = scalar_lea.vmem %s147_s8, 32 }
  0x5d   :  { %p5487_p7 = scmp.ne.s32.totalorder %s147_s8, %s5486_s28  ;;  %p5491_p8 = scmp.lt.s32.totalorder %s147_s8, %s147_s8 }
  0x5e   :  { %p5492_p9 = scmp.lt.s32.totalorder %s5490_s17, %s5486_s28 }
  0x60   :  { %p5493_p10 = por %p5492_p9, %p5491_p8 }
  0x62   :  { %p5494_p11 = pnand %p5493_p10, %p5487_p7 }
  0x64   :  { %5497 = shalt.err (!%p5494_p11)
}
  0x65   :  { %149 = dma.hbm_to_vmem [thread:$0]  %s6594_s20, 16, %s147_s8, [#allocation15]  }
  0x66   :  { %5518 = dma.done.wait [#allocation3], 256  }
  0x67   :  { %5519 = vsyncadd [#allocation3], 4294967040 }
  0x68   :  { %5520 = dma.done.wait [#allocation6], 4096  }
  0x69   :  { %5521 = vsyncadd [#allocation6], 4294963200 }
  0x6a   :  { %5522 = dma.done.wait [#allocation9], 6144  }
  0x6b   :  { %5523 = vsyncadd [#allocation9], 4294961152 }
  0x6c   :  { %5524 = dma.done.wait [#allocation12], 2064  }
  0x6d   :  { %5525 = vsyncadd [#allocation12], 4294965232 }
  0x6e   :  { %5526 = dma.done.wait [#allocation15], 16  }
  0x6f   :  { %5527 = vsyncadd [#allocation15], 4294967280  ;;  %v5542_v0 = vmov 0   ;;  %v181_v1 = vld [vmem:[#allocation2] sm:$0xff]  ;;  %vm197_vm0 = vcmask 1043456   ;;  %s6611_s20 = sld [smem:[#allocation23_spill]] }
  0x70   :  { %242 = vmatprep.mubr.bf16.mxu0 %v5542_v0  ;;  %283 = vmatprep.mubr.bf16.mxu1 %v5542_v0  ;;  %v182_v3 = vld [vmem:[#allocation2 + $0x8] sm:$0xff]  ;;  %v4145_v4 = vcombine.high %v181_v1, %v181_v1  ;;  %v4144_v5 = vcombine.low %v181_v1, %v181_v1  ;;  %vm193_vm1 = vcmask 64512   ;;  %v5543_v11 = vmov 0.0   ;;  %s6612_s26 = sld [smem:[#allocation24_spill]]  ;;  %v521_v33 = vld [vmem:[#allocation5 + $0x70] sm:$0xff]  ;;  %v520_v34 = vld [vmem:[#allocation5 + $0x68] sm:$0xff] }
  0x71   :  { %v4147_v6 = vcombine.high %v182_v3, %v182_v3  ;;  %v4146_v7 = vcombine.low %v182_v3, %v182_v3  ;;  %vm5544_vm2 = vmmov 0   ;;  %vm303_vm3 = vcmask 1040384   ;;  %v522_v32 = vld [vmem:[#allocation5 + $0x78] sm:$0xff]  ;;  %v519_v35 = vld [vmem:[#allocation5 + $0x60] sm:$0xff]  ;;  %v517_v37 = vld [vmem:[#allocation5 + $0x50] sm:$0xff]  ;;  %s6613_s18 = sld [smem:[#allocation30_spill]] }
  0x72   :  { %4148 = vmatprep.subr.msk.bf16.mxu0 %vm197_vm0, %v4145_v4  ;;  %v199_v8 = vsel %vm197_vm0, %v4144_v5, 0  ;;  %vm299_vm4 = vcmask 15360   ;;  %v518_v36 = vld [vmem:[#allocation5 + $0x58] sm:$0xff]  ;;  %v516_v38 = vld [vmem:[#allocation5 + $0x48] sm:$0xff]  ;;  %v515_v39 = vld [vmem:[#allocation5 + $0x40] sm:$0xff]  ;;  %s6615_s27 = sld [smem:[#allocation28_spill]] }
  0x73   :  { %4150 = vmatprep.subr.msk.bf16.mxu1 %vm197_vm0, %v4147_v6  ;;  %225 = vmatpush1.bf16.msra.mxu0 %v199_v8  ;;  %v205_v10 = vsel %vm197_vm0, %v4146_v7, 0  ;;  %v514_v40 = vld [vmem:[#allocation5 + $0x38] sm:$0xff]  ;;  %v513_v41 = vld [vmem:[#allocation5 + $0x30] sm:$0xff]  ;;  %v512_v42 = vld [vmem:[#allocation5 + $0x28] sm:$0xff]  ;;  %s6616_s13 = sld [smem:[#allocation29_spill]]  ;;  %vm1602_vm5 = vcmask 130048  }
  0x74   :  { %266 = vmatpush1.bf16.msra.mxu1 %v205_v10  ;;  %4669 = vmatprep.subr.bf16.mxu0 %v5543_v11  ;;  %v511_v43 = vld [vmem:[#allocation5 + $0x20] sm:$0xff]  ;;  %v510_v44 = vld [vmem:[#allocation5 + $0x18] sm:$0xff]  ;;  %v509_v45 = vld [vmem:[#allocation5 + $0x10] sm:$0xff]  ;;  %vm2387_vm6 = vcmask 261120   ;;  %vm3420_vm7 = vcmask 523264  }
  0x75   :  { %v179_v2 = vld [vmem:[%s6611_s20] sm:$0x3]  ;;  %4675 = vmatprep.subr.bf16.mxu1 %v5543_v11  ;;  %v508_v46 = vld [vmem:[#allocation5 + $0x8] sm:$0xff]  ;;  %v507_v47 = vld [vmem:[#allocation5] sm:$0xff] }
  0x76   :  { %v180_v9 = vpack.c.bf16 %v179_v2, %v179_v2  ;;  %v296_v22 = vld [vmem:[%s6612_s26] sm:$0xf]  ;;  %v4152_v27 = vld [vmem:[%s6612_s26 + $0x4] sm:$0xf]  ;;  %v4157_v30 = vld [vmem:[%s6612_s26 + $0xc] sm:$0xf] }
  0x77   :  { %v4155_v31 = vld [vmem:[%s6612_s26 + $0x8] sm:$0xf]  ;;  %s6614_s26 = sld [smem:[#allocation27_spill]] }
  0x78   :  { %4149 = vmatmul.mubr.msk.bf16.vlgmr.msra.gmra.mxu0 %vm193_vm1, %v180_v9  ;;  %4151 = vmatmul.mubr.msk.bf16.vlgmr.msra.gmra.mxu1 %vm193_vm1, %v180_v9 }
  0x79   :  { %4677 = vmatprep.mubr.msk.bf16.mxu1 %vm5544_vm2, %v5543_v11  ;;  %4671 = vmatprep.mubr.msk.bf16.mxu0 %vm5544_vm2, %v5543_v11 }
 0x138   :  { %v244_v12 = vpop.f32.mrf.mxu0  ;;  %v285_v14 = vpop.f32.mrf.mxu1 }
 0x139   :  { %v292_v13 = vpack.c.bf16 %v244_v12, %v244_v12  ;;  %v294_v18 = vpack.c.bf16 %v285_v14, %v285_v14 }
 0x13a   :  { %v246_v15 = vpop.f32.mrf.mxu0  ;;  %v287_v19 = vpop.f32.mrf.mxu1 }
 0x13b   :  { %v351_v16 = vsel %vm303_vm3, %v292_v13, 0  ;;  %v293_v17 = vpack.c.bf16 %v246_v15, %v246_v15  ;;  %v295_v21 = vpack.c.bf16 %v287_v19, %v287_v19  ;;  %v399_v28 = vsel %vm303_vm3, %v294_v18, 0 }
 0x13c   :  { %v248_v20 = vpop.f32.mrf.mxu0  ;;  %4676 = vmatpush3.bf16.msra.mxu1 %v351_v16  ;;  %v289_v24 = vpop.f32.mrf.mxu1 }
 0x13d   :  { %v305_v23 = vsel %vm303_vm3, %v293_v17, 0  ;;  %4687 = vmatprep.subr.bf16.mxu1 %v5543_v11  ;;  %v448_v26 = vsel %vm303_vm3, %v295_v21, 0  ;;  %v5048_v21 = vld [vmem:[%s6613_s18 + $0xe4] ss:$16 sps:$4 sm:$0xff]   ;;  %v5049_v24 = vld [vmem:[%s6613_s18 + $0xe8] ss:$16 sps:$4 sm:$0xff]  }
 0x13e   :  { %v249_v25 = vpop.f32.mrf.mxu0  ;;  %4670 = vmatpush3.bf16.msra.mxu0 %v305_v23  ;;  %v290_v29 = vpop.f32.mrf.mxu1  ;;  %v5046_v23 = vld [vmem:[%s6613_s18 + $0xe0] ss:$16 sps:$4 sm:$0xff]  }
 0x13f   :  { %4678 = vmatmul.mubr.msk.bf16.vlgmr.msra.gmra.mxu1 %vm299_vm4, %v296_v22  ;;  %4681 = vmatprep.subr.bf16.mxu0 %v5543_v11  ;;  %v5051_v22 = vld [vmem:[%s6613_s18 + $0xec] ss:$16 sps:$4 sm:$0xff]   ;;  %v5054_v25 = vld [vmem:[%s6613_s18 + $0xc4] ss:$16 sps:$4 sm:$0xff]  }
 0x140   :  { %4688 = vmatpush3.bf16.msra.mxu1 %v448_v26  ;;  %4689 = vmatprep.mubr.msk.bf16.mxu1 %vm5544_vm2, %v5543_v11  ;;  %v5057_v26 = vld [vmem:[%s6613_s18 + $0xcc] ss:$16 sps:$4 sm:$0xff]   ;;  %v5060_v29 = vld [vmem:[%s6613_s18 + $0xa4] ss:$16 sps:$4 sm:$0xff]  }
 0x141   :  { %4672 = vmatmul.mubr.msk.bf16.vlgmr.msra.gmra.mxu0 %vm299_vm4, %v4152_v27  ;;  %834 = vmatprep.subr.bf16.mxu1 %v5048_v21  ;;  %v5052_v27 = vld [vmem:[%s6613_s18 + $0xc0] ss:$16 sps:$4 sm:$0xff]  }
 0x142   :  { %4682 = vmatpush3.bf16.msra.mxu0 %v399_v28  ;;  %4683 = vmatprep.mubr.msk.bf16.mxu0 %vm5544_vm2, %v5543_v11  ;;  %v5055_v28 = vld [vmem:[%s6613_s18 + $0xc8] ss:$16 sps:$4 sm:$0xff]  }
 0x143   :  { %4693 = vmatprep.subr.mxu0 %v5543_v11 }
 0x147   :  { %4690 = vmatmul.mubr.msk.bf16.vlgmr.msra.gmra.mxu1 %vm299_vm4, %v4157_v30  ;;  %v5063_v30 = vld [vmem:[%s6613_s18 + $0xac] ss:$16 sps:$4 sm:$0xff]  }
 0x148   :  { %866 = vmatprep.mubr.bf16.mxu1 %v5542_v0  ;;  %835 = vmatpush1.bf16.msra.mxu1 %v5046_v23 }
 0x149   :  { %4684 = vmatmul.mubr.msk.bf16.vlgmr.msra.gmra.mxu0 %vm299_vm4, %v4155_v31  ;;  %836 = vmatprep.subr.bf16.mxu1 %v5054_v25  ;;  %v5058_v31 = vld [vmem:[%s6613_s18 + $0xa0] ss:$16 sps:$4 sm:$0xff]  }
 0x14a   :  { %4725 = vmatprep.mubr.msk.f32.mxu0 %vm5544_vm2, %v5543_v11  ;;  %4694 = vmatpush3.msra.mxu0 %v522_v32  ;;  %v5061_v32 = vld [vmem:[%s6613_s18 + $0xa8] ss:$16 sps:$4 sm:$0xff]  }
 0x14b   :  { %4695 = vmatprep.subr.mxu0 %v5543_v11 }
 0x14c   :  { %4696 = vmatpush3.msra.mxu0 %v521_v33  ;;  %837 = vmatpush1.bf16.msra.mxu1 %v5052_v27  ;;  %v5066_v33 = vld [vmem:[%s6613_s18 + $0x84] ss:$16 sps:$4 sm:$0xff]  }
 0x14d   :  { %4697 = vmatprep.subr.mxu0 %v5543_v11  ;;  %838 = vmatprep.subr.bf16.mxu1 %v5060_v29 }
 0x14e   :  { %4698 = vmatpush3.msra.mxu0 %v520_v34  ;;  %v5069_v34 = vld [vmem:[%s6613_s18 + $0x8c] ss:$16 sps:$4 sm:$0xff]  }
 0x14f   :  { %4699 = vmatprep.subr.mxu0 %v5543_v11 }
 0x150   :  { %4700 = vmatpush3.msra.mxu0 %v519_v35  ;;  %839 = vmatpush1.bf16.msra.mxu1 %v5058_v31  ;;  %v5064_v35 = vld [vmem:[%s6613_s18 + $0x80] ss:$16 sps:$4 sm:$0xff]  }
 0x151   :  { %4701 = vmatprep.subr.mxu0 %v5543_v11  ;;  %840 = vmatprep.subr.bf16.mxu1 %v5066_v33  ;;  %v5095_v33 = vld [vmem:[%s6616_s13] sm:$0xff]  }
 0x152   :  { %4702 = vmatpush3.msra.mxu0 %v518_v36  ;;  %v5067_v36 = vld [vmem:[%s6613_s18 + $0x88] ss:$16 sps:$4 sm:$0xff]  }
 0x153   :  { %4703 = vmatprep.subr.mxu0 %v5543_v11 }
 0x154   :  { %4704 = vmatpush3.msra.mxu0 %v517_v37  ;;  %841 = vmatpush1.bf16.msra.mxu1 %v5064_v35  ;;  %v5072_v37 = vld [vmem:[%s6613_s18 + $0x64] ss:$16 sps:$4 sm:$0xff]  }
 0x155   :  { %4705 = vmatprep.subr.mxu0 %v5543_v11  ;;  %842 = vmatprep.subr.bf16.mxu1 %v5072_v37 }
 0x156   :  { %4706 = vmatpush3.msra.mxu0 %v516_v38  ;;  %v5075_v38 = vld [vmem:[%s6613_s18 + $0x6c] ss:$16 sps:$4 sm:$0xff]  }
 0x157   :  { %4707 = vmatprep.subr.mxu0 %v5543_v11 }
 0x158   :  { %4708 = vmatpush3.msra.mxu0 %v515_v39  ;;  %v5070_v39 = vld [vmem:[%s6613_s18 + $0x60] ss:$16 sps:$4 sm:$0xff]  }
 0x159   :  { %4709 = vmatprep.subr.mxu0 %v5543_v11  ;;  %843 = vmatpush1.bf16.msra.mxu1 %v5070_v39  ;;  %v1177_v39 = vld [vmem:[#allocation7 + $0x78] sm:$0xff] }
 0x15a   :  { %4710 = vmatpush3.msra.mxu0 %v514_v40  ;;  %v5073_v40 = vld [vmem:[%s6613_s18 + $0x68] ss:$16 sps:$4 sm:$0xff]  }
 0x15b   :  { %4711 = vmatprep.subr.mxu0 %v5543_v11 }
 0x15c   :  { %4712 = vmatpush3.msra.mxu0 %v513_v41  ;;  %v5078_v41 = vld [vmem:[%s6613_s18 + $0x44] ss:$16 sps:$4 sm:$0xff]  }
 0x15d   :  { %4713 = vmatprep.subr.mxu0 %v5543_v11  ;;  %844 = vmatprep.subr.bf16.mxu1 %v5078_v41  ;;  %v1175_v41 = vld [vmem:[#allocation7 + $0x68] sm:$0xff] }
 0x15e   :  { %4714 = vmatpush3.msra.mxu0 %v512_v42  ;;  %v5081_v42 = vld [vmem:[%s6613_s18 + $0x4c] ss:$16 sps:$4 sm:$0xff]  }
 0x15f   :  { %4715 = vmatprep.subr.mxu0 %v5543_v11 }
 0x160   :  { %4716 = vmatpush3.msra.mxu0 %v511_v43  ;;  %v5076_v43 = vld [vmem:[%s6613_s18 + $0x40] ss:$16 sps:$4 sm:$0xff]  }
 0x161   :  { %4717 = vmatprep.subr.mxu0 %v5543_v11  ;;  %845 = vmatpush1.bf16.msra.mxu1 %v5076_v43  ;;  %v1173_v43 = vld [vmem:[#allocation7 + $0x58] sm:$0xff] }
 0x162   :  { %4718 = vmatpush3.msra.mxu0 %v510_v44  ;;  %v5079_v44 = vld [vmem:[%s6613_s18 + $0x48] ss:$16 sps:$4 sm:$0xff]  }
 0x163   :  { %4719 = vmatprep.subr.mxu0 %v5543_v11 }
 0x164   :  { %4720 = vmatpush3.msra.mxu0 %v509_v45  ;;  %v5084_v45 = vld [vmem:[%s6613_s18 + $0x24] ss:$16 sps:$4 sm:$0xff]  }
 0x165   :  { %4721 = vmatprep.subr.mxu0 %v5543_v11  ;;  %846 = vmatprep.subr.bf16.mxu1 %v5084_v45  ;;  %v1171_v45 = vld [vmem:[#allocation7 + $0x48] sm:$0xff] }
 0x166   :  { %4722 = vmatpush3.msra.mxu0 %v508_v46  ;;  %v5087_v46 = vld [vmem:[%s6613_s18 + $0x2c] ss:$16 sps:$4 sm:$0xff]  }
 0x167   :  { %4723 = vmatprep.subr.mxu0 %v5543_v11 }
 0x168   :  { %4724 = vmatpush3.msra.mxu0 %v507_v47  ;;  %v5082_v47 = vld [vmem:[%s6613_s18 + $0x20] ss:$16 sps:$4 sm:$0xff]  }
 0x169   :  { %875 = vmatprep.subr.bf16.mxu0 %v5051_v22  ;;  %847 = vmatpush1.bf16.msra.mxu1 %v5082_v47  ;;  %v1169_v47 = vld [vmem:[#allocation7 + $0x38] sm:$0xff] }
 0x1ff   :  { %v387_v48 = vpop.f32.mrf.mxu1 }
 0x201   :  { %v341_v49 = vpop.f32.mrf.mxu0  ;;  %v4679_v50 = vpop.f32.mrf.mxu1 }
 0x202   :  { %v388_v57 = vadd.f32 %v387_v48, %v341_v49  ;;  %v5085_v48 = vld [vmem:[%s6613_s18 + $0x28] ss:$16 sps:$4 sm:$0xff]   ;;  %v5090_v49 = vld [vmem:[%s6613_s18 + $0x4] ss:$16 sps:$4 sm:$0xff]   ;;  %v5088_v50 = vld [vmem:[%s6613_s18] ss:$16 sps:$4 sm:$0xff]  }
 0x203   :  { %v4673_v51 = vpop.f32.mrf.mxu0  ;;  %v390_v52 = vpop.f32.mrf.mxu1  ;;  %848 = vmatprep.subr.bf16.mxu1 %v5090_v49  ;;  %v1167_v49 = vld [vmem:[#allocation7 + $0x28] sm:$0xff] }
 0x204   :  { %v5091_v51 = vld [vmem:[%s6613_s18 + $0x8] ss:$16 sps:$4 sm:$0xff]   ;;  %v5093_v52 = vld [vmem:[%s6613_s18 + $0xc] ss:$16 sps:$4 sm:$0xff]   ;;  %849 = vmatpush1.bf16.msra.mxu1 %v5088_v50  ;;  %v1166_v50 = vld [vmem:[#allocation7 + $0x20] sm:$0xff] }
 0x205   :  { %v344_v53 = vpop.f32.mrf.mxu0  ;;  %v4680_v54 = vpop.f32.mrf.mxu1  ;;  %4728 = vmatprep.subr.bf16.mxu1 %v5543_v11 }
 0x207   :  { %v4674_v55 = vpop.f32.mrf.mxu0  ;;  %v484_v56 = vpop.f32.mrf.mxu1 }
 0x209   :  { %v435_v58 = vpop.f32.mrf.mxu0  ;;  %v4691_v59 = vpop.f32.mrf.mxu1 }
 0x20a   :  { %v441_v60 = vadd.f32 %v435_v58, %v388_v57 }
 0x20b   :  { %v4685_v61 = vpop.f32.mrf.mxu0  ;;  %v487_v62 = vpop.f32.mrf.mxu1 }
 0x20c   :  { %v5765_v63 = vadd.f32 %v484_v56, %v441_v60  ;;  %v5545_v60 = vmov 1966171168   ;;  %v606_v62 = vlaneseq }
 0x20d   :  { %v438_v1 = vpop.f32.mrf.mxu0  ;;  %v4692_v2 = vpop.f32.mrf.mxu1  ;;  %v604_v61 = vunpack.c.l.s4 %v5545_v60 }
 0x20e   :  { %v491_v3 = vrot.slane %v5765_v63, 4  ;;  %v498_v4 = vmul.f32 %v5765_v63, %v5765_v63  ;;  %v607_v2 = vshrl.u32 %v606_v62, 7 }
 0x20f   :  { %v4686_v5 = vpop.f32.mrf.mxu0  ;;  %v605_v1 = vunpack.c.0.s8 %v604_v61 }
 0x210   :  { %v492_v6 = vadd.f32 %v491_v3, %v5765_v63  ;;  %v499_v7 = vrot.slane %v498_v4, 4 }
 0x211   :  { %v5871_v3 = vsub.s32 %v605_v1, %v607_v2 }
 0x212   :  { %v493_v8 = vrot.slane %v492_v6, 2  ;;  %v500_v9 = vadd.f32 %v499_v7, %v498_v4 }
 0x214   :  { %v494_v10 = vadd.f32 %v493_v8, %v492_v6  ;;  %v501_v12 = vrot.slane %v500_v9, 2  ;;  %v5874_v6 = vsub.s32 0, %v607_v2  ;;  %v599_v8 = vld [vmem:[%s6614_s26] sm:$0x1] }
 0x216   :  { %v495_v13 = vrot.slane %v494_v10, 1  ;;  %v502_v14 = vadd.f32 %v501_v12, %v500_v9 }
 0x218   :  { %v496_v15 = vadd.f32 %v495_v13, %v494_v10  ;;  %v503_v16 = vrot.slane %v502_v14, 1 }
 0x21a   :  { %v504_v17 = vadd.f32 %v503_v16, %v502_v14  ;;  %v497_v18 = vmul.f32 0.125, %v496_v15  ;;  %v4159_v15 = vld [vmem:[%s6615_s27] ss:$0 sm:$0xff] }
 0x21c   :  { %v505_v19 = vmul.f32 0.125, %v504_v17 }
 0x21e   :  { %v506_v20 = vsel %vm303_vm3, %v497_v18, %v505_v19 }
 0x21f   :  { %4726 = vmatmul.mubr.f32.vlgmr.msra.gmra.mxu0 %v506_v20 }
 0x220   :  { %907 = vmatprep.mubr.bf16.mxu0 %v5542_v0  ;;  %876 = vmatpush1.bf16.msra.mxu0 %v5049_v24 }
 0x221   :  { %877 = vmatprep.subr.bf16.mxu0 %v5057_v26 }
 0x224   :  { %878 = vmatpush1.bf16.msra.mxu0 %v5055_v28  ;;  %v5094_v28 = vld [vmem:[%s6616_s13 + $0x8] sm:$0xff]  }
 0x225   :  { %879 = vmatprep.subr.bf16.mxu0 %v5063_v30 }
 0x228   :  { %880 = vmatpush1.bf16.msra.mxu0 %v5061_v32 }
 0x229   :  { %881 = vmatprep.subr.bf16.mxu0 %v5069_v34 }
 0x22c   :  { %882 = vmatpush1.bf16.msra.mxu0 %v5067_v36  ;;  %v5096_v36 = vld [vmem:[%s6616_s13 + $0x10] sm:$0xff]  }
 0x22d   :  { %883 = vmatprep.subr.bf16.mxu0 %v5075_v38  ;;  %v5097_v38 = vld [vmem:[%s6616_s13 + $0x18] sm:$0xff]  }
 0x230   :  { %884 = vmatpush1.bf16.msra.mxu0 %v5073_v40  ;;  %v1176_v40 = vld [vmem:[#allocation7 + $0x70] sm:$0xff] }
 0x231   :  { %885 = vmatprep.subr.bf16.mxu0 %v5081_v42  ;;  %v1174_v42 = vld [vmem:[#allocation7 + $0x60] sm:$0xff] }
 0x234   :  { %886 = vmatpush1.bf16.msra.mxu0 %v5079_v44  ;;  %v1172_v44 = vld [vmem:[#allocation7 + $0x50] sm:$0xff] }
 0x235   :  { %887 = vmatprep.subr.bf16.mxu0 %v5087_v46  ;;  %v1170_v46 = vld [vmem:[#allocation7 + $0x40] sm:$0xff] }
 0x238   :  { %888 = vmatpush1.bf16.msra.mxu0 %v5085_v48  ;;  %v1168_v48 = vld [vmem:[#allocation7 + $0x30] sm:$0xff] }
 0x239   :  { %889 = vmatprep.subr.bf16.mxu0 %v5093_v52  ;;  %v1164_v52 = vld [vmem:[#allocation7 + $0x10] sm:$0xff] }
 0x23c   :  { %890 = vmatpush1.bf16.msra.mxu0 %v5091_v51  ;;  %v1165_v51 = vld [vmem:[#allocation7 + $0x18] sm:$0xff] }
 0x23d   :  { %4752 = vmatprep.subr.mxu0 %v5543_v11 }
 0x2df   :  { %v589_v53 = vpop.f32.mrf.mxu0 }
 0x2e0   :  { %v593_v54 = vmul.f32 %v589_v53, %v589_v53  ;;  %v623_v10 = vrot.slane %v589_v53, %v5874_v6 }
 0x2e1   :  { %v4727_v55 = vpop.f32.mrf.mxu0 }
 0x2e2   :  { %v595_v56 = vrot.slane %v593_v54, 7  ;;  %v624_v13 = vsub.f32 %v5765_v63, %v623_v10  ;;  %v1162_v54 = vld [vmem:[#allocation7] sm:$0xff] }
 0x2e4   :  { %v597_v57 = vsub.f32 %v589_v53, %v595_v56  ;;  %v1163_v53 = vld [vmem:[#allocation7 + $0x8] sm:$0xff] }
 0x2e6   :  { %v598_v58 = vmax.f32 %v597_v57, 0.0 }
 0x2e8   :  { %v600_v59 = vadd.f32 1e-05, %v598_v58 }
 0x2ea   :  { %5298 = vrsqrt.f32 %v600_v59 }
 0x2f7   :  { %v5299_v4 = vpop.eup %5298 }
 0x2f8   :  { %v609_v5 = vrot.slane %v5299_v4, %v5871_v3 }
 0x2fa   :  { %v610_v7 = vcombine.high %v609_v5, %v609_v5 }
 0x2fc   :  { %v617_v9 = vrot.slane %v610_v7, %v5871_v3 }
 0x2fe   :  { %v619_v12 = vmul.f32 %v617_v9, %v599_v8 }
 0x300   :  { %v629_v14 = vrot.slane %v619_v12, %v5874_v6 }
 0x302   :  { %v631_v16 = vmul.f32 %v629_v14, %v624_v13 }
 0x304   :  { %v639_v17 = vadd.f32 %v4159_v15, %v631_v16 }
 0x306   :  { %v640_v18 = vmax.f32 %v639_v17, 0.0 }
 0x308   :  { %v641_v19 = vpack.c.bf16 %v640_v18, %v640_v18 }
 0x30a   :  { %867 = vmatmul.mubr.bf16.vlgmr.msra.gmra.mxu1 %v641_v19  ;;  %908 = vmatmul.mubr.bf16.vlgmr.msra.gmra.mxu0 %v641_v19 }
 0x30b   :  { %4730 = vmatprep.mubr.msk.bf16.mxu1 %vm5544_vm2, %v5543_v11  ;;  %4784 = vmatprep.mubr.msk.f32.mxu0 %vm5544_vm2, %v5543_v11 }
 0x30c   :  { %4753 = vmatpush3.msra.mxu0 %v1177_v39  ;;  %v5101_v39 = vld [vmem:[%s6586_s12 + $0xe8] ss:$16 sps:$4 sm:$0xff]  }
 0x30d   :  { %4754 = vmatprep.subr.mxu0 %v5543_v11 }
 0x30e   :  { %4755 = vmatpush3.msra.mxu0 %v1176_v40  ;;  %v5106_v40 = vld [vmem:[%s6586_s12 + $0xc4] ss:$16 sps:$4 sm:$0xff]  }
 0x30f   :  { %4756 = vmatprep.subr.mxu0 %v5543_v11 }
 0x310   :  { %4757 = vmatpush3.msra.mxu0 %v1175_v41  ;;  %v5109_v41 = vld [vmem:[%s6586_s12 + $0xcc] ss:$16 sps:$4 sm:$0xff]  }
 0x311   :  { %4758 = vmatprep.subr.mxu0 %v5543_v11 }
 0x312   :  { %4759 = vmatpush3.msra.mxu0 %v1174_v42  ;;  %v5104_v42 = vld [vmem:[%s6586_s12 + $0xc0] ss:$16 sps:$4 sm:$0xff]  }
 0x313   :  { %4760 = vmatprep.subr.mxu0 %v5543_v11 }
 0x314   :  { %4761 = vmatpush3.msra.mxu0 %v1173_v43  ;;  %v5107_v43 = vld [vmem:[%s6586_s12 + $0xc8] ss:$16 sps:$4 sm:$0xff]  }
 0x315   :  { %4762 = vmatprep.subr.mxu0 %v5543_v11 }
 0x316   :  { %4763 = vmatpush3.msra.mxu0 %v1172_v44  ;;  %v5112_v44 = vld [vmem:[%s6586_s12 + $0xa4] ss:$16 sps:$4 sm:$0xff]  }
 0x317   :  { %4764 = vmatprep.subr.mxu0 %v5543_v11 }
 0x318   :  { %4765 = vmatpush3.msra.mxu0 %v1171_v45  ;;  %v5115_v45 = vld [vmem:[%s6586_s12 + $0xac] ss:$16 sps:$4 sm:$0xff]  }
 0x319   :  { %4766 = vmatprep.subr.mxu0 %v5543_v11 }
 0x31a   :  { %4767 = vmatpush3.msra.mxu0 %v1170_v46  ;;  %v5110_v46 = vld [vmem:[%s6586_s12 + $0xa0] ss:$16 sps:$4 sm:$0xff]  }
 0x31b   :  { %4768 = vmatprep.subr.mxu0 %v5543_v11 }
 0x31c   :  { %4769 = vmatpush3.msra.mxu0 %v1169_v47  ;;  %v5113_v47 = vld [vmem:[%s6586_s12 + $0xa8] ss:$16 sps:$4 sm:$0xff]  }
 0x31d   :  { %4770 = vmatprep.subr.mxu0 %v5543_v11 }
 0x31e   :  { %4771 = vmatpush3.msra.mxu0 %v1168_v48  ;;  %v5118_v48 = vld [vmem:[%s6586_s12 + $0x84] ss:$16 sps:$4 sm:$0xff]  }
 0x31f   :  { %4772 = vmatprep.subr.mxu0 %v5543_v11 }
 0x320   :  { %4773 = vmatpush3.msra.mxu0 %v1167_v49  ;;  %v5121_v49 = vld [vmem:[%s6586_s12 + $0x8c] ss:$16 sps:$4 sm:$0xff]  }
 0x321   :  { %4774 = vmatprep.subr.mxu0 %v5543_v11 }
 0x322   :  { %4775 = vmatpush3.msra.mxu0 %v1166_v50  ;;  %v5116_v50 = vld [vmem:[%s6586_s12 + $0x80] ss:$16 sps:$4 sm:$0xff]  }
 0x323   :  { %4776 = vmatprep.subr.mxu0 %v5543_v11 }
 0x324   :  { %4777 = vmatpush3.msra.mxu0 %v1165_v51  ;;  %v5119_v51 = vld [vmem:[%s6586_s12 + $0x88] ss:$16 sps:$4 sm:$0xff]  }
 0x325   :  { %4778 = vmatprep.subr.mxu0 %v5543_v11 }
 0x326   :  { %4779 = vmatpush3.msra.mxu0 %v1164_v52  ;;  %v5124_v52 = vld [vmem:[%s6586_s12 + $0x64] ss:$16 sps:$4 sm:$0xff]  }
 0x327   :  { %4780 = vmatprep.subr.mxu0 %v5543_v11 }
 0x328   :  { %4781 = vmatpush3.msra.mxu0 %v1163_v53  ;;  %v5127_v53 = vld [vmem:[%s6586_s12 + $0x6c] ss:$16 sps:$4 sm:$0xff]  }
 0x329   :  { %4782 = vmatprep.subr.mxu0 %v5543_v11 }
 0x32a   :  { %4783 = vmatpush3.msra.mxu0 %v1162_v54  ;;  %v5122_v54 = vld [vmem:[%s6586_s12 + $0x60] ss:$16 sps:$4 sm:$0xff]  }
 0x3ca   :  { %v868_v20 = vpop.f32.mrf.mxu1  ;;  %v909_v63 = vpop.f32.mrf.mxu0 }
 0x3cb   :  { %v916_v26 = vpack.c.bf16 %v868_v20, %v868_v20  ;;  %v918_v32 = vpack.c.bf16 %v909_v63, %v909_v63 }
 0x3cc   :  { %v870_v21 = vpop.f32.mrf.mxu1  ;;  %v911_v22 = vpop.f32.mrf.mxu0 }
 0x3cd   :  { %v917_v23 = vpack.c.bf16 %v870_v21, %v870_v21  ;;  %v986_v31 = vsel %vm197_vm0, %v916_v26, 0  ;;  %v1041_v34 = vsel %vm197_vm0, %v918_v32, 0  ;;  %v919_v35 = vpack.c.bf16 %v911_v22, %v911_v22 }
 0x3ce   :  { %v872_v24 = vpop.f32.mrf.mxu1  ;;  %v913_v25 = vpop.f32.mrf.mxu0 }
 0x3cf   :  { %v934_v27 = vsel %vm197_vm0, %v917_v23, 0  ;;  %v1098_v37 = vsel %vm197_vm0, %v919_v35, 0 }
 0x3d0   :  { %v873_v29 = vpop.f32.mrf.mxu1  ;;  %v914_v30 = vpop.f32.mrf.mxu0  ;;  %4729 = vmatpush3.bf16.msra.mxu1 %v934_v27 }
 0x3d1   :  { %4734 = vmatprep.subr.bf16.mxu1 %v5543_v11 }
 0x3d3   :  { %4731 = vmatmul.mubr.msk.bf16.vlgmr.msra.gmra.mxu1 %vm193_vm1, %v5094_v28 }
 0x3d4   :  { %4735 = vmatpush3.bf16.msra.mxu1 %v986_v31  ;;  %4736 = vmatprep.mubr.msk.bf16.mxu1 %vm5544_vm2, %v5543_v11 }
 0x3d5   :  { %4740 = vmatprep.subr.bf16.mxu1 %v5543_v11 }
 0x3db   :  { %4737 = vmatmul.mubr.msk.bf16.vlgmr.msra.gmra.mxu1 %vm193_vm1, %v5095_v33 }
 0x3dc   :  { %4741 = vmatpush3.bf16.msra.mxu1 %v1041_v34  ;;  %4742 = vmatprep.mubr.msk.bf16.mxu1 %vm5544_vm2, %v5543_v11 }
 0x3dd   :  { %4746 = vmatprep.subr.bf16.mxu1 %v5543_v11 }
 0x3e3   :  { %4743 = vmatmul.mubr.msk.bf16.vlgmr.msra.gmra.mxu1 %vm193_vm1, %v5096_v36  ;;  %v5100_v36 = vld [vmem:[%s6586_s12 + $0xe4] ss:$16 sps:$4 sm:$0xff]  }
 0x3e4   :  { %4747 = vmatpush3.bf16.msra.mxu1 %v1098_v37  ;;  %4748 = vmatprep.mubr.msk.bf16.mxu1 %vm5544_vm2, %v5543_v11  ;;  %v5103_v37 = vld [vmem:[%s6586_s12 + $0xec] ss:$16 sps:$4 sm:$0xff]  }
 0x3e5   :  { %1493 = vmatprep.subr.bf16.mxu1 %v5100_v36  ;;  %1536 = vmatprep.subr.bf16.mxu0 %v5103_v37 }
 0x3eb   :  { %4749 = vmatmul.mubr.msk.bf16.vlgmr.msra.gmra.mxu1 %vm193_vm1, %v5097_v38  ;;  %v5098_v38 = vld [vmem:[%s6586_s12 + $0xe0] ss:$16 sps:$4 sm:$0xff]  }
 0x3ec   :  { %1525 = vmatprep.mubr.bf16.mxu1 %v5542_v0  ;;  %1494 = vmatpush1.bf16.msra.mxu1 %v5098_v38 }
 0x3ed   :  { %1495 = vmatprep.subr.bf16.mxu1 %v5106_v40 }
 0x3f0   :  { %1496 = vmatpush1.bf16.msra.mxu1 %v5104_v42  ;;  %v5147_v42 = vld [vmem:[%s6585_s11 + $0x18] sm:$0xff]  }
 0x3f1   :  { %1497 = vmatprep.subr.bf16.mxu1 %v5112_v44  ;;  %v5148_v44 = vld [vmem:[%s6585_s11] sm:$0xff]  }
 0x3f4   :  { %1498 = vmatpush1.bf16.msra.mxu1 %v5110_v46  ;;  %v5149_v46 = vld [vmem:[%s6585_s11 + $0x8] sm:$0xff]  }
 0x3f5   :  { %1499 = vmatprep.subr.bf16.mxu1 %v5118_v48  ;;  %v5150_v48 = vld [vmem:[%s6585_s11 + $0x20] sm:$0xff]  }
 0x3f8   :  { %1500 = vmatpush1.bf16.msra.mxu1 %v5116_v50  ;;  %v5151_v50 = vld [vmem:[%s6585_s11 + $0x28] sm:$0xff]  }
 0x3f9   :  { %1501 = vmatprep.subr.bf16.mxu1 %v5124_v52  ;;  %v5153_v52 = vld [vmem:[%s6585_s11 + $0x38] sm:$0xff]  }
 0x3fc   :  { %1502 = vmatpush1.bf16.msra.mxu1 %v5122_v54  ;;  %v1910_v54 = vld [vmem:[#allocation8 + $0x70] sm:$0xff] }
 0x493   :  { %v970_v55 = vpop.f32.mrf.mxu1 }
 0x495   :  { %v4732_v56 = vpop.f32.mrf.mxu1 }
 0x496   :  { %v5130_v56 = vld [vmem:[%s6586_s12 + $0x44] ss:$16 sps:$4 sm:$0xff]  }
 0x497   :  { %v973_v57 = vpop.f32.mrf.mxu1  ;;  %1503 = vmatprep.subr.bf16.mxu1 %v5130_v56  ;;  %v1908_v56 = vld [vmem:[#allocation8 + $0x60] sm:$0xff] }
 0x499   :  { %v4733_v58 = vpop.f32.mrf.mxu1 }
 0x49a   :  { %v5128_v58 = vld [vmem:[%s6586_s12 + $0x40] ss:$16 sps:$4 sm:$0xff]  }
 0x49b   :  { %v1022_v59 = vpop.f32.mrf.mxu1  ;;  %1504 = vmatpush1.bf16.msra.mxu1 %v5128_v58  ;;  %v1906_v58 = vld [vmem:[#allocation8 + $0x50] sm:$0xff] }
 0x49c   :  { %v1023_v7 = vadd.f32 %v1022_v59, %v970_v55  ;;  %v5125_v55 = vld [vmem:[%s6586_s12 + $0x68] ss:$16 sps:$4 sm:$0xff]  }
 0x49d   :  { %v4738_v60 = vpop.f32.mrf.mxu1  ;;  %v5131_v59 = vld [vmem:[%s6586_s12 + $0x48] ss:$16 sps:$4 sm:$0xff]  }
 0x49e   :  { %v5136_v60 = vld [vmem:[%s6586_s12 + $0x24] ss:$16 sps:$4 sm:$0xff]  }
 0x49f   :  { %v1025_v61 = vpop.f32.mrf.mxu1  ;;  %1505 = vmatprep.subr.bf16.mxu1 %v5136_v60  ;;  %v1904_v60 = vld [vmem:[#allocation8 + $0x40] sm:$0xff] }
 0x4a0   :  { %v1026_v9 = vadd.f32 %v1025_v61, %v973_v57  ;;  %v5133_v57 = vld [vmem:[%s6586_s12 + $0x4c] ss:$16 sps:$4 sm:$0xff]  }
 0x4a1   :  { %v4739_v62 = vpop.f32.mrf.mxu1  ;;  %v5139_v61 = vld [vmem:[%s6586_s12 + $0x2c] ss:$16 sps:$4 sm:$0xff]  }
 0x4a2   :  { %v5134_v62 = vld [vmem:[%s6586_s12 + $0x20] ss:$16 sps:$4 sm:$0xff]  }
 0x4a3   :  { %v1077_v1 = vpop.f32.mrf.mxu1  ;;  %1506 = vmatpush1.bf16.msra.mxu1 %v5134_v62  ;;  %v1902_v62 = vld [vmem:[#allocation8 + $0x30] sm:$0xff] }
 0x4a4   :  { %v1084_v10 = vadd.f32 %v1077_v1, %v1023_v7  ;;  %v5137_v1 = vld [vmem:[%s6586_s12 + $0x28] ss:$16 sps:$4 sm:$0xff]   ;;  %v5145_v7 = vld [vmem:[%s6586_s12 + $0xc] ss:$16 sps:$4 sm:$0xff]  }
 0x4a5   :  { %v4744_v2 = vpop.f32.mrf.mxu1 }
 0x4a6   :  { %v5140_v2 = vld [vmem:[%s6586_s12] ss:$16 sps:$4 sm:$0xff]  }
 0x4a7   :  { %v1080_v4 = vpop.f32.mrf.mxu1 }
 0x4a8   :  { %v1085_v13 = vadd.f32 %v1080_v4, %v1026_v9  ;;  %v5142_v4 = vld [vmem:[%s6586_s12 + $0x4] ss:$16 sps:$4 sm:$0xff]  }
 0x4a9   :  { %v4745_v5 = vpop.f32.mrf.mxu1  ;;  %1507 = vmatprep.subr.bf16.mxu1 %v5142_v4  ;;  %v1899_v4 = vld [vmem:[#allocation8 + $0x18] sm:$0xff] }
 0x4aa   :  { %v5143_v5 = vld [vmem:[%s6586_s12 + $0x8] ss:$16 sps:$4 sm:$0xff]   ;;  %1508 = vmatpush1.bf16.msra.mxu1 %v5140_v2  ;;  %v1900_v2 = vld [vmem:[#allocation8 + $0x20] sm:$0xff] }
 0x4ab   :  { %v1134_v8 = vpop.f32.mrf.mxu1 }
 0x4ac   :  { %v5935_v14 = vadd.f32 %v1134_v8, %v1084_v10 }
 0x4ad   :  { %v4750_v12 = vpop.f32.mrf.mxu1 }
 0x4ae   :  { %v1151_v18 = vmul.f32 %v5935_v14, %v5935_v14 }
 0x4af   :  { %v1137_v15 = vpop.f32.mrf.mxu1 }
 0x4b0   :  { %v5937_v16 = vadd.f32 %v1137_v15, %v1085_v13 }
 0x4b1   :  { %v4751_v17 = vpop.f32.mrf.mxu1 }
 0x4b2   :  { %v1143_v19 = vadd.f32 %v5937_v16, %v5935_v14  ;;  %v1152_v20 = vmul.f32 %v5937_v16, %v5937_v16 }
 0x4b4   :  { %v1144_v63 = vrot.slane %v1143_v19, 4  ;;  %v1153_v21 = vadd.f32 %v1152_v20, %v1151_v18 }
 0x4b6   :  { %v1145_v22 = vadd.f32 %v1144_v63, %v1143_v19  ;;  %v1154_v23 = vrot.slane %v1153_v21, 4  ;;  %v1254_v63 = vld [vmem:[%s6583_s9] sm:$0x1] }
 0x4b8   :  { %v1146_v24 = vrot.slane %v1145_v22, 2  ;;  %v1155_v25 = vadd.f32 %v1154_v23, %v1153_v21 }
 0x4ba   :  { %v1147_v26 = vadd.f32 %v1146_v24, %v1145_v22  ;;  %v1156_v27 = vrot.slane %v1155_v25, 2 }
 0x4bc   :  { %v1148_v28 = vrot.slane %v1147_v26, 1  ;;  %v1157_v29 = vadd.f32 %v1156_v27, %v1155_v25  ;;  %v4206_v27 = vld [vmem:[%s6584_s10] ss:$0 sm:$0xff] }
 0x4be   :  { %v1149_v30 = vadd.f32 %v1148_v28, %v1147_v26  ;;  %v1158_v31 = vrot.slane %v1157_v29, 1 }
 0x4c0   :  { %v1159_v32 = vadd.f32 %v1158_v31, %v1157_v29  ;;  %v1150_v33 = vmul.f32 0.0625, %v1149_v30 }
 0x4c2   :  { %v1160_v34 = vmul.f32 0.0625, %v1159_v32 }
 0x4c4   :  { %v1161_v35 = vsel %vm303_vm3, %v1150_v33, %v1160_v34 }
 0x4c5   :  { %4785 = vmatmul.mubr.f32.vlgmr.msra.gmra.mxu0 %v1161_v35 }
 0x4c6   :  { %1568 = vmatprep.mubr.bf16.mxu0 %v5542_v0  ;;  %1537 = vmatpush1.bf16.msra.mxu0 %v5101_v39 }
 0x4c7   :  { %1538 = vmatprep.subr.bf16.mxu0 %v5109_v41 }
 0x4ca   :  { %1539 = vmatpush1.bf16.msra.mxu0 %v5107_v43 }
 0x4cb   :  { %1540 = vmatprep.subr.bf16.mxu0 %v5115_v45 }
 0x4ce   :  { %1541 = vmatpush1.bf16.msra.mxu0 %v5113_v47 }
 0x4cf   :  { %1542 = vmatprep.subr.bf16.mxu0 %v5121_v49 }
 0x4d2   :  { %1543 = vmatpush1.bf16.msra.mxu0 %v5119_v51  ;;  %v5152_v51 = vld [vmem:[%s6585_s11 + $0x30] sm:$0xff]  }
 0x4d3   :  { %1544 = vmatprep.subr.bf16.mxu0 %v5127_v53  ;;  %v1911_v53 = vld [vmem:[#allocation8 + $0x78] sm:$0xff] }
 0x4d6   :  { %1545 = vmatpush1.bf16.msra.mxu0 %v5125_v55  ;;  %v1909_v55 = vld [vmem:[#allocation8 + $0x68] sm:$0xff] }
 0x4d7   :  { %1546 = vmatprep.subr.bf16.mxu0 %v5133_v57  ;;  %v1907_v57 = vld [vmem:[#allocation8 + $0x58] sm:$0xff] }
 0x4da   :  { %1547 = vmatpush1.bf16.msra.mxu0 %v5131_v59  ;;  %v1905_v59 = vld [vmem:[#allocation8 + $0x48] sm:$0xff] }
 0x4db   :  { %1548 = vmatprep.subr.bf16.mxu0 %v5139_v61  ;;  %v1903_v61 = vld [vmem:[#allocation8 + $0x38] sm:$0xff] }
 0x4de   :  { %1549 = vmatpush1.bf16.msra.mxu0 %v5137_v1  ;;  %v1901_v1 = vld [vmem:[#allocation8 + $0x28] sm:$0xff] }
 0x4df   :  { %1550 = vmatprep.subr.bf16.mxu0 %v5145_v7  ;;  %v1897_v7 = vld [vmem:[#allocation8 + $0x8] sm:$0xff] }
 0x4e2   :  { %1551 = vmatpush1.bf16.msra.mxu0 %v5143_v5  ;;  %v1898_v5 = vld [vmem:[#allocation8 + $0x10] sm:$0xff] }
 0x4e3   :  { %4811 = vmatprep.subr.mxu0 %v5543_v11 }
 0x585   :  { %v1244_v8 = vpop.f32.mrf.mxu0 }
 0x586   :  { %v1248_v9 = vmul.f32 %v1244_v8, %v1244_v8  ;;  %v1278_v22 = vrot.slane %v1244_v8, %v5874_v6 }
 0x587   :  { %v4786_v10 = vpop.f32.mrf.mxu0 }
 0x588   :  { %v1250_v12 = vrot.slane %v1248_v9, 7  ;;  %v1279_v24 = vsub.f32 %v5935_v14, %v1278_v22  ;;  %v1280_v25 = vsub.f32 %v5937_v16, %v1278_v22  ;;  %v5146_v14 = vld [vmem:[%s6585_s11 + $0x10] sm:$0xff]  }
 0x58a   :  { %v1252_v13 = vsub.f32 %v1244_v8, %v1250_v12  ;;  %v1896_v8 = vld [vmem:[#allocation8] sm:$0xff] }
 0x58c   :  { %v1253_v15 = vmax.f32 %v1252_v13, 0.0 }
 0x58e   :  { %v1255_v17 = vadd.f32 1e-05, %v1253_v15 }
 0x590   :  { %5300 = vrsqrt.f32 %v1255_v17 }
 0x59d   :  { %v5301_v18 = vpop.eup %5300 }
 0x59e   :  { %v1264_v19 = vrot.slane %v5301_v18, %v5871_v3 }
 0x5a0   :  { %v1265_v20 = vcombine.high %v1264_v19, %v1264_v19 }
 0x5a2   :  { %v1272_v21 = vrot.slane %v1265_v20, %v5871_v3 }
 0x5a4   :  { %v1274_v23 = vmul.f32 %v1272_v21, %v1254_v63 }
 0x5a6   :  { %v1285_v26 = vrot.slane %v1274_v23, %v5874_v6 }
 0x5a8   :  { %v1287_v28 = vmul.f32 %v1285_v26, %v1279_v24  ;;  %v1288_v29 = vmul.f32 %v1285_v26, %v1280_v25 }
 0x5aa   :  { %v1296_v30 = vadd.f32 %v4206_v27, %v1287_v28  ;;  %v1297_v31 = vadd.f32 %v4206_v27, %v1288_v29 }
 0x5ac   :  { %v1298_v32 = vmax.f32 %v1296_v30, 0.0  ;;  %v1299_v33 = vmax.f32 %v1297_v31, 0.0 }
 0x5ae   :  { %v1300_v34 = vpack.c.bf16 %v1299_v33, %v1298_v32 }
 0x5b0   :  { %1526 = vmatmul.mubr.bf16.vlgmr.msra.gmra.mxu1 %v1300_v34  ;;  %1569 = vmatmul.mubr.bf16.vlgmr.msra.gmra.mxu0 %v1300_v34 }
 0x5b1   :  { %4843 = vmatprep.mubr.msk.f32.mxu0 %vm5544_vm2, %v5543_v11  ;;  %4789 = vmatprep.mubr.msk.bf16.mxu1 %vm1602_vm5, %v5146_v14 }
 0x5b2   :  { %4812 = vmatpush3.msra.mxu0 %v1911_v53 }
 0x5b3   :  { %4813 = vmatprep.subr.mxu0 %v5543_v11 }
 0x5b4   :  { %4814 = vmatpush3.msra.mxu0 %v1910_v54 }
 0x5b5   :  { %4815 = vmatprep.subr.mxu0 %v5543_v11 }
 0x5b6   :  { %4816 = vmatpush3.msra.mxu0 %v1909_v55 }
 0x5b7   :  { %4817 = vmatprep.subr.mxu0 %v5543_v11 }
 0x5b8   :  { %4818 = vmatpush3.msra.mxu0 %v1908_v56 }
 0x5b9   :  { %4819 = vmatprep.subr.mxu0 %v5543_v11 }
 0x5ba   :  { %4820 = vmatpush3.msra.mxu0 %v1907_v57 }
 0x5bb   :  { %4821 = vmatprep.subr.mxu0 %v5543_v11 }
 0x5bc   :  { %4822 = vmatpush3.msra.mxu0 %v1906_v58 }
 0x5bd   :  { %4823 = vmatprep.subr.mxu0 %v5543_v11 }
 0x5be   :  { %4824 = vmatpush3.msra.mxu0 %v1905_v59 }
 0x5bf   :  { %4825 = vmatprep.subr.mxu0 %v5543_v11 }
 0x5c0   :  { %4826 = vmatpush3.msra.mxu0 %v1904_v60 }
 0x5c1   :  { %4827 = vmatprep.subr.mxu0 %v5543_v11 }
 0x5c2   :  { %4828 = vmatpush3.msra.mxu0 %v1903_v61 }
 0x5c3   :  { %4829 = vmatprep.subr.mxu0 %v5543_v11 }
 0x5c4   :  { %4830 = vmatpush3.msra.mxu0 %v1902_v62  ;;  %v5156_v62 = vld [vmem:[#allocation10 + $0xe4] ss:$16 sps:$4 sm:$0xff]  }
 0x5c5   :  { %4831 = vmatprep.subr.mxu0 %v5543_v11 }
 0x5c6   :  { %4832 = vmatpush3.msra.mxu0 %v1901_v1  ;;  %v5159_v1 = vld [vmem:[#allocation10 + $0xec] ss:$16 sps:$4 sm:$0xff]  }
 0x5c7   :  { %4833 = vmatprep.subr.mxu0 %v5543_v11 }
 0x5c8   :  { %4834 = vmatpush3.msra.mxu0 %v1900_v2  ;;  %v5154_v2 = vld [vmem:[#allocation10 + $0xe0] ss:$16 sps:$4 sm:$0xff]  }
 0x5c9   :  { %4835 = vmatprep.subr.mxu0 %v5543_v11 }
 0x5ca   :  { %4836 = vmatpush3.msra.mxu0 %v1899_v4  ;;  %v5157_v4 = vld [vmem:[#allocation10 + $0xe8] ss:$16 sps:$4 sm:$0xff]  }
 0x5cb   :  { %4837 = vmatprep.subr.mxu0 %v5543_v11 }
 0x5cc   :  { %4838 = vmatpush3.msra.mxu0 %v1898_v5  ;;  %v5162_v5 = vld [vmem:[#allocation10 + $0xc4] ss:$16 sps:$4 sm:$0xff]  }
 0x5cd   :  { %4839 = vmatprep.subr.mxu0 %v5543_v11 }
 0x5ce   :  { %4840 = vmatpush3.msra.mxu0 %v1897_v7  ;;  %v5165_v7 = vld [vmem:[#allocation10 + $0xcc] ss:$16 sps:$4 sm:$0xff]  }
 0x5cf   :  { %4841 = vmatprep.subr.mxu0 %v5543_v11 }
 0x5d0   :  { %4842 = vmatpush3.msra.mxu0 %v1896_v8  ;;  %v5160_v8 = vld [vmem:[#allocation10 + $0xc0] ss:$16 sps:$4 sm:$0xff]  }
 0x5d1   :  { %2289 = vmatprep.subr.bf16.mxu0 %v5159_v1 }
 0x670   :  { %v1527_v16 = vpop.f32.mrf.mxu1  ;;  %v1570_v35 = vpop.f32.mrf.mxu0 }
 0x672   :  { %v1529_v36 = vpop.f32.mrf.mxu1  ;;  %v1572_v38 = vpop.f32.mrf.mxu0 }
 0x674   :  { %v1531_v37 = vpop.f32.mrf.mxu1  ;;  %v1574_v43 = vpop.f32.mrf.mxu0 }
 0x675   :  { %v1579_v41 = vpack.c.bf16 %v1531_v37, %v1527_v16  ;;  %v1581_v45 = vpack.c.bf16 %v1574_v43, %v1570_v35 }
 0x676   :  { %v1533_v39 = vpop.f32.mrf.mxu1  ;;  %v1576_v47 = vpop.f32.mrf.mxu0 }
 0x677   :  { %v1580_v40 = vpack.c.bf16 %v1533_v39, %v1529_v36  ;;  %v1582_v49 = vpack.c.bf16 %v1576_v47, %v1572_v38 }
 0x679   :  { %4787 = vmatprep.subr.bf16.mxu1 %v1580_v40 }
 0x67a   :  { %4788 = vmatpush3.bf16.msra.mxu1 %v1580_v40 }
 0x67b   :  { %4793 = vmatprep.subr.bf16.mxu1 %v1579_v41 }
 0x67d   :  { %4790 = vmatmul.mubr.msk.bf16.vlgmr.msra.gmra.mxu1 %vm1602_vm5, %v5147_v42 }
 0x67e   :  { %4794 = vmatpush3.bf16.msra.mxu1 %v1579_v41  ;;  %4795 = vmatprep.mubr.msk.bf16.mxu1 %vm1602_vm5, %v5148_v44 }
 0x67f   :  { %4799 = vmatprep.subr.bf16.mxu1 %v1581_v45 }
 0x685   :  { %4796 = vmatmul.mubr.msk.bf16.vlgmr.msra.gmra.mxu1 %vm1602_vm5, %v5149_v46 }
 0x686   :  { %4800 = vmatpush3.bf16.msra.mxu1 %v1581_v45  ;;  %4801 = vmatprep.mubr.msk.bf16.mxu1 %vm1602_vm5, %v5150_v48 }
 0x687   :  { %4805 = vmatprep.subr.bf16.mxu1 %v1582_v49 }
 0x68d   :  { %4802 = vmatmul.mubr.msk.bf16.vlgmr.msra.gmra.mxu1 %vm1602_vm5, %v5151_v50 }
 0x68e   :  { %4806 = vmatpush3.bf16.msra.mxu1 %v1582_v49  ;;  %4807 = vmatprep.mubr.msk.bf16.mxu1 %vm1602_vm5, %v5152_v51 }
 0x68f   :  { %2236 = vmatprep.subr.bf16.mxu1 %v5156_v62 }
 0x695   :  { %4808 = vmatmul.mubr.msk.bf16.vlgmr.msra.gmra.mxu1 %vm1602_vm5, %v5153_v52 }
 0x696   :  { %2268 = vmatprep.mubr.bf16.mxu1 %v5542_v0  ;;  %2237 = vmatpush1.bf16.msra.mxu1 %v5154_v2 }
 0x697   :  { %2238 = vmatprep.subr.bf16.mxu1 %v5162_v5 }
 0x69a   :  { %2239 = vmatpush1.bf16.msra.mxu1 %v5160_v8 }
 0x73d   :  { %v4791_v9 = vpop.f32.mrf.mxu1 }
 0x73f   :  { %v1643_v10 = vpop.f32.mrf.mxu1 }
 0x741   :  { %v4792_v12 = vpop.f32.mrf.mxu1 }
 0x743   :  { %v1646_v13 = vpop.f32.mrf.mxu1 }
 0x745   :  { %v4797_v15 = vpop.f32.mrf.mxu1 }
 0x746   :  { %v1717_v26 = vadd.f32 %v4797_v15, %v4791_v9  ;;  %v5163_v9 = vld [vmem:[#allocation10 + $0xc8] ss:$16 sps:$4 sm:$0xff]  }
 0x747   :  { %v1708_v17 = vpop.f32.mrf.mxu1  ;;  %v5169_v15 = vld [vmem:[#allocation10 + $0xa8] ss:$16 sps:$4 sm:$0xff]  }
 0x748   :  { %v1709_v24 = vadd.f32 %v1708_v17, %v1643_v10  ;;  %v5168_v10 = vld [vmem:[#allocation10 + $0xa4] ss:$16 sps:$4 sm:$0xff]  }
 0x749   :  { %v4798_v18 = vpop.f32.mrf.mxu1  ;;  %2240 = vmatprep.subr.bf16.mxu1 %v5168_v10  ;;  %v5174_v17 = vld [vmem:[#allocation10 + $0x84] ss:$16 sps:$4 sm:$0xff]  }
 0x74a   :  { %v1720_v30 = vadd.f32 %v4798_v18, %v4792_v12  ;;  %v5171_v12 = vld [vmem:[#allocation10 + $0xac] ss:$16 sps:$4 sm:$0xff]  }
 0x74b   :  { %v1711_v19 = vpop.f32.mrf.mxu1  ;;  %v5177_v18 = vld [vmem:[#allocation10 + $0x8c] ss:$16 sps:$4 sm:$0xff]  }
 0x74c   :  { %v1712_v27 = vadd.f32 %v1711_v19, %v1646_v13  ;;  %v5166_v13 = vld [vmem:[#allocation10 + $0xa0] ss:$16 sps:$4 sm:$0xff]  }
 0x74d   :  { %v4803_v20 = vpop.f32.mrf.mxu1  ;;  %2241 = vmatpush1.bf16.msra.mxu1 %v5166_v13  ;;  %v5172_v19 = vld [vmem:[#allocation10 + $0x80] ss:$16 sps:$4 sm:$0xff]  }
 0x74e   :  { %v1795_v31 = vadd.f32 %v4803_v20, %v1717_v26  ;;  %v5175_v20 = vld [vmem:[#allocation10 + $0x88] ss:$16 sps:$4 sm:$0xff]   ;;  %2242 = vmatprep.subr.bf16.mxu1 %v5174_v17 }
 0x74f   :  { %v1778_v63 = vpop.f32.mrf.mxu1  ;;  %v5187_v26 = vld [vmem:[#allocation10 + $0x48] ss:$16 sps:$4 sm:$0xff]  }
 0x750   :  { %v1793_v28 = vadd.f32 %v1778_v63, %v1709_v24  ;;  %v5180_v63 = vld [vmem:[#allocation10 + $0x64] ss:$16 sps:$4 sm:$0xff]   ;;  %v5184_v24 = vld [vmem:[#allocation10 + $0x40] ss:$16 sps:$4 sm:$0xff]  }
 0x751   :  { %v4804_v21 = vpop.f32.mrf.mxu1  ;;  %2243 = vmatpush1.bf16.msra.mxu1 %v5172_v19 }
 0x752   :  { %v1796_v14 = vadd.f32 %v4804_v21, %v1720_v30  ;;  %v5183_v21 = vld [vmem:[#allocation10 + $0x6c] ss:$16 sps:$4 sm:$0xff]   ;;  %2244 = vmatprep.subr.bf16.mxu1 %v5180_v63  ;;  %v5190_v30 = vld [vmem:[#allocation10 + $0x20] ss:$16 sps:$4 sm:$0xff]  }
 0x753   :  { %v1781_v22 = vpop.f32.mrf.mxu1 }
 0x754   :  { %v1794_v32 = vadd.f32 %v1781_v22, %v1712_v27  ;;  %v5178_v22 = vld [vmem:[#allocation10 + $0x60] ss:$16 sps:$4 sm:$0xff]   ;;  %v5189_v27 = vld [vmem:[#allocation10 + $0x4c] ss:$16 sps:$4 sm:$0xff]  }
 0x755   :  { %v4809_v23 = vpop.f32.mrf.mxu1  ;;  %2245 = vmatpush1.bf16.msra.mxu1 %v5178_v22 }
 0x756   :  { %v6108_v16 = vadd.f32 %v4809_v23, %v1795_v31  ;;  %v5181_v23 = vld [vmem:[#allocation10 + $0x68] ss:$16 sps:$4 sm:$0xff]  }
 0x757   :  { %v1852_v25 = vpop.f32.mrf.mxu1  ;;  %v5193_v31 = vld [vmem:[#allocation10 + $0x28] ss:$16 sps:$4 sm:$0xff]  }
 0x758   :  { %v6106_v33 = vadd.f32 %v1852_v25, %v1793_v28  ;;  %v1883_v40 = vmul.f32 %v6108_v16, %v6108_v16  ;;  %v5186_v25 = vld [vmem:[#allocation10 + $0x44] ss:$16 sps:$4 sm:$0xff]  }
 0x759   :  { %v4810_v29 = vpop.f32.mrf.mxu1  ;;  %v5192_v28 = vld [vmem:[#allocation10 + $0x24] ss:$16 sps:$4 sm:$0xff]   ;;  %2246 = vmatprep.subr.bf16.mxu1 %v5186_v25 }
 0x75a   :  { %v1881_v36 = vmul.f32 %v6106_v33, %v6106_v33  ;;  %v6114_v37 = vadd.f32 %v4810_v29, %v1796_v14  ;;  %v5195_v29 = vld [vmem:[#allocation10 + $0x2c] ss:$16 sps:$4 sm:$0xff]   ;;  %2247 = vmatpush1.bf16.msra.mxu1 %v5184_v24  ;;  %v5196_v14 = vld [vmem:[#allocation10] ss:$16 sps:$4 sm:$0xff]  }
 0x75b   :  { %v1855_v34 = vpop.f32.mrf.mxu1  ;;  %2248 = vmatprep.subr.bf16.mxu1 %v5192_v28 }
 0x75c   :  { %v6110_v35 = vadd.f32 %v1855_v34, %v1794_v32  ;;  %v1884_v43 = vmul.f32 %v6114_v37, %v6114_v37  ;;  %v5198_v32 = vld [vmem:[#allocation10 + $0x4] ss:$16 sps:$4 sm:$0xff]   ;;  %v5201_v34 = vld [vmem:[#allocation10 + $0xc] ss:$16 sps:$4 sm:$0xff]  }
 0x75e   :  { %v1871_v38 = vadd.f32 %v6110_v35, %v6106_v33  ;;  %v1882_v39 = vmul.f32 %v6110_v35, %v6110_v35  ;;  %2249 = vmatpush1.bf16.msra.mxu1 %v5190_v30 }
 0x75f   :  { %2250 = vmatprep.subr.bf16.mxu1 %v5198_v32 }
 0x760   :  { %v1872_v41 = vadd.f32 %v1871_v38, %v6108_v16  ;;  %v1885_v42 = vadd.f32 %v1882_v39, %v1881_v36  ;;  %v5199_v36 = vld [vmem:[#allocation10 + $0x8] ss:$16 sps:$4 sm:$0xff]  }
 0x762   :  { %v1873_v44 = vadd.f32 %v1872_v41, %v6114_v37  ;;  %v1886_v45 = vadd.f32 %v1885_v42, %v1883_v40  ;;  %2251 = vmatpush1.bf16.msra.mxu1 %v5196_v14  ;;  %v5206_v14 = vld [vmem:[%s6590_s16] sm:$0xff]  }
 0x764   :  { %v1874_v46 = vrot.slane %v1873_v44, 4  ;;  %v1887_v47 = vadd.f32 %v1886_v45, %v1884_v43 }
 0x766   :  { %v1875_v48 = vadd.f32 %v1874_v46, %v1873_v44  ;;  %v1888_v49 = vrot.slane %v1887_v47, 4 }
 0x768   :  { %v1876_v50 = vrot.slane %v1875_v48, 2  ;;  %v1889_v51 = vadd.f32 %v1888_v49, %v1887_v47 }
 0x76a   :  { %v1877_v52 = vadd.f32 %v1876_v50, %v1875_v48  ;;  %v1890_v53 = vrot.slane %v1889_v51, 2  ;;  %v1988_v48 = vld [vmem:[%s6588_s14] sm:$0x1] }
 0x76c   :  { %v1878_v54 = vrot.slane %v1877_v52, 1  ;;  %v1891_v55 = vadd.f32 %v1890_v53, %v1889_v51 }
 0x76e   :  { %v1879_v56 = vadd.f32 %v1878_v54, %v1877_v52  ;;  %v1892_v57 = vrot.slane %v1891_v55, 1 }
 0x770   :  { %v1893_v58 = vadd.f32 %v1892_v57, %v1891_v55  ;;  %v1880_v59 = vmul.f32 0.03125, %v1879_v56  ;;  %v4267_v55 = vld [vmem:[%s6589_s15] ss:$0 sm:$0xff] }
 0x772   :  { %v1894_v60 = vmul.f32 0.03125, %v1893_v58 }
 0x774   :  { %v1895_v61 = vsel %vm303_vm3, %v1880_v59, %v1894_v60 }
 0x775   :  { %4844 = vmatmul.mubr.f32.vlgmr.msra.gmra.mxu0 %v1895_v61 }
 0x776   :  { %2321 = vmatprep.mubr.bf16.mxu0 %v5542_v0  ;;  %2290 = vmatpush1.bf16.msra.mxu0 %v5157_v4 }
 0x777   :  { %2291 = vmatprep.subr.bf16.mxu0 %v5165_v7 }
 0x77a   :  { %2292 = vmatpush1.bf16.msra.mxu0 %v5163_v9 }
 0x77b   :  { %2293 = vmatprep.subr.bf16.mxu0 %v5171_v12 }
 0x77e   :  { %2294 = vmatpush1.bf16.msra.mxu0 %v5169_v15 }
 0x77f   :  { %2295 = vmatprep.subr.bf16.mxu0 %v5177_v18 }
 0x782   :  { %2296 = vmatpush1.bf16.msra.mxu0 %v5175_v20 }
 0x783   :  { %2297 = vmatprep.subr.bf16.mxu0 %v5183_v21 }
 0x786   :  { %2298 = vmatpush1.bf16.msra.mxu0 %v5181_v23 }
 0x787   :  { %2299 = vmatprep.subr.bf16.mxu0 %v5189_v27  ;;  %v5203_v27 = vld [vmem:[%s6590_s16 + $0x28] sm:$0xff]  }
 0x78a   :  { %2300 = vmatpush1.bf16.msra.mxu0 %v5187_v26 }
 0x78b   :  { %2301 = vmatprep.subr.bf16.mxu0 %v5195_v29  ;;  %v5204_v29 = vld [vmem:[%s6590_s16 + $0x30] sm:$0xff]  }
 0x78e   :  { %2302 = vmatpush1.bf16.msra.mxu0 %v5193_v31 }
 0x78f   :  { %2303 = vmatprep.subr.bf16.mxu0 %v5201_v34  ;;  %v5205_v34 = vld [vmem:[%s6590_s16 + $0x38] sm:$0xff]  }
 0x792   :  { %2304 = vmatpush1.bf16.msra.mxu0 %v5199_v36  ;;  %v5207_v36 = vld [vmem:[%s6590_s16 + $0x8] sm:$0xff]  }
 0x793   :  { %4894 = vmatprep.subr.mxu0 %v5543_v11 }
 0x835   :  { %v1978_v38 = vpop.f32.mrf.mxu0 }
 0x836   :  { %v1982_v39 = vmul.f32 %v1978_v38, %v1978_v38  ;;  %v2012_v50 = vrot.slane %v1978_v38, %v5874_v6 }
 0x837   :  { %v4845_v40 = vpop.f32.mrf.mxu0 }
 0x838   :  { %v1984_v41 = vrot.slane %v1982_v39, 7  ;;  %v2013_v52 = vsub.f32 %v6106_v33, %v2012_v50  ;;  %v2014_v53 = vsub.f32 %v6110_v35, %v2012_v50  ;;  %v2015_v58 = vsub.f32 %v6108_v16, %v2012_v50 }
 0x839   :  { %v2016_v59 = vsub.f32 %v6114_v37, %v2012_v50  ;;  %v5202_v37 = vld [vmem:[%s6590_s16 + $0x20] sm:$0xff]   ;;  %v5216_v50 = vld [vmem:[%s6590_s16 + $0x70] sm:$0xff]  }
 0x83a   :  { %v1986_v42 = vsub.f32 %v1978_v38, %v1984_v41  ;;  %v5208_v38 = vld [vmem:[%s6590_s16 + $0x10] sm:$0xff]  }
 0x83c   :  { %v1987_v43 = vmax.f32 %v1986_v42, 0.0  ;;  %v5209_v42 = vld [vmem:[%s6590_s16 + $0x18] sm:$0xff]  }
 0x83e   :  { %v1989_v44 = vadd.f32 1e-05, %v1987_v43  ;;  %v5210_v43 = vld [vmem:[%s6590_s16 + $0x40] sm:$0xff]  }
 0x840   :  { %5302 = vrsqrt.f32 %v1989_v44  ;;  %v5211_v44 = vld [vmem:[%s6590_s16 + $0x48] sm:$0xff]  }
 0x84d   :  { %v5303_v45 = vpop.eup %5302 }
 0x84e   :  { %v1998_v46 = vrot.slane %v5303_v45, %v5871_v3  ;;  %v5212_v45 = vld [vmem:[%s6590_s16 + $0x50] sm:$0xff]  }
 0x850   :  { %v1999_v47 = vcombine.high %v1998_v46, %v1998_v46 }
 0x852   :  { %v2006_v49 = vrot.slane %v1999_v47, %v5871_v3  ;;  %v5213_v47 = vld [vmem:[%s6590_s16 + $0x58] sm:$0xff]  }
 0x854   :  { %v2008_v51 = vmul.f32 %v2006_v49, %v1988_v48  ;;  %v5214_v48 = vld [vmem:[%s6590_s16 + $0x60] sm:$0xff]   ;;  %v5215_v49 = vld [vmem:[%s6590_s16 + $0x68] sm:$0xff]  }
 0x856   :  { %v2021_v54 = vrot.slane %v2008_v51, %v5874_v6  ;;  %v5217_v51 = vld [vmem:[%s6590_s16 + $0x78] sm:$0xff]  }
 0x858   :  { %v2023_v56 = vmul.f32 %v2021_v54, %v2013_v52  ;;  %v2024_v57 = vmul.f32 %v2021_v54, %v2014_v53  ;;  %v2025_v62 = vmul.f32 %v2021_v54, %v2015_v58  ;;  %v2026_v1 = vmul.f32 %v2021_v54, %v2016_v59  ;;  %v2842_v52 = vld [vmem:[#allocation11 + $0x78] sm:$0xff]  ;;  %v2841_v53 = vld [vmem:[#allocation11 + $0x70] sm:$0xff]  ;;  %v2840_v54 = vld [vmem:[#allocation11 + $0x68] sm:$0xff] }
 0x859   :  { %v2836_v58 = vld [vmem:[#allocation11 + $0x48] sm:$0xff]  ;;  %v2835_v59 = vld [vmem:[#allocation11 + $0x40] sm:$0xff] }
 0x85a   :  { %v2034_v60 = vadd.f32 %v4267_v55, %v2023_v56  ;;  %v2035_v61 = vadd.f32 %v4267_v55, %v2024_v57  ;;  %v2036_v35 = vadd.f32 %v4267_v55, %v2025_v62  ;;  %v2037_v5 = vadd.f32 %v4267_v55, %v2026_v1  ;;  %v2839_v55 = vld [vmem:[#allocation11 + $0x60] sm:$0xff]  ;;  %v2838_v56 = vld [vmem:[#allocation11 + $0x58] sm:$0xff]  ;;  %v2837_v57 = vld [vmem:[#allocation11 + $0x50] sm:$0xff] }
 0x85b   :  { %v2832_v62 = vld [vmem:[#allocation11 + $0x28] sm:$0xff]  ;;  %v2831_v1 = vld [vmem:[#allocation11 + $0x20] sm:$0xff] }
 0x85c   :  { %v2038_v2 = vmax.f32 %v2034_v60, 0.0  ;;  %v2039_v33 = vmax.f32 %v2035_v61, 0.0  ;;  %v2040_v7 = vmax.f32 %v2036_v35, 0.0  ;;  %v2041_v8 = vmax.f32 %v2037_v5, 0.0  ;;  %v2834_v60 = vld [vmem:[#allocation11 + $0x38] sm:$0xff]  ;;  %v2833_v61 = vld [vmem:[#allocation11 + $0x30] sm:$0xff] }
 0x85d   :  { %v2827_v35 = vld [vmem:[#allocation11] sm:$0xff] }
 0x85e   :  { %v2042_v4 = vpack.c.bf16 %v2039_v33, %v2038_v2  ;;  %v2043_v16 = vpack.c.bf16 %v2041_v8, %v2040_v7  ;;  %v2830_v2 = vld [vmem:[#allocation11 + $0x18] sm:$0xff]  ;;  %v2829_v33 = vld [vmem:[#allocation11 + $0x10] sm:$0xff] }
 0x860   :  { %2269 = vmatmul.mubr.bf16.vlgmr.msra.gmra.mxu1 %v2042_v4  ;;  %2322 = vmatmul.mubr.bf16.vlgmr.msra.gmra.mxu0 %v2042_v4  ;;  %v2828_v4 = vld [vmem:[#allocation11 + $0x8] sm:$0xff] }
 0x861   :  { %2278 = vmatprep.mubr.bf16.mxu1 %v5542_v0  ;;  %2331 = vmatprep.mubr.bf16.mxu0 %v5542_v0 }
 0x862   :  { %4895 = vmatpush3.msra.mxu0 %v2842_v52 }
 0x863   :  { %4896 = vmatprep.subr.mxu0 %v5543_v11 }
 0x864   :  { %4897 = vmatpush3.msra.mxu0 %v2841_v53 }
 0x865   :  { %4898 = vmatprep.subr.mxu0 %v5543_v11 }
 0x866   :  { %4899 = vmatpush3.msra.mxu0 %v2840_v54 }
 0x867   :  { %4900 = vmatprep.subr.mxu0 %v5543_v11 }
 0x868   :  { %2279 = vmatmul.mubr.bf16.gmra.mxu1 %v2043_v16  ;;  %2332 = vmatmul.mubr.bf16.gmra.mxu0 %v2043_v16 }
 0x869   :  { %4926 = vmatprep.mubr.msk.f32.mxu0 %vm5544_vm2, %v5543_v11  ;;  %4850 = vmatprep.mubr.msk.bf16.mxu1 %vm2387_vm6, %v5202_v37 }
 0x86a   :  { %4901 = vmatpush3.msra.mxu0 %v2839_v55 }
 0x86b   :  { %4902 = vmatprep.subr.mxu0 %v5543_v11 }
 0x86c   :  { %4903 = vmatpush3.msra.mxu0 %v2838_v56 }
 0x86d   :  { %4904 = vmatprep.subr.mxu0 %v5543_v11 }
 0x86e   :  { %4905 = vmatpush3.msra.mxu0 %v2837_v57 }
 0x86f   :  { %4906 = vmatprep.subr.mxu0 %v5543_v11 }
 0x870   :  { %4907 = vmatpush3.msra.mxu0 %v2836_v58 }
 0x871   :  { %4908 = vmatprep.subr.mxu0 %v5543_v11 }
 0x872   :  { %4909 = vmatpush3.msra.mxu0 %v2835_v59 }
 0x873   :  { %4910 = vmatprep.subr.mxu0 %v5543_v11 }
 0x874   :  { %4911 = vmatpush3.msra.mxu0 %v2834_v60 }
 0x875   :  { %4912 = vmatprep.subr.mxu0 %v5543_v11 }
 0x876   :  { %4913 = vmatpush3.msra.mxu0 %v2833_v61 }
 0x877   :  { %4914 = vmatprep.subr.mxu0 %v5543_v11 }
 0x878   :  { %4915 = vmatpush3.msra.mxu0 %v2832_v62 }
 0x879   :  { %4916 = vmatprep.subr.mxu0 %v5543_v11 }
 0x87a   :  { %4917 = vmatpush3.msra.mxu0 %v2831_v1 }
 0x87b   :  { %4918 = vmatprep.subr.mxu0 %v5543_v11 }
 0x87c   :  { %4919 = vmatpush3.msra.mxu0 %v2830_v2 }
 0x87d   :  { %4920 = vmatprep.subr.mxu0 %v5543_v11 }
 0x87e   :  { %4921 = vmatpush3.msra.mxu0 %v2829_v33 }
 0x87f   :  { %4922 = vmatprep.subr.mxu0 %v5543_v11 }
 0x880   :  { %4923 = vmatpush3.msra.mxu0 %v2828_v4 }
 0x881   :  { %4924 = vmatprep.subr.mxu0 %v5543_v11 }
 0x882   :  { %4925 = vmatpush3.msra.mxu0 %v2827_v35 }
 0x920   :  { %v2270_v9 = vpop.f32.mrf.mxu1  ;;  %v2323_v10 = vpop.f32.mrf.mxu0 }
 0x922   :  { %v2272_v12 = vpop.f32.mrf.mxu1  ;;  %v2325_v15 = vpop.f32.mrf.mxu0 }
 0x924   :  { %v2274_v13 = vpop.f32.mrf.mxu1  ;;  %v2327_v19 = vpop.f32.mrf.mxu0 }
 0x925   :  { %v2342_v30 = vpack.c.bf16 %v2274_v13, %v2270_v9  ;;  %v2344_v39 = vpack.c.bf16 %v2327_v19, %v2323_v10 }
 0x926   :  { %v2276_v17 = vpop.f32.mrf.mxu1  ;;  %v2329_v21 = vpop.f32.mrf.mxu0 }
 0x927   :  { %v2343_v24 = vpack.c.bf16 %v2276_v17, %v2272_v12  ;;  %v2345_v46 = vpack.c.bf16 %v2329_v21, %v2325_v15 }
 0x928   :  { %v2280_v18 = vpop.f32.mrf.mxu1  ;;  %v2333_v25 = vpop.f32.mrf.mxu0 }
 0x92a   :  { %v2282_v20 = vpop.f32.mrf.mxu1  ;;  %v2335_v28 = vpop.f32.mrf.mxu0 }
 0x92c   :  { %v2284_v63 = vpop.f32.mrf.mxu1  ;;  %v2337_v31 = vpop.f32.mrf.mxu0 }
 0x92d   :  { %v2346_v26 = vpack.c.bf16 %v2284_v63, %v2280_v18  ;;  %v2348_v32 = vpack.c.bf16 %v2337_v31, %v2333_v25 }
 0x92e   :  { %v2286_v22 = vpop.f32.mrf.mxu1  ;;  %v2339_v40 = vpop.f32.mrf.mxu0 }
 0x92f   :  { %v2347_v23 = vpack.c.bf16 %v2286_v22, %v2282_v20  ;;  %v2349_v41 = vpack.c.bf16 %v2339_v40, %v2335_v28 }
 0x931   :  { %4846 = vmatprep.subr.bf16.mxu1 %v2347_v23 }
 0x932   :  { %4847 = vmatpush3.bf16.msra.mxu1 %v2347_v23 }
 0x933   :  { %4848 = vmatprep.subr.bf16.mxu1 %v2343_v24 }
 0x936   :  { %4849 = vmatpush3.bf16.msra.mxu1 %v2343_v24 }
 0x937   :  { %4858 = vmatprep.subr.bf16.mxu1 %v2346_v26 }
 0x939   :  { %4851 = vmatmul.mubr.msk.bf16.vlgmr.msra.gmra.mxu1 %vm2387_vm6, %v5203_v27 }
 0x93a   :  { %4859 = vmatpush3.bf16.msra.mxu1 %v2346_v26  ;;  %4854 = vmatprep.mubr.msk.bf16.mxu1 %vm2387_vm6, %v5204_v29 }
 0x93b   :  { %4860 = vmatprep.subr.bf16.mxu1 %v2342_v30 }
 0x93e   :  { %4861 = vmatpush3.bf16.msra.mxu1 %v2342_v30 }
 0x93f   :  { %4870 = vmatprep.subr.bf16.mxu1 %v2348_v32 }
 0x941   :  { %4855 = vmatmul.mubr.msk.bf16.gmra.mxu1 %vm2387_vm6, %v5205_v34 }
 0x942   :  { %4862 = vmatprep.mubr.msk.bf16.mxu1 %vm2387_vm6, %v5206_v14 }
 0x949   :  { %4863 = vmatmul.mubr.msk.bf16.vlgmr.msra.gmra.mxu1 %vm2387_vm6, %v5207_v36 }
 0x94a   :  { %4871 = vmatpush3.bf16.msra.mxu1 %v2348_v32  ;;  %4866 = vmatprep.mubr.msk.bf16.mxu1 %vm2387_vm6, %v5208_v38 }
 0x94b   :  { %4872 = vmatprep.subr.bf16.mxu1 %v2344_v39 }
 0x94e   :  { %4873 = vmatpush3.bf16.msra.mxu1 %v2344_v39 }
 0x94f   :  { %4882 = vmatprep.subr.bf16.mxu1 %v2349_v41 }
 0x951   :  { %4867 = vmatmul.mubr.msk.bf16.gmra.mxu1 %vm2387_vm6, %v5209_v42 }
 0x952   :  { %4874 = vmatprep.mubr.msk.bf16.mxu1 %vm2387_vm6, %v5210_v43 }
 0x959   :  { %4875 = vmatmul.mubr.msk.bf16.vlgmr.msra.gmra.mxu1 %vm2387_vm6, %v5211_v44 }
 0x95a   :  { %4883 = vmatpush3.bf16.msra.mxu1 %v2349_v41  ;;  %4878 = vmatprep.mubr.msk.bf16.mxu1 %vm2387_vm6, %v5212_v45 }
 0x95b   :  { %4884 = vmatprep.subr.bf16.mxu1 %v2345_v46 }
 0x95e   :  { %4885 = vmatpush3.bf16.msra.mxu1 %v2345_v46 }
 0x961   :  { %4879 = vmatmul.mubr.msk.bf16.gmra.mxu1 %vm2387_vm6, %v5213_v47 }
 0x962   :  { %4886 = vmatprep.mubr.msk.bf16.mxu1 %vm2387_vm6, %v5214_v48 }
 0x969   :  { %4887 = vmatmul.mubr.msk.bf16.vlgmr.msra.gmra.mxu1 %vm2387_vm6, %v5215_v49 }
 0x96a   :  { %4890 = vmatprep.mubr.msk.bf16.mxu1 %vm2387_vm6, %v5216_v50 }
 0x971   :  { %4891 = vmatmul.mubr.msk.bf16.gmra.mxu1 %vm2387_vm6, %v5217_v51 }
 0x972   :  { %3217 = vmatprep.mubr.bf16.mxu1 %v5542_v0 }
 0x9f9   :  { %v4852_v5 = vpop.f32.mrf.mxu1 }
 0x9fb   :  { %v2434_v7 = vpop.f32.mrf.mxu1 }
 0x9fd   :  { %v4853_v8 = vpop.f32.mrf.mxu1 }
 0x9ff   :  { %v2437_v16 = vpop.f32.mrf.mxu1 }
 0xa01   :  { %v4856_v37 = vpop.f32.mrf.mxu1 }
 0xa03   :  { %v2450_v9 = vpop.f32.mrf.mxu1 }
 0xa05   :  { %v4857_v10 = vpop.f32.mrf.mxu1 }
 0xa07   :  { %v2453_v12 = vpop.f32.mrf.mxu1 }
 0xa09   :  { %v4864_v13 = vpop.f32.mrf.mxu1 }
 0xa0a   :  { %v2540_v32 = vadd.f32 %v4864_v13, %v4852_v5 }
 0xa0b   :  { %v2531_v15 = vpop.f32.mrf.mxu1 }
 0xa0c   :  { %v2532_v30 = vadd.f32 %v2531_v15, %v2434_v7 }
 0xa0d   :  { %v4865_v17 = vpop.f32.mrf.mxu1 }
 0xa0e   :  { %v2543_v38 = vadd.f32 %v4865_v17, %v4853_v8 }
 0xa0f   :  { %v2534_v18 = vpop.f32.mrf.mxu1 }
 0xa10   :  { %v2535_v34 = vadd.f32 %v2534_v18, %v2437_v16 }
 0xa11   :  { %v4868_v19 = vpop.f32.mrf.mxu1 }
 0xa12   :  { %v2556_v53 = vadd.f32 %v4868_v19, %v4856_v37 }
 0xa13   :  { %v2547_v20 = vpop.f32.mrf.mxu1 }
 0xa14   :  { %v2548_v42 = vadd.f32 %v2547_v20, %v2450_v9 }
 0xa15   :  { %v4869_v63 = vpop.f32.mrf.mxu1 }
 0xa16   :  { %v2559_v60 = vadd.f32 %v4869_v63, %v4857_v10 }
 0xa17   :  { %v2550_v21 = vpop.f32.mrf.mxu1 }
 0xa18   :  { %v2551_v54 = vadd.f32 %v2550_v21, %v2453_v12 }
 0xa19   :  { %v4876_v22 = vpop.f32.mrf.mxu1 }
 0xa1a   :  { %v2670_v39 = vadd.f32 %v4876_v22, %v2540_v32 }
 0xa1b   :  { %v2637_v23 = vpop.f32.mrf.mxu1 }
 0xa1c   :  { %v2668_v14 = vadd.f32 %v2637_v23, %v2532_v30 }
 0xa1d   :  { %v4877_v11 = vpop.f32.mrf.mxu1 }
 0xa1e   :  { %v2671_v44 = vadd.f32 %v4877_v11, %v2543_v38 }
 0xa1f   :  { %v2640_v24 = vpop.f32.mrf.mxu1 }
 0xa20   :  { %v2669_v40 = vadd.f32 %v2640_v24, %v2535_v34 }
 0xa21   :  { %v4880_v25 = vpop.f32.mrf.mxu1 }
 0xa22   :  { %v2674_v61 = vadd.f32 %v4880_v25, %v2556_v53  ;;  %v5230_v53 = vld [vmem:[%s6596_s22 + $0xa0] ss:$16 sps:$4 sm:$0xff]  }
 0xa23   :  { %v2653_v26 = vpop.f32.mrf.mxu1 }
 0xa24   :  { %v2672_v47 = vadd.f32 %v2653_v26, %v2548_v42  ;;  %v5218_v42 = vld [vmem:[%s6596_s22 + $0xe0] ss:$16 sps:$4 sm:$0xff]  }
 0xa25   :  { %v4881_v27 = vpop.f32.mrf.mxu1 }
 0xa26   :  { %v2675_v35 = vadd.f32 %v4881_v27, %v2559_v60  ;;  %v5244_v60 = vld [vmem:[%s6596_s22 + $0x64] ss:$16 sps:$4 sm:$0xff]  }
 0xa27   :  { %v2656_v28 = vpop.f32.mrf.mxu1 }
 0xa28   :  { %v2673_v1 = vadd.f32 %v2656_v28, %v2551_v54  ;;  %v5233_v54 = vld [vmem:[%s6596_s22 + $0xa8] ss:$16 sps:$4 sm:$0xff]  }
 0xa29   :  { %v4888_v29 = vpop.f32.mrf.mxu1 }
 0xa2a   :  { %v6229_v45 = vadd.f32 %v4888_v29, %v2670_v39  ;;  %v5220_v39 = vld [vmem:[%s6596_s22 + $0xe4] ss:$16 sps:$4 sm:$0xff]  }
 0xa2b   :  { %v2751_v31 = vpop.f32.mrf.mxu1  ;;  %3185 = vmatprep.subr.bf16.mxu1 %v5220_v39 }
 0xa2c   :  { %v6227_v41 = vadd.f32 %v2751_v31, %v2668_v14  ;;  %v2806_v56 = vmul.f32 %v6229_v45, %v6229_v45  ;;  %3186 = vmatpush1.bf16.msra.mxu1 %v5218_v42 }
 0xa2d   :  { %v4889_v36 = vpop.f32.mrf.mxu1 }
 0xa2e   :  { %v2804_v49 = vmul.f32 %v6227_v41, %v6227_v41  ;;  %v6235_v50 = vadd.f32 %v4889_v36, %v2671_v44  ;;  %v5226_v44 = vld [vmem:[%s6596_s22 + $0xc4] ss:$16 sps:$4 sm:$0xff]  }
 0xa2f   :  { %v2754_v43 = vpop.f32.mrf.mxu1  ;;  %3187 = vmatprep.subr.bf16.mxu1 %v5226_v44 }
 0xa30   :  { %v6231_v46 = vadd.f32 %v2754_v43, %v2669_v40  ;;  %v2807_v2 = vmul.f32 %v6235_v50, %v6235_v50  ;;  %v5223_v40 = vld [vmem:[%s6596_s22 + $0xec] ss:$16 sps:$4 sm:$0xff]   ;;  %v5221_v43 = vld [vmem:[%s6596_s22 + $0xe8] ss:$16 sps:$4 sm:$0xff]  }
 0xa31   :  { %v4892_v48 = vpop.f32.mrf.mxu1  ;;  %3258 = vmatprep.subr.bf16.mxu0 %v5223_v40 }
 0xa32   :  { %v2790_v51 = vadd.f32 %v6231_v46, %v6227_v41  ;;  %v2805_v52 = vmul.f32 %v6231_v46, %v6231_v46  ;;  %v6249_v5 = vadd.f32 %v4892_v48, %v2674_v61  ;;  %v5224_v48 = vld [vmem:[%s6596_s22 + $0xc0] ss:$16 sps:$4 sm:$0xff]   ;;  %v5247_v61 = vld [vmem:[%s6596_s22 + $0x6c] ss:$16 sps:$4 sm:$0xff]  }
 0xa33   :  { %v2767_v55 = vpop.f32.mrf.mxu1  ;;  %3188 = vmatpush1.bf16.msra.mxu1 %v5224_v48 }
 0xa34   :  { %v2791_v57 = vadd.f32 %v2790_v51, %v6229_v45  ;;  %v2812_v58 = vadd.f32 %v2805_v52, %v2804_v49  ;;  %v6244_v59 = vadd.f32 %v2767_v55, %v2672_v47  ;;  %v2810_v17 = vmul.f32 %v6249_v5, %v6249_v5  ;;  %v5229_v47 = vld [vmem:[%s6596_s22 + $0xcc] ss:$16 sps:$4 sm:$0xff]   ;;  %v5227_v49 = vld [vmem:[%s6596_s22 + $0xc8] ss:$16 sps:$4 sm:$0xff]   ;;  %v5232_v51 = vld [vmem:[%s6596_s22 + $0xa4] ss:$16 sps:$4 sm:$0xff]  }
 0xa35   :  { %v4893_v62 = vpop.f32.mrf.mxu1  ;;  %v5235_v52 = vld [vmem:[%s6596_s22 + $0xac] ss:$16 sps:$4 sm:$0xff]   ;;  %3189 = vmatprep.subr.bf16.mxu1 %v5232_v51  ;;  %v5238_v55 = vld [vmem:[%s6596_s22 + $0x84] ss:$16 sps:$4 sm:$0xff]  }
 0xa36   :  { %v2813_v33 = vadd.f32 %v2812_v58, %v2806_v56  ;;  %v2792_v4 = vadd.f32 %v2791_v57, %v6235_v50  ;;  %v2808_v16 = vmul.f32 %v6244_v59, %v6244_v59  ;;  %v6256_v12 = vadd.f32 %v4893_v62, %v2675_v35  ;;  %v5241_v56 = vld [vmem:[%s6596_s22 + $0x8c] ss:$16 sps:$4 sm:$0xff]   ;;  %v5236_v57 = vld [vmem:[%s6596_s22 + $0x80] ss:$16 sps:$4 sm:$0xff]   ;;  %v5239_v58 = vld [vmem:[%s6596_s22 + $0x88] ss:$16 sps:$4 sm:$0xff]  }
 0xa37   :  { %v2770_v7 = vpop.f32.mrf.mxu1  ;;  %3190 = vmatpush1.bf16.msra.mxu1 %v5230_v53  ;;  %v5242_v62 = vld [vmem:[%s6596_s22 + $0x60] ss:$16 sps:$4 sm:$0xff]   ;;  %v5251_v35 = vld [vmem:[%s6596_s22 + $0x48] ss:$16 sps:$4 sm:$0xff]  }
 0xa38   :  { %v2793_v8 = vadd.f32 %v2792_v4, %v6244_v59  ;;  %v2814_v37 = vadd.f32 %v2813_v33, %v2807_v2  ;;  %v6254_v9 = vadd.f32 %v2770_v7, %v2673_v1  ;;  %v2811_v20 = vmul.f32 %v6256_v12, %v6256_v12  ;;  %3191 = vmatprep.subr.bf16.mxu1 %v5238_v55  ;;  %v5245_v1 = vld [vmem:[%s6596_s22 + $0x68] ss:$16 sps:$4 sm:$0xff]   ;;  %v5250_v2 = vld [vmem:[%s6596_s22 + $0x44] ss:$16 sps:$4 sm:$0xff]   ;;  %v5253_v33 = vld [vmem:[%s6596_s22 + $0x4c] ss:$16 sps:$4 sm:$0xff]  }
 0xa39   :  { %v5248_v4 = vld [vmem:[%s6596_s22 + $0x40] ss:$16 sps:$4 sm:$0xff]  }
 0xa3a   :  { %v2815_v10 = vadd.f32 %v2814_v37, %v2808_v16  ;;  %v2794_v13 = vadd.f32 %v2793_v8, %v6254_v9  ;;  %v2809_v15 = vmul.f32 %v6254_v9, %v6254_v9  ;;  %v5254_v7 = vld [vmem:[%s6596_s22 + $0x20] ss:$16 sps:$4 sm:$0xff]   ;;  %v5256_v8 = vld [vmem:[%s6596_s22 + $0x24] ss:$16 sps:$4 sm:$0xff]   ;;  %v5257_v16 = vld [vmem:[%s6596_s22 + $0x28] ss:$16 sps:$4 sm:$0xff]  }
 0xa3b   :  { %3192 = vmatpush1.bf16.msra.mxu1 %v5236_v57  ;;  %v5259_v37 = vld [vmem:[%s6596_s22 + $0x2c] ss:$16 sps:$4 sm:$0xff]  }
 0xa3c   :  { %v2795_v18 = vadd.f32 %v2794_v13, %v6249_v5  ;;  %v2816_v19 = vadd.f32 %v2815_v10, %v2809_v15  ;;  %3193 = vmatprep.subr.bf16.mxu1 %v5244_v60  ;;  %v5262_v10 = vld [vmem:[%s6596_s22 + $0x4] ss:$16 sps:$4 sm:$0xff]   ;;  %v5265_v13 = vld [vmem:[%s6596_s22 + $0xc] ss:$16 sps:$4 sm:$0xff]   ;;  %v5260_v15 = vld [vmem:[%s6596_s22] ss:$16 sps:$4 sm:$0xff]  }
 0xa3e   :  { %v2796_v63 = vadd.f32 %v2795_v18, %v6256_v12  ;;  %v2817_v21 = vadd.f32 %v2816_v19, %v2810_v17  ;;  %v5263_v17 = vld [vmem:[%s6596_s22 + $0x8] ss:$16 sps:$4 sm:$0xff]  }
 0xa3f   :  { %3194 = vmatpush1.bf16.msra.mxu1 %v5242_v62 }
 0xa40   :  { %v2797_v22 = vrot.slane %v2796_v63, 4  ;;  %v2818_v23 = vadd.f32 %v2817_v21, %v2811_v20  ;;  %3195 = vmatprep.subr.bf16.mxu1 %v5250_v2 }
 0xa42   :  { %v2798_v11 = vadd.f32 %v2797_v22, %v2796_v63  ;;  %v2819_v24 = vrot.slane %v2818_v23, 4 }
 0xa43   :  { %3196 = vmatpush1.bf16.msra.mxu1 %v5248_v4  ;;  %v5267_v4 = vld [vmem:[%s6595_s21 + $0x40] sm:$0xff]  }
 0xa44   :  { %v2799_v25 = vrot.slane %v2798_v11, 2  ;;  %v2820_v26 = vadd.f32 %v2819_v24, %v2818_v23  ;;  %3197 = vmatprep.subr.bf16.mxu1 %v5256_v8 }
 0xa46   :  { %v2800_v27 = vadd.f32 %v2799_v25, %v2798_v11  ;;  %v2821_v28 = vrot.slane %v2820_v26, 2 }
 0xa47   :  { %3198 = vmatpush1.bf16.msra.mxu1 %v5254_v7 }
 0xa48   :  { %v2801_v29 = vrot.slane %v2800_v27, 1  ;;  %v2822_v30 = vadd.f32 %v2821_v28, %v2820_v26  ;;  %3199 = vmatprep.subr.bf16.mxu1 %v5262_v10  ;;  %v2919_v26 = vld [vmem:[#allocation13] sm:$0x1] }
 0xa4a   :  { %v2802_v31 = vadd.f32 %v2801_v29, %v2800_v27  ;;  %v2823_v32 = vrot.slane %v2822_v30, 1 }
 0xa4b   :  { %3200 = vmatpush1.bf16.msra.mxu1 %v5260_v15 }
 0xa4c   :  { %v2824_v34 = vadd.f32 %v2823_v32, %v2822_v30  ;;  %v2803_v14 = vmul.f32 0.015625, %v2802_v31 }
 0xa4e   :  { %v2825_v36 = vmul.f32 0.015625, %v2824_v34  ;;  %v4356_v34 = vld [vmem:[#allocation14] ss:$0 sm:$0xff] }
 0xa50   :  { %v2826_v38 = vsel %vm303_vm3, %v2803_v14, %v2825_v36 }
 0xa51   :  { %4927 = vmatmul.mubr.f32.vlgmr.msra.gmra.mxu0 %v2826_v38 }
 0xa52   :  { %3290 = vmatprep.mubr.bf16.mxu0 %v5542_v0  ;;  %3259 = vmatpush1.bf16.msra.mxu0 %v5221_v43 }
 0xa53   :  { %3260 = vmatprep.subr.bf16.mxu0 %v5229_v47 }
 0xa56   :  { %3261 = vmatpush1.bf16.msra.mxu0 %v5227_v49 }
 0xa57   :  { %3262 = vmatprep.subr.bf16.mxu0 %v5235_v52 }
 0xa5a   :  { %3263 = vmatpush1.bf16.msra.mxu0 %v5233_v54 }
 0xa5b   :  { %3264 = vmatprep.subr.bf16.mxu0 %v5241_v56 }
 0xa5e   :  { %3265 = vmatpush1.bf16.msra.mxu0 %v5239_v58 }
 0xa5f   :  { %3266 = vmatprep.subr.bf16.mxu0 %v5247_v61 }
 0xa62   :  { %3267 = vmatpush1.bf16.msra.mxu0 %v5245_v1 }
 0xa63   :  { %3268 = vmatprep.subr.bf16.mxu0 %v5253_v33  ;;  %v5266_v33 = vld [vmem:[%s6595_s21] sm:$0xff]  }
 0xa66   :  { %3269 = vmatpush1.bf16.msra.mxu0 %v5251_v35 }
 0xa67   :  { %3270 = vmatprep.subr.bf16.mxu0 %v5259_v37 }
 0xa6a   :  { %3271 = vmatpush1.bf16.msra.mxu0 %v5257_v16 }
 0xa6b   :  { %3272 = vmatprep.subr.bf16.mxu0 %v5265_v13 }
 0xa6e   :  { %3273 = vmatpush1.bf16.msra.mxu0 %v5263_v17 }
 0xb11   :  { %v2909_v18 = vpop.f32.mrf.mxu0 }
 0xb12   :  { %v2913_v19 = vmul.f32 %v2909_v18, %v2909_v18  ;;  %v2943_v28 = vrot.slane %v2909_v18, %v5874_v6 }
 0xb13   :  { %v4928_v20 = vpop.f32.mrf.mxu0 }
 0xb14   :  { %v2915_v63 = vrot.slane %v2913_v19, 7  ;;  %v2944_v31 = vsub.f32 %v6227_v41, %v2943_v28  ;;  %v2945_v32 = vsub.f32 %v6231_v46, %v2943_v28  ;;  %v2946_v38 = vsub.f32 %v6229_v45, %v2943_v28 }
 0xb15   :  { %v2947_v39 = vsub.f32 %v6235_v50, %v2943_v28  ;;  %v2948_v41 = vsub.f32 %v6244_v59, %v2943_v28  ;;  %v2949_v46 = vsub.f32 %v6254_v9, %v2943_v28  ;;  %v2950_v56 = vsub.f32 %v6249_v5, %v2943_v28 }
 0xb16   :  { %v2917_v21 = vsub.f32 %v2909_v18, %v2915_v63  ;;  %v2951_v57 = vsub.f32 %v6256_v12, %v2943_v28 }
 0xb18   :  { %v2918_v22 = vmax.f32 %v2917_v21, 0.0 }
 0xb1a   :  { %v2920_v23 = vadd.f32 1e-05, %v2918_v22 }
 0xb1c   :  { %5304 = vrsqrt.f32 %v2920_v23 }
 0xb29   :  { %v5305_v11 = vpop.eup %5304 }
 0xb2a   :  { %v2929_v24 = vrot.slane %v5305_v11, %v5871_v3 }
 0xb2c   :  { %v2930_v25 = vcombine.high %v2929_v24, %v2929_v24 }
 0xb2e   :  { %v2937_v27 = vrot.slane %v2930_v25, %v5871_v3 }
 0xb30   :  { %v2939_v29 = vmul.f32 %v2937_v27, %v2919_v26 }
 0xb32   :  { %v2956_v30 = vrot.slane %v2939_v29, %v5874_v6 }
 0xb34   :  { %v2958_v14 = vmul.f32 %v2956_v30, %v2944_v31  ;;  %v2959_v36 = vmul.f32 %v2956_v30, %v2945_v32  ;;  %v2960_v43 = vmul.f32 %v2956_v30, %v2946_v38  ;;  %v2961_v3 = vmul.f32 %v2956_v30, %v2947_v39 }
 0xb35   :  { %v2962_v51 = vmul.f32 %v2956_v30, %v2948_v41  ;;  %v2963_v52 = vmul.f32 %v2956_v30, %v2949_v46  ;;  %v2964_v58 = vmul.f32 %v2956_v30, %v2950_v56  ;;  %v2965_v60 = vmul.f32 %v2956_v30, %v2951_v57  ;;  %v5268_v41 = vld [vmem:[%s6595_s21 + $0x8] sm:$0xff]   ;;  %v5272_v46 = vld [vmem:[%s6595_s21 + $0x10] sm:$0xff]   ;;  %v5276_v56 = vld [vmem:[%s6595_s21 + $0x20] sm:$0xff]  }
 0xb36   :  { %v2973_v40 = vadd.f32 %v4356_v34, %v2958_v14  ;;  %v2974_v42 = vadd.f32 %v4356_v34, %v2959_v36  ;;  %v2975_v49 = vadd.f32 %v4356_v34, %v2960_v43  ;;  %v2976_v6 = vadd.f32 %v4356_v34, %v2961_v3 }
 0xb37   :  { %v2977_v54 = vadd.f32 %v4356_v34, %v2962_v51  ;;  %v2978_v55 = vadd.f32 %v4356_v34, %v2963_v52  ;;  %v2979_v62 = vadd.f32 %v4356_v34, %v2964_v58  ;;  %v2980_v1 = vadd.f32 %v4356_v34, %v2965_v60  ;;  %v5270_v51 = vld [vmem:[%s6595_s21 + $0x50] sm:$0xff]  }
 0xb38   :  { %v2981_v44 = vmax.f32 %v2973_v40, 0.0  ;;  %v2982_v47 = vmax.f32 %v2974_v42, 0.0  ;;  %v2983_v45 = vmax.f32 %v2975_v49, 0.0  ;;  %v2984_v50 = vmax.f32 %v2976_v6, 0.0 }
 0xb39   :  { %v2985_v59 = vmax.f32 %v2977_v54, 0.0  ;;  %v2986_v9 = vmax.f32 %v2978_v55, 0.0  ;;  %v2987_v5 = vmax.f32 %v2979_v62, 0.0  ;;  %v2988_v2 = vmax.f32 %v2980_v1, 0.0  ;;  %v5273_v55 = vld [vmem:[%s6595_s21 + $0x18] sm:$0xff]   ;;  %v5280_v62 = vld [vmem:[%s6595_s21 + $0x30] sm:$0xff]  }
 0xb3a   :  { %v2989_v48 = vpack.c.bf16 %v2982_v47, %v2981_v44  ;;  %v2990_v53 = vpack.c.bf16 %v2984_v50, %v2983_v45  ;;  %v5269_v50 = vld [vmem:[%s6595_s21 + $0x48] sm:$0xff]  }
 0xb3b   :  { %v2991_v61 = vpack.c.bf16 %v2986_v9, %v2985_v59  ;;  %v2992_v12 = vpack.c.bf16 %v2988_v2, %v2987_v5  ;;  %v5271_v59 = vld [vmem:[%s6595_s21 + $0x58] sm:$0xff]   ;;  %v5274_v9 = vld [vmem:[%s6595_s21 + $0x60] sm:$0xff]   ;;  %v5275_v1 = vld [vmem:[%s6595_s21 + $0x68] sm:$0xff]  }
 0xb3c   :  { %3218 = vmatmul.mubr.bf16.vlgmr.msra.gmra.mxu1 %v2989_v48  ;;  %3291 = vmatmul.mubr.bf16.vlgmr.msra.gmra.mxu0 %v2989_v48  ;;  %v5278_v5 = vld [vmem:[%s6595_s21 + $0x70] sm:$0xff]   ;;  %v5281_v2 = vld [vmem:[%s6595_s21 + $0x38] sm:$0xff]  }
 0xb3d   :  { %3227 = vmatprep.mubr.bf16.mxu1 %v5542_v0  ;;  %3300 = vmatprep.mubr.bf16.mxu0 %v5542_v0 }
 0xb44   :  { %3228 = vmatmul.mubr.bf16.gmra.mxu1 %v2990_v53  ;;  %3301 = vmatmul.mubr.bf16.gmra.mxu0 %v2990_v53 }
 0xb45   :  { %3237 = vmatprep.mubr.bf16.mxu1 %v5542_v0  ;;  %3310 = vmatprep.mubr.bf16.mxu0 %v5542_v0 }
 0xb4c   :  { %3238 = vmatmul.mubr.bf16.gmra.mxu1 %v2991_v61  ;;  %3311 = vmatmul.mubr.bf16.gmra.mxu0 %v2991_v61  ;;  %v5277_v61 = vld [vmem:[%s6595_s21 + $0x28] sm:$0xff]  }
 0xb4d   :  { %3247 = vmatprep.mubr.bf16.mxu1 %v5542_v0  ;;  %3320 = vmatprep.mubr.bf16.mxu0 %v5542_v0 }
 0xb54   :  { %3248 = vmatmul.mubr.bf16.gmra.mxu1 %v2992_v12  ;;  %3321 = vmatmul.mubr.bf16.gmra.mxu0 %v2992_v12  ;;  %v5284_v12 = vld [vmem:[%s6595_s21 + $0xc0] sm:$0xff]  }
 0xb55   :  { %4961 = vmatprep.mubr.msk.bf16.mxu0 %vm3420_vm7, %v5266_v33  ;;  %4937 = vmatprep.mubr.msk.bf16.mxu1 %vm3420_vm7, %v5267_v4  ;;  %v5279_v33 = vld [vmem:[%s6595_s21 + $0x78] sm:$0xff]   ;;  %v5282_v4 = vld [vmem:[%s6595_s21 + $0x80] sm:$0xff]  }
 0xbfc   :  { %v3219_v35 = vpop.f32.mrf.mxu1  ;;  %v6391_v0 = vpop.f32.mrf.mxu0 }
 0xbfe   :  { %v3221_v7 = vpop.f32.mrf.mxu1  ;;  %v6393_v8 = vpop.f32.mrf.mxu0 }
 0xc00   :  { %v3223_v16 = vpop.f32.mrf.mxu1  ;;  %v6395_v37 = vpop.f32.mrf.mxu0 }
 0xc01   :  { %v3331_v47 = vpack.c.bf16 %v3223_v16, %v3219_v35  ;;  %v3333_v60 = vpack.c.bf16 %v6395_v37, %v6391_v0  ;;  %v5285_v35 = vld [vmem:[%s6595_s21 + $0xc8] sm:$0xff]   ;;  %v5288_v0 = vld [vmem:[%s6595_s21 + $0xd0] sm:$0xff]   ;;  %v5289_v16 = vld [vmem:[%s6595_s21 + $0xd8] sm:$0xff]  }
 0xc02   :  { %v3225_v10 = vpop.f32.mrf.mxu1  ;;  %v6397_v13 = vpop.f32.mrf.mxu0  ;;  %v5292_v37 = vld [vmem:[%s6595_s21 + $0xe0] sm:$0xff]  }
 0xc03   :  { %v3332_v49 = vpack.c.bf16 %v3225_v10, %v3221_v7  ;;  %v3334_v58 = vpack.c.bf16 %v6397_v13, %v6393_v8  ;;  %v5283_v7 = vld [vmem:[%s6595_s21 + $0x88] sm:$0xff]   ;;  %v5286_v8 = vld [vmem:[%s6595_s21 + $0x90] sm:$0xff]   ;;  %v5287_v10 = vld [vmem:[%s6595_s21 + $0x98] sm:$0xff]  }
 0xc04   :  { %v3229_v15 = vpop.f32.mrf.mxu1  ;;  %v6399_v17 = vpop.f32.mrf.mxu0  ;;  %v5290_v13 = vld [vmem:[%s6595_s21 + $0xa0] sm:$0xff]  }
 0xc06   :  { %v3231_v18 = vpop.f32.mrf.mxu1  ;;  %v3304_v19 = vpop.f32.mrf.mxu0 }
 0xc08   :  { %v3233_v20 = vpop.f32.mrf.mxu1  ;;  %v6401_v63 = vpop.f32.mrf.mxu0 }
 0xc09   :  { %v3335_v43 = vpack.c.bf16 %v3233_v20, %v3229_v15  ;;  %v3337_v57 = vpack.c.bf16 %v6401_v63, %v6399_v17  ;;  %v5293_v15 = vld [vmem:[%s6595_s21 + $0xe8] sm:$0xff]   ;;  %v5296_v17 = vld [vmem:[%s6595_s21 + $0xf0] sm:$0xff]   ;;  %v5297_v20 = vld [vmem:[%s6595_s21 + $0xf8] sm:$0xff]  }
 0xc0a   :  { %v3235_v21 = vpop.f32.mrf.mxu1  ;;  %v3308_v22 = vpop.f32.mrf.mxu0  ;;  %v5295_v63 = vld [vmem:[%s6595_s21 + $0xb8] sm:$0xff]  }
 0xc0b   :  { %v3336_v44 = vpack.c.bf16 %v3235_v21, %v3231_v18  ;;  %v3338_v54 = vpack.c.bf16 %v3308_v22, %v3304_v19  ;;  %v5291_v18 = vld [vmem:[%s6595_s21 + $0xa8] sm:$0xff]   ;;  %v5294_v19 = vld [vmem:[%s6595_s21 + $0xb0] sm:$0xff]   ;;  %s5546_s21 = smov [#allocation16]  }
 0xc0c   :  { %v3239_v23 = vpop.f32.mrf.mxu1  ;;  %v3312_v11 = vpop.f32.mrf.mxu0  ;;  %s4128_s12 = sshll.u32 %s5546_s21, 4  ;;  %s4129_s12 = int_to_ptr.vmem [resolvable:$true] %s4128_s12 }
 0xc0d   :  { %s5498_s6 = scalar_lea.vmem %s4129_s12, 2048  ;;  %p5503_p13 = scmp.lt.s32.totalorder %s4129_s12, %s4129_s12 }
 0xc0e   :  { %v3241_v24 = vpop.f32.mrf.mxu1  ;;  %v3314_v25 = vpop.f32.mrf.mxu0  ;;  %p5499_p12 = scmp.ne.s32.totalorder %s4129_s12, %s5498_s6  ;;  %p5504_p0 = scmp.lt.s32.totalorder %s5498_s6, %s5498_s6 }
 0xc10   :  { %v3243_v26 = vpop.f32.mrf.mxu1  ;;  %v3316_v27 = vpop.f32.mrf.mxu0  ;;  %p5505_p1 = por %p5504_p0, %p5503_p13 }
 0xc11   :  { %v3339_v38 = vpack.c.bf16 %v3243_v26, %v3239_v23  ;;  %v3341_v53 = vpack.c.bf16 %v3316_v27, %v3312_v11 }
 0xc12   :  { %v3245_v28 = vpop.f32.mrf.mxu1  ;;  %v3318_v29 = vpop.f32.mrf.mxu0  ;;  %p5506_p2 = pnand %p5505_p1, %p5499_p12 }
 0xc13   :  { %v3340_v42 = vpack.c.bf16 %v3245_v28, %v3241_v24  ;;  %v3342_v52 = vpack.c.bf16 %v3318_v29, %v3314_v25 }
 0xc14   :  { %v3249_v30 = vpop.f32.mrf.mxu1  ;;  %v3322_v32 = vpop.f32.mrf.mxu0 }
 0xc16   :  { %v3251_v31 = vpop.f32.mrf.mxu1  ;;  %v3324_v40 = vpop.f32.mrf.mxu0 }
 0xc18   :  { %v3253_v34 = vpop.f32.mrf.mxu1  ;;  %v3326_v3 = vpop.f32.mrf.mxu0 }
 0xc19   :  { %v3343_v14 = vpack.c.bf16 %v3253_v34, %v3249_v30  ;;  %v3345_v45 = vpack.c.bf16 %v3326_v3, %v3322_v32 }
 0xc1a   :  { %v3255_v36 = vpop.f32.mrf.mxu1  ;;  %v3328_v48 = vpop.f32.mrf.mxu0 }
 0xc1b   :  { %v3344_v39 = vpack.c.bf16 %v3255_v36, %v3251_v31  ;;  %4953 = vmatprep.subr.bf16.mxu0 %v3343_v14  ;;  %v3346_v6 = vpack.c.bf16 %v3328_v48, %v3324_v40 }
 0xc1c   :  { %4954 = vmatpush3.bf16.msra.mxu0 %v3343_v14 }
 0xc1d   :  { %4929 = vmatprep.subr.bf16.mxu1 %v3344_v39  ;;  %4955 = vmatprep.subr.bf16.mxu0 %v3339_v38 }
 0xc1e   :  { %4930 = vmatpush3.bf16.msra.mxu1 %v3344_v39 }
 0xc1f   :  { %4931 = vmatprep.subr.bf16.mxu1 %v3340_v42 }
 0xc20   :  { %4956 = vmatpush3.bf16.msra.mxu0 %v3339_v38 }
 0xc21   :  { %4957 = vmatprep.subr.bf16.mxu0 %v3335_v43 }
 0xc22   :  { %4932 = vmatpush3.bf16.msra.mxu1 %v3340_v42 }
 0xc23   :  { %4933 = vmatprep.subr.bf16.mxu1 %v3336_v44 }
 0xc24   :  { %4958 = vmatpush3.bf16.msra.mxu0 %v3335_v43 }
 0xc25   :  { %4959 = vmatprep.subr.bf16.mxu0 %v3331_v47 }
 0xc26   :  { %4934 = vmatpush3.bf16.msra.mxu1 %v3336_v44 }
 0xc27   :  { %4935 = vmatprep.subr.bf16.mxu1 %v3332_v49 }
 0xc28   :  { %4960 = vmatpush3.bf16.msra.mxu0 %v3331_v47 }
 0xc29   :  { %5001 = vmatprep.subr.bf16.mxu0 %v3346_v6 }
 0xc2a   :  { %4936 = vmatpush3.bf16.msra.mxu1 %v3332_v49 }
 0xc2b   :  { %4977 = vmatprep.subr.bf16.mxu1 %v3345_v45  ;;  %4962 = vmatmul.mubr.msk.bf16.vlgmr.msra.gmra.mxu0 %vm3420_vm7, %v5268_v41 }
 0xc2c   :  { %5002 = vmatpush3.bf16.msra.mxu0 %v3346_v6  ;;  %4965 = vmatprep.mubr.msk.bf16.mxu0 %vm3420_vm7, %v5272_v46 }
 0xc2d   :  { %4938 = vmatmul.mubr.msk.bf16.vlgmr.msra.gmra.mxu1 %vm3420_vm7, %v5269_v50  ;;  %5003 = vmatprep.subr.bf16.mxu0 %v3342_v52 }
 0xc2e   :  { %4978 = vmatpush3.bf16.msra.mxu1 %v3345_v45  ;;  %4941 = vmatprep.mubr.msk.bf16.mxu1 %vm3420_vm7, %v5270_v51 }
 0xc2f   :  { %4979 = vmatprep.subr.bf16.mxu1 %v3341_v53 }
 0xc30   :  { %5004 = vmatpush3.bf16.msra.mxu0 %v3342_v52 }
 0xc31   :  { %5005 = vmatprep.subr.bf16.mxu0 %v3338_v54 }
 0xc32   :  { %4980 = vmatpush3.bf16.msra.mxu1 %v3341_v53 }
 0xc33   :  { %4981 = vmatprep.subr.bf16.mxu1 %v3337_v57  ;;  %4966 = vmatmul.mubr.msk.bf16.gmra.mxu0 %vm3420_vm7, %v5273_v55 }
 0xc34   :  { %5006 = vmatpush3.bf16.msra.mxu0 %v3338_v54  ;;  %4969 = vmatprep.mubr.msk.bf16.mxu0 %vm3420_vm7, %v5276_v56 }
 0xc35   :  { %4942 = vmatmul.mubr.msk.bf16.gmra.mxu1 %vm3420_vm7, %v5271_v59  ;;  %5007 = vmatprep.subr.bf16.mxu0 %v3334_v58 }
 0xc36   :  { %4982 = vmatpush3.bf16.msra.mxu1 %v3337_v57  ;;  %4945 = vmatprep.mubr.msk.bf16.mxu1 %vm3420_vm7, %v5274_v9 }
 0xc37   :  { %4983 = vmatprep.subr.bf16.mxu1 %v3333_v60 }
 0xc38   :  { %5008 = vmatpush3.bf16.msra.mxu0 %v3334_v58 }
 0xc3a   :  { %4984 = vmatpush3.bf16.msra.mxu1 %v3333_v60 }
 0xc3b   :  { %4970 = vmatmul.mubr.msk.bf16.gmra.mxu0 %vm3420_vm7, %v5277_v61 }
 0xc3c   :  { %4973 = vmatprep.mubr.msk.bf16.mxu0 %vm3420_vm7, %v5280_v62 }
 0xc3d   :  { %4946 = vmatmul.mubr.msk.bf16.gmra.mxu1 %vm3420_vm7, %v5275_v1 }
 0xc3e   :  { %4949 = vmatprep.mubr.msk.bf16.mxu1 %vm3420_vm7, %v5278_v5 }
 0xc43   :  { %4974 = vmatmul.mubr.msk.bf16.gmra.mxu0 %vm3420_vm7, %v5281_v2 }
 0xc44   :  { %5009 = vmatprep.mubr.msk.bf16.mxu0 %vm3420_vm7, %v5284_v12 }
 0xc45   :  { %4950 = vmatmul.mubr.msk.bf16.gmra.mxu1 %vm3420_vm7, %v5279_v33 }
 0xc46   :  { %4985 = vmatprep.mubr.msk.bf16.mxu1 %vm3420_vm7, %v5282_v4 }
 0xc4b   :  { %5010 = vmatmul.mubr.msk.bf16.vlgmr.msra.gmra.mxu0 %vm3420_vm7, %v5285_v35 }
 0xc4c   :  { %5013 = vmatprep.mubr.msk.bf16.mxu0 %vm3420_vm7, %v5288_v0 }
 0xc4d   :  { %4986 = vmatmul.mubr.msk.bf16.vlgmr.msra.gmra.mxu1 %vm3420_vm7, %v5283_v7 }
 0xc4e   :  { %4989 = vmatprep.mubr.msk.bf16.mxu1 %vm3420_vm7, %v5286_v8 }
 0xc53   :  { %5014 = vmatmul.mubr.msk.bf16.gmra.mxu0 %vm3420_vm7, %v5289_v16 }
 0xc54   :  { %5017 = vmatprep.mubr.msk.bf16.mxu0 %vm3420_vm7, %v5292_v37 }
 0xc55   :  { %4990 = vmatmul.mubr.msk.bf16.gmra.mxu1 %vm3420_vm7, %v5287_v10 }
 0xc56   :  { %4993 = vmatprep.mubr.msk.bf16.mxu1 %vm3420_vm7, %v5290_v13 }
 0xc5b   :  { %5018 = vmatmul.mubr.msk.bf16.gmra.mxu0 %vm3420_vm7, %v5293_v15 }
 0xc5c   :  { %5021 = vmatprep.mubr.msk.bf16.mxu0 %vm3420_vm7, %v5296_v17 }
 0xc5d   :  { %4994 = vmatmul.mubr.msk.bf16.gmra.mxu1 %vm3420_vm7, %v5291_v18 }
 0xc5e   :  { %4997 = vmatprep.mubr.msk.bf16.mxu1 %vm3420_vm7, %v5294_v19 }
 0xc63   :  { %5022 = vmatmul.mubr.msk.bf16.gmra.mxu0 %vm3420_vm7, %v5297_v20 }
 0xc65   :  { %4998 = vmatmul.mubr.msk.bf16.gmra.mxu1 %vm3420_vm7, %v5295_v63 }
 0xceb   :  { %v4963_v21 = vpop.f32.mrf.mxu0 }
 0xced   :  { %v4939_v22 = vpop.f32.mrf.mxu1  ;;  %v3640_v23 = vpop.f32.mrf.mxu0 }
 0xcee   :  { %v3649_v53 = vadd.f32 %v4963_v21, %v4939_v22 }
 0xcef   :  { %v3479_v11 = vpop.f32.mrf.mxu1  ;;  %v4964_v24 = vpop.f32.mrf.mxu0 }
 0xcf0   :  { %v3641_v56 = vadd.f32 %v3640_v23, %v3479_v11 }
 0xcf1   :  { %v4940_v25 = vpop.f32.mrf.mxu1  ;;  %v3643_v26 = vpop.f32.mrf.mxu0 }
 0xcf2   :  { %v3652_v58 = vadd.f32 %v4964_v24, %v4940_v25 }
 0xcf3   :  { %v3482_v27 = vpop.f32.mrf.mxu1  ;;  %v4967_v28 = vpop.f32.mrf.mxu0 }
 0xcf4   :  { %v3644_v5 = vadd.f32 %v3643_v26, %v3482_v27 }
 0xcf5   :  { %v4943_v29 = vpop.f32.mrf.mxu1  ;;  %v3656_v30 = vpop.f32.mrf.mxu0 }
 0xcf6   :  { %v3665_v35 = vadd.f32 %v4967_v28, %v4943_v29 }
 0xcf7   :  { %v3495_v31 = vpop.f32.mrf.mxu1  ;;  %v4968_v32 = vpop.f32.mrf.mxu0 }
 0xcf8   :  { %v3657_v37 = vadd.f32 %v3656_v30, %v3495_v31 }
 0xcf9   :  { %v4944_v34 = vpop.f32.mrf.mxu1  ;;  %v3659_v14 = vpop.f32.mrf.mxu0 }
 0xcfa   :  { %v3668_v18 = vadd.f32 %v4968_v32, %v4944_v34 }
 0xcfb   :  { %v3498_v36 = vpop.f32.mrf.mxu1  ;;  %v4971_v38 = vpop.f32.mrf.mxu0 }
 0xcfc   :  { %v3660_v22 = vadd.f32 %v3659_v14, %v3498_v36 }
 0xcfd   :  { %v4947_v39 = vpop.f32.mrf.mxu1  ;;  %v6529_v40 = vpop.f32.mrf.mxu0 }
 0xcfe   :  { %v3681_v26 = vadd.f32 %v4971_v38, %v4947_v39 }
 0xcff   :  { %v3511_v42 = vpop.f32.mrf.mxu1  ;;  %v6531_v43 = vpop.f32.mrf.mxu0 }
 0xd00   :  { %v3673_v31 = vadd.f32 %v6529_v40, %v3511_v42 }
 0xd01   :  { %v6533_v3 = vpop.f32.mrf.mxu1  ;;  %v6535_v44 = vpop.f32.mrf.mxu0 }
 0xd02   :  { %v3684_v14 = vadd.f32 %v6531_v43, %v6533_v3 }
 0xd03   :  { %v6537_v47 = vpop.f32.mrf.mxu1  ;;  %v6539_v48 = vpop.f32.mrf.mxu0 }
 0xd05   :  { %v6541_v49 = vpop.f32.mrf.mxu1  ;;  %v6543_v6 = vpop.f32.mrf.mxu0 }
 0xd06   :  { %v3697_v43 = vadd.f32 %v6539_v48, %v6541_v49 }
 0xd07   :  { %v6545_v41 = vpop.f32.mrf.mxu1  ;;  %v6547_v46 = vpop.f32.mrf.mxu0 }
 0xd09   :  { %v6549_v45 = vpop.f32.mrf.mxu1  ;;  %v6551_v50 = vpop.f32.mrf.mxu0 }
 0xd0b   :  { %v6553_v51 = vpop.f32.mrf.mxu1  ;;  %v5011_v52 = vpop.f32.mrf.mxu0 }
 0xd0d   :  { %v4987_v54 = vpop.f32.mrf.mxu1  ;;  %v4012_v55 = vpop.f32.mrf.mxu0 }
 0xd0e   :  { %v3883_v57 = vadd.f32 %v4987_v54, %v3649_v53 }
 0xd0f   :  { %v3818_v59 = vpop.f32.mrf.mxu1  ;;  %v5012_v9 = vpop.f32.mrf.mxu0 }
 0xd10   :  { %v3881_v60 = vadd.f32 %v3818_v59, %v3641_v56  ;;  %v4077_v61 = vadd.f32 %v5011_v52, %v3883_v57  ;;  %v3676_v57 = vadd.f32 %v6535_v44, %v6537_v47  ;;  %v3689_v44 = vadd.f32 %v6543_v6, %v6545_v41 }
 0xd11   :  { %v4988_v62 = vpop.f32.mrf.mxu1  ;;  %v4015_v1 = vpop.f32.mrf.mxu0 }
 0xd12   :  { %5306 = vtanh.f32 %v4077_v61  ;;  %v3884_v2 = vadd.f32 %v4988_v62, %v3652_v58  ;;  %v4075_v12 = vadd.f32 %v4012_v55, %v3881_v60 }
 0xd13   :  { %v3821_v33 = vpop.f32.mrf.mxu1  ;;  %v5015_v4 = vpop.f32.mrf.mxu0 }
 0xd14   :  { %5308 = vtanh.f32 %v4075_v12  ;;  %v3882_v0 = vadd.f32 %v3821_v33, %v3644_v5  ;;  %v4078_v7 = vadd.f32 %v5012_v9, %v3884_v2  ;;  %v3700_v33 = vadd.f32 %v6547_v46, %v6549_v45 }
 0xd15   :  { %v4991_v8 = vpop.f32.mrf.mxu1  ;;  %v4028_v16 = vpop.f32.mrf.mxu0 }
 0xd16   :  { %5310 = vtanh.f32 %v4078_v7  ;;  %v3887_v10 = vadd.f32 %v4991_v8, %v3665_v35  ;;  %v4076_v13 = vadd.f32 %v4015_v1, %v3882_v0  ;;  %v3692_v7 = vadd.f32 %v6551_v50, %v6553_v51 }
 0xd17   :  { %v3834_v15 = vpop.f32.mrf.mxu1  ;;  %v5016_v17 = vpop.f32.mrf.mxu0 }
 0xd18   :  { %5312 = vtanh.f32 %v4076_v13  ;;  %v3885_v19 = vadd.f32 %v3834_v15, %v3657_v37  ;;  %v4081_v20 = vadd.f32 %v5015_v4, %v3887_v10 }
 0xd19   :  { %v4992_v63 = vpop.f32.mrf.mxu1  ;;  %v4031_v21 = vpop.f32.mrf.mxu0 }
 0xd1a   :  { %5314 = vtanh.f32 %v4081_v20  ;;  %v3888_v23 = vadd.f32 %v4992_v63, %v3668_v18  ;;  %v4079_v11 = vadd.f32 %v4028_v16, %v3885_v19 }
 0xd1b   :  { %v3837_v24 = vpop.f32.mrf.mxu1  ;;  %v5019_v25 = vpop.f32.mrf.mxu0 }
 0xd1c   :  { %5316 = vtanh.f32 %v4079_v11  ;;  %v3886_v27 = vadd.f32 %v3837_v24, %v3660_v22  ;;  %v4082_v28 = vadd.f32 %v5016_v17, %v3888_v23 }
 0xd1d   :  { %v4995_v29 = vpop.f32.mrf.mxu1  ;;  %v4044_v30 = vpop.f32.mrf.mxu0 }
 0xd1e   :  { %5318 = vtanh.f32 %v4082_v28  ;;  %v3891_v32 = vadd.f32 %v4995_v29, %v3681_v26  ;;  %v4080_v34 = vadd.f32 %v4031_v21, %v3886_v27 }
 0xd1f   :  { %v5307_v52 = vpop.eup %5306  ;;  %v3850_v53 = vpop.f32.mrf.mxu1 }
 0xd20   :  { %v5020_v54 = vpop.f32.mrf.mxu0  ;;  %4109 = vst [vmem:[#allocation16 + $0x10] sm:$0xff] %v5307_v52  ;;  %5320 = vtanh.f32 %v4080_v34  ;;  %v3889_v36 = vadd.f32 %v3850_v53, %v3673_v31  ;;  %v4085_v38 = vadd.f32 %v5019_v25, %v3891_v32 }
 0xd21   :  { %v5309_v39 = vpop.eup %5308  ;;  %v4996_v55 = vpop.f32.mrf.mxu1 }
 0xd22   :  { %v4047_v56 = vpop.f32.mrf.mxu0  ;;  %4107 = vst [vmem:[#allocation16] sm:$0xff] %v5309_v39  ;;  %5322 = vtanh.f32 %v4085_v38  ;;  %v3892_v40 = vadd.f32 %v4996_v55, %v3684_v14  ;;  %v4083_v42 = vadd.f32 %v4044_v30, %v3889_v36 }
 0xd23   :  { %v5311_v59 = vpop.eup %5310  ;;  %v3853_v9 = vpop.f32.mrf.mxu1 }
 0xd24   :  { %v5023_v58 = vpop.f32.mrf.mxu0  ;;  %4110 = vst [vmem:[#allocation16 + $0x18] sm:$0xff] %v5311_v59  ;;  %5324 = vtanh.f32 %v4083_v42  ;;  %v3890_v3 = vadd.f32 %v3853_v9, %v3676_v57  ;;  %v4086_v60 = vadd.f32 %v5020_v54, %v3892_v40 }
 0xd25   :  { %v5313_v61 = vpop.eup %5312  ;;  %v4999_v62 = vpop.f32.mrf.mxu1 }
 0xd26   :  { %v4060_v1 = vpop.f32.mrf.mxu0  ;;  %4108 = vst [vmem:[#allocation16 + $0x8] sm:$0xff] %v5313_v61  ;;  %5326 = vtanh.f32 %v4086_v60  ;;  %v3895_v47 = vadd.f32 %v4999_v62, %v3697_v43  ;;  %v4084_v5 = vadd.f32 %v4047_v56, %v3890_v3 }
 0xd27   :  { %v5315_v2 = vpop.eup %5314  ;;  %v3866_v12 = vpop.f32.mrf.mxu1 }
 0xd28   :  { %4113 = vst [vmem:[#allocation16 + $0x30] sm:$0xff] %v5315_v2  ;;  %5328 = vtanh.f32 %v4084_v5  ;;  %v3893_v48 = vadd.f32 %v3866_v12, %v3689_v44  ;;  %v4089_v49 = vadd.f32 %v5023_v58, %v3895_v47  ;;  %v5024_v0 = vpop.f32.mrf.mxu0 }
 0xd29   :  { %v5317_v4 = vpop.eup %5316  ;;  %v5000_v35 = vpop.f32.mrf.mxu1 }
 0xd2a   :  { %4111 = vst [vmem:[#allocation16 + $0x20] sm:$0xff] %v5317_v4  ;;  %5330 = vtanh.f32 %v4089_v49  ;;  %v3896_v6 = vadd.f32 %v5000_v35, %v3700_v33  ;;  %v4087_v41 = vadd.f32 %v4060_v1, %v3893_v48  ;;  %v4063_v10 = vpop.f32.mrf.mxu0 }
 0xd2b   :  { %v5319_v8 = vpop.eup %5318  ;;  %v3869_v16 = vpop.f32.mrf.mxu1 }
 0xd2c   :  { %4114 = vst [vmem:[#allocation16 + $0x38] sm:$0xff] %v5319_v8  ;;  %5332 = vtanh.f32 %v4087_v41  ;;  %v3894_v37 = vadd.f32 %v3869_v16, %v3692_v7  ;;  %v4090_v46 = vadd.f32 %v5024_v0, %v3896_v6 }
 0xd2d   :  { %v5321_v45 = vpop.eup %5320 }
 0xd2e   :  { %4112 = vst [vmem:[#allocation16 + $0x28] sm:$0xff] %v5321_v45  ;;  %5334 = vtanh.f32 %v4090_v46  ;;  %v4088_v13 = vadd.f32 %v4063_v10, %v3894_v37 }
 0xd2f   :  { %v5323_v15 = vpop.eup %5322 }
 0xd30   :  { %4117 = vst [vmem:[#allocation16 + $0x50] sm:$0xff] %v5323_v15  ;;  %5336 = vtanh.f32 %v4088_v13 }
 0xd31   :  { %v5325_v17 = vpop.eup %5324 }
 0xd32   :  { %4115 = vst [vmem:[#allocation16 + $0x40] sm:$0xff] %v5325_v17 }
 0xd33   :  { %v5327_v50 = vpop.eup %5326 }
 0xd34   :  { %4118 = vst [vmem:[#allocation16 + $0x58] sm:$0xff] %v5327_v50 }
 0xd35   :  { %v5329_v51 = vpop.eup %5328 }
 0xd36   :  { %4116 = vst [vmem:[#allocation16 + $0x48] sm:$0xff] %v5329_v51 }
 0xd37   :  { %v5331_v18 = vpop.eup %5330 }
 0xd38   :  { %4121 = vst [vmem:[#allocation16 + $0x70] sm:$0xff] %v5331_v18 }
 0xd39   :  { %v5333_v19 = vpop.eup %5332 }
 0xd3a   :  { %4119 = vst [vmem:[#allocation16 + $0x60] sm:$0xff] %v5333_v19 }
 0xd3b   :  { %v5335_v20 = vpop.eup %5334 }
 0xd3c   :  { %4122 = vst [vmem:[#allocation16 + $0x78] sm:$0xff] %v5335_v20 }
 0xd3d   :  { %v5337_v63 = vpop.eup %5336 }
 0xd3e   :  { %4120 = vst [vmem:[#allocation16 + $0x68] sm:$0xff] %v5337_v63 }
 0xd3f   :  { %5509 = shalt.err (!%p5506_p2)
}
 0xd40   :  { %4134 = dma.vmem_to_hbm [thread:$0]  %s4129_s12, 2048, %s6597_s23, [#allocation4], %s5531_s25, %s5531_s25, %s5532_s5  }
 0xd41   :  { %5528 = dma.done.wait [#allocation4], 2048  }
 0xd42   :  { %5529 = vsyncadd [#allocation4], 4294965248 }
 0xd43   :  { %4138 = vsyncpa [#allocation3], 1 }
 0xd44   :  { %4139 = vsyncpa [#allocation6], 1 }
 0xd45   :  { %4140 = vsyncpa [#allocation9], 1 }
 0xd46   :  { %4141 = vsyncpa [#allocation12], 1 }
 0xd47   :  { %4142 = vsyncpa [#allocation15], 1 }
 0xd48   :  { %4143 = vsyncpa [#allocation4], 1 }

</bundles_post_ra>
